<compile_context>
chip_gen: v6e
topology: v6e:2x2x1
jax: 0.10.0
libtpu: 0.0.40
codegen_flags: <defaults>
</compile_context>

<pallas_src>
import functools

import jax
import jax.numpy as jnp
import numpy as np
from jax.experimental import pallas as pl
from jax.experimental.pallas import tpu as pltpu

# ---------------- model dims (small, consistent with the module) -------------
D_MODEL = 32          # d
EXPANSION = 2
D_INNER = D_MODEL * EXPANSION   # D = 64
D_STATE = 16          # S
CONV_K = 4            # conv_d
BATCH = 2
SEQ = 8               # L
EPS = 1e-6


# ------------------------------- kernel --------------------------------------
def mamba_kernel(x_ref, g_ref, winT_ref, bin_ref, wconv_ref, bconv_ref,
                 a_ref, bssm_ref, cssm_ref, woutT_ref, bout_ref, o_ref):
    BL, d = x_ref.shape                 # (B*L, d)
    D = winT_ref.shape[1]
    K = wconv_ref.shape[0]
    S, BD = bssm_ref.shape              # (S, B*D)
    B = BD // D
    L = BL // B

    x = x_ref[...]                      # (B*L, d)
    res = x

    # ---- RMSNorm over the feature (lane) axis ----
    ms = jnp.mean(x * x, axis=-1, keepdims=True)           # (B*L, 1)
    xn = x * jax.lax.rsqrt(ms + EPS) * g_ref[...]           # (B*L, d)

    # ---- input projection (MXU), both batches in one matmul ----
    xi = jnp.dot(xn, winT_ref[...],
                 preferred_element_type=jnp.float32) + bin_ref[...]   # (B*L, D)

    # ---- re-layout to time-major with (batch, channel) on lanes: (L, B*D) ----
    xi_l = jnp.concatenate([xi[b * L:(b + 1) * L, :] for b in range(B)],
                           axis=1)                          # (L, B*D) = (8, 128)

    # ---- causal depthwise conv1d, fully in registers (zero-pad + shift FMAs) --
    # y[t] = bias + sum_{delta=0}^{K-1} w[K-1-delta] * x[t-delta]   (x[<0] = 0)
    w = wconv_ref[...]                                      # (K, B*D)
    acc = xi_l * w[K - 1:K, :]
    for delta in range(1, K):                               # K=4, static unroll
        shifted = jnp.concatenate(
            [jnp.zeros((delta, BD), jnp.float32), xi_l[:L - delta, :]], axis=0)
        acc = acc + shifted * w[K - 1 - delta:K - delta, :]
    xc_l = acc + bconv_ref[...]                             # (L, B*D)

    # ---- per-channel SSM recurrence, lane-dense ----
    # h[s, b*D+d] = sum_{s'} A[d, s, s'] * h_prev[s', b*D+d] + x_t[b,d] * B[d, s]
    # a_ref is pre-laid-out as (S', S, B*D) with a_ref[sp, s, b*D+d] = A[d, s, sp]
    Bl = bssm_ref[...]                                      # (S, B*D)
    Cl = cssm_ref[...]                                      # (S, B*D)
    h = jnp.zeros((S, BD), jnp.float32)
    y_rows = []
    for t in range(L):                                      # L=8, static unroll
        terms = [xc_l[t:t + 1, :] * Bl]                     # drive term, (S, B*D)
        for sp in range(S):                                 # S=16 VPU FMAs of (S, 128)
            terms.append(a_ref[sp] * h[sp:sp + 1, :])
        # balanced tree-sum: dependence depth ~log2(S+1) instead of S
        while len(terms) > 1:
            nxt = [terms[i] + terms[i + 1] for i in range(0, len(terms) - 1, 2)]
            if len(terms) % 2:
                nxt.append(terms[-1])
            terms = nxt
        h = terms[0]                                        # (S, B*D)
        # y_t[b*D+d] = sum_s C[d, s] * h[s, b*D+d]   (sublane reduce, XLU)
        y_rows.append(jnp.sum(Cl * h, axis=0, keepdims=True))
    y_l = jnp.concatenate(y_rows, axis=0)                   # (L, B*D)

    # ---- back to (B*L, D) rows, output projection (MXU) + residual ----
    y2 = jnp.concatenate([y_l[:, b * D:(b + 1) * D] for b in range(B)], axis=0)
    o = jnp.dot(y2, woutT_ref[...],
                preferred_element_type=jnp.float32) + bout_ref[...]   # (B*L, d)
    o_ref[...] = o + res


# ------------------------------ wrapper ---------------------------------------
@jax.jit
def mamba_pallas(x, g, winT, bin_, wconv, bconv, A, Bssm, Cssm, woutT, bout):
    Bb, L, d = x.shape
    D = winT.shape[1]
    S = A.shape[-1]
    K = wconv.shape[0]
    BL = Bb * L
    BD = Bb * D

    # Pre-layouts for the lane-dense SSM / conv (tiny; done once on device).
    x2 = x.reshape(BL, d)                                    # rows b-major: (b*L + t)
    A_l = jnp.tile(jnp.transpose(A, (2, 1, 0)), (1, 1, Bb))  # (S', S, B*D)
    B_l = jnp.tile(Bssm.T, (1, Bb))                          # (S, B*D)
    C_l = jnp.tile(Cssm.T, (1, Bb))                          # (S, B*D)
    wconv_l = jnp.tile(wconv, (1, Bb))                       # (K, B*D)
    bconv_l = jnp.tile(bconv, (1, Bb))                       # (1, B*D)

    grid_spec = pltpu.PrefetchScalarGridSpec(
        num_scalar_prefetch=0,
        grid=(1,),                                           # batch folded in
        in_specs=[
            pl.BlockSpec((BL, d), lambda i: (0, 0)),         # x (B*L, d)
            pl.BlockSpec((1, d), lambda i: (0, 0)),          # rmsnorm gain
            pl.BlockSpec((d, D), lambda i: (0, 0)),          # W_in^T
            pl.BlockSpec((1, D), lambda i: (0, 0)),          # b_in
            pl.BlockSpec((K, BD), lambda i: (0, 0)),         # depthwise conv weight (tiled)
            pl.BlockSpec((1, BD), lambda i: (0, 0)),         # conv bias (tiled)
            pl.BlockSpec((S, S, BD), lambda i: (0, 0, 0)),   # A (S', S, B*D)
            pl.BlockSpec((S, BD), lambda i: (0, 0)),         # B (S, B*D)
            pl.BlockSpec((S, BD), lambda i: (0, 0)),         # C (S, B*D)
            pl.BlockSpec((D, d), lambda i: (0, 0)),          # W_out^T
            pl.BlockSpec((1, d), lambda i: (0, 0)),          # b_out
        ],
        out_specs=pl.BlockSpec((BL, d), lambda i: (0, 0)),
    )
    out2d = pl.pallas_call(
        mamba_kernel,
        out_shape=jax.ShapeDtypeStruct((BL, d), jnp.float32),
        grid_spec=grid_spec,
        compiler_params=pltpu.CompilerParams(
            dimension_semantics=("arbitrary",)),
    )(x2, g, winT, bin_, wconv_l, bconv_l, A_l, B_l, C_l, woutT, bout)
    return out2d.reshape(Bb, L, d)


# --------------------------- pure-JAX reference --------------------------------
def mamba_reference(x, g, winT, bin_, wconv, bconv, A, Bssm, Cssm, woutT, bout):
    Bb, L, d = x.shape
    K = wconv.shape[0]
    res = x
    ms = jnp.mean(x * x, axis=-1, keepdims=True)
    xn = x * jax.lax.rsqrt(ms + EPS) * g                        # (B, L, d)
    xi = xn @ winT + bin_                                        # (B, L, D)
    xp = jnp.pad(xi, ((0, 0), (K - 1, 0), (0, 0)))
    xc = sum(xp[:, k:k + L, :] * wconv[k][None, None, :] for k in range(K)) + bconv
    h = jnp.zeros((Bb, xi.shape[-1], D_STATE), jnp.float32)
    ys = []
    for t in range(L):
        h = jnp.sum(A[None] * h[:, :, None, :], axis=-1) \
            + xc[:, t][:, :, None] * Bssm[None]
        ys.append(jnp.sum(Cssm[None] * h, axis=-1))
    y = jnp.stack(ys, axis=1)                                    # (B, L, D)
    return y @ woutT + bout + res


# --------------------------------- main ----------------------------------------
if __name__ == "__main__":
    key = jax.random.PRNGKey(0)
    ks = jax.random.split(key, 12)
    d, D, S, K = D_MODEL, D_INNER, D_STATE, CONV_K

    x = jax.random.normal(ks[0], (BATCH, SEQ, d), jnp.float32)

    g = jnp.ones((1, d), jnp.float32)                                   # RMSNorm weight
    winT = jax.random.normal(ks[1], (d, D), jnp.float32) / np.sqrt(d)   # Linear(d, D).weight^T
    bin_ = 0.1 * jax.random.normal(ks[2], (1, D), jnp.float32)
    # Conv1d(D, D, K, groups=D).weight is (D, 1, K) -> stored as (K, D)
    wconv = 0.5 * jax.random.normal(ks[3], (K, D), jnp.float32)
    bconv = 0.1 * jax.random.normal(ks[4], (1, D), jnp.float32)
    # A:(D,S,S), B:(D,S,1)->(D,S), C:(D,1,S)->(D,S); A scaled for a stable scan
    A = jax.random.normal(ks[5], (D, S, S), jnp.float32) * (0.3 / np.sqrt(S))
    Bssm = jax.random.normal(ks[6], (D, S), jnp.float32)
    Cssm = jax.random.normal(ks[7], (D, S), jnp.float32)
    woutT = jax.random.normal(ks[8], (D, d), jnp.float32) / np.sqrt(D)  # Linear(D, d).weight^T
    bout = 0.1 * jax.random.normal(ks[9], (1, d), jnp.float32)

    args = (x, g, winT, bin_, wconv, bconv, A, Bssm, Cssm, woutT, bout)

    out = mamba_pallas(*args)
    out = jax.block_until_ready(out)

    ref = jax.block_until_ready(mamba_reference(*args))
    np.testing.assert_allclose(np.asarray(out), np.asarray(ref), rtol=2e-2, atol=2e-2)

    print("KERNEL_OK")
</pallas_src>

<mosaic_0001>
module attributes {stable_mosaic.version = 11 : i64} {
  func.func @mamba_kernel(%arg0: i32, %arg1: memref<16x32xf32, #tpu.memory_space<vmem>>, %arg2: memref<1x32xf32, #tpu.memory_space<vmem>>, %arg3: memref<32x64xf32, #tpu.memory_space<vmem>>, %arg4: memref<1x64xf32, #tpu.memory_space<vmem>>, %arg5: memref<4x128xf32, #tpu.memory_space<vmem>>, %arg6: memref<1x128xf32, #tpu.memory_space<vmem>>, %arg7: memref<16x16x128xf32, #tpu.memory_space<vmem>>, %arg8: memref<16x128xf32, #tpu.memory_space<vmem>>, %arg9: memref<16x128xf32, #tpu.memory_space<vmem>>, %arg10: memref<64x32xf32, #tpu.memory_space<vmem>>, %arg11: memref<1x32xf32, #tpu.memory_space<vmem>>, %arg12: memref<16x32xf32, #tpu.memory_space<vmem>>) attributes {dimension_semantics = [#tpu.dimension_semantics<arbitrary>], iteration_bounds = array<i64: 1>, scalar_prefetch = 0 : i64, scratch_operands = 0 : i64, tpu.core_type = #tpu.core_type<tc>, window_params = [{pipeline_mode = #tpu.pipeline_mode<synchronous>, transform_indices = @transform_0, window_bounds = array<i64: 16, 32>}, {pipeline_mode = #tpu.pipeline_mode<synchronous>, transform_indices = @transform_1, window_bounds = array<i64: 1, 32>}, {pipeline_mode = #tpu.pipeline_mode<synchronous>, transform_indices = @transform_2, window_bounds = array<i64: 32, 64>}, {pipeline_mode = #tpu.pipeline_mode<synchronous>, transform_indices = @transform_3, window_bounds = array<i64: 1, 64>}, {pipeline_mode = #tpu.pipeline_mode<synchronous>, transform_indices = @transform_4, window_bounds = array<i64: 4, 128>}, {pipeline_mode = #tpu.pipeline_mode<synchronous>, transform_indices = @transform_5, window_bounds = array<i64: 1, 128>}, {pipeline_mode = #tpu.pipeline_mode<synchronous>, transform_indices = @transform_6, window_bounds = array<i64: 16, 16, 128>}, {pipeline_mode = #tpu.pipeline_mode<synchronous>, transform_indices = @transform_7, window_bounds = array<i64: 16, 128>}, {pipeline_mode = #tpu.pipeline_mode<synchronous>, transform_indices = @transform_8, window_bounds = array<i64: 16, 128>}, {pipeline_mode = #tpu.pipeline_mode<synchronous>, transform_indices = @transform_9, window_bounds = array<i64: 64, 32>}, {pipeline_mode = #tpu.pipeline_mode<synchronous>, transform_indices = @transform_10, window_bounds = array<i64: 1, 32>}, {pipeline_mode = #tpu.pipeline_mode<synchronous>, transform_indices = @transform_11, window_bounds = array<i64: 16, 32>}]} {
    %c0 = arith.constant 0 : index
    %c0_0 = arith.constant 0 : index
    %0 = vector.load %arg1[%c0, %c0_0] : memref<16x32xf32, #tpu.memory_space<vmem>>, vector<16x32xf32>
    %1 = arith.mulf %0, %0 : vector<16x32xf32>
    %cst = arith.constant dense<0.000000e+00> : vector<16xf32>
    %2 = vector.multi_reduction <add>, %1, %cst [1] : vector<16x32xf32> to vector<16xf32>
    %3 = vector.shape_cast %2 : vector<16xf32> to vector<16x1xf32>
    %cst_1 = arith.constant 3.200000e+01 : f32
    %4 = vector.broadcast %cst_1 : f32 to vector<16x1xf32>
    %5 = arith.divf %3, %4 : vector<16x1xf32>
    %cst_2 = arith.constant 9.99999997E-7 : f32
    %6 = vector.broadcast %cst_2 : f32 to vector<16x1xf32>
    %7 = arith.addf %5, %6 : vector<16x1xf32>
    %8 = math.rsqrt %7 : vector<16x1xf32>
    %9 = vector.broadcast %8 : vector<16x1xf32> to vector<16x32xf32>
    %10 = arith.mulf %0, %9 : vector<16x32xf32>
    %c0_3 = arith.constant 0 : index
    %c0_4 = arith.constant 0 : index
    %11 = vector.load %arg2[%c0_3, %c0_4] : memref<1x32xf32, #tpu.memory_space<vmem>>, vector<1x32xf32>
    %12 = vector.broadcast %11 : vector<1x32xf32> to vector<16x32xf32>
    %13 = arith.mulf %10, %12 : vector<16x32xf32>
    %c0_5 = arith.constant 0 : index
    %c0_6 = arith.constant 0 : index
    %14 = vector.load %arg3[%c0_5, %c0_6] : memref<32x64xf32, #tpu.memory_space<vmem>>, vector<32x64xf32>
    %cst_7 = arith.constant dense<0.000000e+00> : vector<16x64xf32>
    %15 = tpu.matmul %13, %14, %cst_7 {dimension_numbers = #tpu.dot_dimension_numbers<[1], [0], [0], [1], [0, 0, 1, 1], [], []>} : vector<16x32xf32>, vector<32x64xf32>, vector<16x64xf32> -> vector<16x64xf32>
    %c0_8 = arith.constant 0 : index
    %c0_9 = arith.constant 0 : index
    %16 = vector.load %arg4[%c0_8, %c0_9] : memref<1x64xf32, #tpu.memory_space<vmem>>, vector<1x64xf32>
    %17 = vector.broadcast %16 : vector<1x64xf32> to vector<16x64xf32>
    %18 = arith.addf %15, %17 : vector<16x64xf32>
    %19 = vector.extract_strided_slice %18 {offsets = [0, 0], sizes = [8, 64], strides = [1, 1]} : vector<16x64xf32> to vector<8x64xf32>
    %20 = vector.extract_strided_slice %18 {offsets = [8, 0], sizes = [8, 64], strides = [1, 1]} : vector<16x64xf32> to vector<8x64xf32>
    %21 = tpu.concatenate %19, %20 in 1 : vector<8x64xf32>, vector<8x64xf32> -> vector<8x128xf32>
    %c0_10 = arith.constant 0 : index
    %c0_11 = arith.constant 0 : index
    %22 = vector.load %arg5[%c0_10, %c0_11] : memref<4x128xf32, #tpu.memory_space<vmem>>, vector<4x128xf32>
    %23 = vector.extract_strided_slice %22 {offsets = [3, 0], sizes = [1, 128], strides = [1, 1]} : vector<4x128xf32> to vector<1x128xf32>
    %24 = vector.broadcast %23 : vector<1x128xf32> to vector<8x128xf32>
    %25 = arith.mulf %21, %24 : vector<8x128xf32>
    %cst_12 = arith.constant 0.000000e+00 : f32
    %26 = vector.broadcast %cst_12 : f32 to vector<1x128xf32>
    %27 = vector.extract_strided_slice %21 {offsets = [0, 0], sizes = [7, 128], strides = [1, 1]} : vector<8x128xf32> to vector<7x128xf32>
    %28 = tpu.concatenate %26, %27 in 0 : vector<1x128xf32>, vector<7x128xf32> -> vector<8x128xf32>
    %29 = vector.extract_strided_slice %22 {offsets = [2, 0], sizes = [1, 128], strides = [1, 1]} : vector<4x128xf32> to vector<1x128xf32>
    %30 = vector.broadcast %29 : vector<1x128xf32> to vector<8x128xf32>
    %31 = arith.mulf %28, %30 : vector<8x128xf32>
    %32 = arith.addf %25, %31 : vector<8x128xf32>
    %cst_13 = arith.constant 0.000000e+00 : f32
    %33 = vector.broadcast %cst_13 : f32 to vector<2x128xf32>
    %34 = vector.extract_strided_slice %21 {offsets = [0, 0], sizes = [6, 128], strides = [1, 1]} : vector<8x128xf32> to vector<6x128xf32>
    %35 = tpu.concatenate %33, %34 in 0 : vector<2x128xf32>, vector<6x128xf32> -> vector<8x128xf32>
    %36 = vector.extract_strided_slice %22 {offsets = [1, 0], sizes = [1, 128], strides = [1, 1]} : vector<4x128xf32> to vector<1x128xf32>
    %37 = vector.broadcast %36 : vector<1x128xf32> to vector<8x128xf32>
    %38 = arith.mulf %35, %37 : vector<8x128xf32>
    %39 = arith.addf %32, %38 : vector<8x128xf32>
    %cst_14 = arith.constant 0.000000e+00 : f32
    %40 = vector.broadcast %cst_14 : f32 to vector<3x128xf32>
    %41 = vector.extract_strided_slice %21 {offsets = [0, 0], sizes = [5, 128], strides = [1, 1]} : vector<8x128xf32> to vector<5x128xf32>
    %42 = tpu.concatenate %40, %41 in 0 : vector<3x128xf32>, vector<5x128xf32> -> vector<8x128xf32>
    %43 = vector.extract_strided_slice %22 {offsets = [0, 0], sizes = [1, 128], strides = [1, 1]} : vector<4x128xf32> to vector<1x128xf32>
    %44 = vector.broadcast %43 : vector<1x128xf32> to vector<8x128xf32>
    %45 = arith.mulf %42, %44 : vector<8x128xf32>
    %46 = arith.addf %39, %45 : vector<8x128xf32>
    %c0_15 = arith.constant 0 : index
    %c0_16 = arith.constant 0 : index
    %47 = vector.load %arg6[%c0_15, %c0_16] : memref<1x128xf32, #tpu.memory_space<vmem>>, vector<1x128xf32>
    %48 = vector.broadcast %47 : vector<1x128xf32> to vector<8x128xf32>
    %49 = arith.addf %46, %48 : vector<8x128xf32>
    %c0_17 = arith.constant 0 : index
    %c0_18 = arith.constant 0 : index
    %50 = vector.load %arg8[%c0_17, %c0_18] : memref<16x128xf32, #tpu.memory_space<vmem>>, vector<16x128xf32>
    %c0_19 = arith.constant 0 : index
    %c0_20 = arith.constant 0 : index
    %51 = vector.load %arg9[%c0_19, %c0_20] : memref<16x128xf32, #tpu.memory_space<vmem>>, vector<16x128xf32>
    %cst_21 = arith.constant 0.000000e+00 : f32
    %52 = vector.broadcast %cst_21 : f32 to vector<16x128xf32>
    %53 = vector.extract_strided_slice %49 {offsets = [0, 0], sizes = [1, 128], strides = [1, 1]} : vector<8x128xf32> to vector<1x128xf32>
    %54 = vector.broadcast %53 : vector<1x128xf32> to vector<16x128xf32>
    %55 = arith.mulf %54, %50 : vector<16x128xf32>
    %c0_22 = arith.constant 0 : index
    %c0_23 = arith.constant 0 : index
    %c0_24 = arith.constant 0 : index
    %56 = vector.load %arg7[%c0_22, %c0_23, %c0_24] : memref<16x16x128xf32, #tpu.memory_space<vmem>>, vector<1x16x128xf32>
    %57 = vector.shape_cast %56 : vector<1x16x128xf32> to vector<16x128xf32>
    %58 = vector.extract_strided_slice %52 {offsets = [0, 0], sizes = [1, 128], strides = [1, 1]} : vector<16x128xf32> to vector<1x128xf32>
    %59 = vector.broadcast %58 : vector<1x128xf32> to vector<16x128xf32>
    %60 = arith.mulf %57, %59 : vector<16x128xf32>
    %c1 = arith.constant 1 : index
    %c0_25 = arith.constant 0 : index
    %c0_26 = arith.constant 0 : index
    %61 = vector.load %arg7[%c1, %c0_25, %c0_26] : memref<16x16x128xf32, #tpu.memory_space<vmem>>, vector<1x16x128xf32>
    %62 = vector.shape_cast %61 : vector<1x16x128xf32> to vector<16x128xf32>
    %63 = vector.extract_strided_slice %52 {offsets = [1, 0], sizes = [1, 128], strides = [1, 1]} : vector<16x128xf32> to vector<1x128xf32>
    %64 = vector.broadcast %63 : vector<1x128xf32> to vector<16x128xf32>
    %65 = arith.mulf %62, %64 : vector<16x128xf32>
    %c2 = arith.constant 2 : index
    %c0_27 = arith.constant 0 : index
    %c0_28 = arith.constant 0 : index
    %66 = vector.load %arg7[%c2, %c0_27, %c0_28] : memref<16x16x128xf32, #tpu.memory_space<vmem>>, vector<1x16x128xf32>
    %67 = vector.shape_cast %66 : vector<1x16x128xf32> to vector<16x128xf32>
    %68 = vector.extract_strided_slice %52 {offsets = [2, 0], sizes = [1, 128], strides = [1, 1]} : vector<16x128xf32> to vector<1x128xf32>
    %69 = vector.broadcast %68 : vector<1x128xf32> to vector<16x128xf32>
    %70 = arith.mulf %67, %69 : vector<16x128xf32>
    %c3 = arith.constant 3 : index
    %c0_29 = arith.constant 0 : index
    %c0_30 = arith.constant 0 : index
    %71 = vector.load %arg7[%c3, %c0_29, %c0_30] : memref<16x16x128xf32, #tpu.memory_space<vmem>>, vector<1x16x128xf32>
    %72 = vector.shape_cast %71 : vector<1x16x128xf32> to vector<16x128xf32>
    %73 = vector.extract_strided_slice %52 {offsets = [3, 0], sizes = [1, 128], strides = [1, 1]} : vector<16x128xf32> to vector<1x128xf32>
    %74 = vector.broadcast %73 : vector<1x128xf32> to vector<16x128xf32>
    %75 = arith.mulf %72, %74 : vector<16x128xf32>
    %c4 = arith.constant 4 : index
    %c0_31 = arith.constant 0 : index
    %c0_32 = arith.constant 0 : index
    %76 = vector.load %arg7[%c4, %c0_31, %c0_32] : memref<16x16x128xf32, #tpu.memory_space<vmem>>, vector<1x16x128xf32>
    %77 = vector.shape_cast %76 : vector<1x16x128xf32> to vector<16x128xf32>
    %78 = vector.extract_strided_slice %52 {offsets = [4, 0], sizes = [1, 128], strides = [1, 1]} : vector<16x128xf32> to vector<1x128xf32>
    %79 = vector.broadcast %78 : vector<1x128xf32> to vector<16x128xf32>
    %80 = arith.mulf %77, %79 : vector<16x128xf32>
    %c5 = arith.constant 5 : index
    %c0_33 = arith.constant 0 : index
    %c0_34 = arith.constant 0 : index
    %81 = vector.load %arg7[%c5, %c0_33, %c0_34] : memref<16x16x128xf32, #tpu.memory_space<vmem>>, vector<1x16x128xf32>
    %82 = vector.shape_cast %81 : vector<1x16x128xf32> to vector<16x128xf32>
    %83 = vector.extract_strided_slice %52 {offsets = [5, 0], sizes = [1, 128], strides = [1, 1]} : vector<16x128xf32> to vector<1x128xf32>
    %84 = vector.broadcast %83 : vector<1x128xf32> to vector<16x128xf32>
    %85 = arith.mulf %82, %84 : vector<16x128xf32>
    %c6 = arith.constant 6 : index
    %c0_35 = arith.constant 0 : index
    %c0_36 = arith.constant 0 : index
    %86 = vector.load %arg7[%c6, %c0_35, %c0_36] : memref<16x16x128xf32, #tpu.memory_space<vmem>>, vector<1x16x128xf32>
    %87 = vector.shape_cast %86 : vector<1x16x128xf32> to vector<16x128xf32>
    %88 = vector.extract_strided_slice %52 {offsets = [6, 0], sizes = [1, 128], strides = [1, 1]} : vector<16x128xf32> to vector<1x128xf32>
    %89 = vector.broadcast %88 : vector<1x128xf32> to vector<16x128xf32>
    %90 = arith.mulf %87, %89 : vector<16x128xf32>
    %c7 = arith.constant 7 : index
    %c0_37 = arith.constant 0 : index
    %c0_38 = arith.constant 0 : index
    %91 = vector.load %arg7[%c7, %c0_37, %c0_38] : memref<16x16x128xf32, #tpu.memory_space<vmem>>, vector<1x16x128xf32>
    %92 = vector.shape_cast %91 : vector<1x16x128xf32> to vector<16x128xf32>
    %93 = vector.extract_strided_slice %52 {offsets = [7, 0], sizes = [1, 128], strides = [1, 1]} : vector<16x128xf32> to vector<1x128xf32>
    %94 = vector.broadcast %93 : vector<1x128xf32> to vector<16x128xf32>
    %95 = arith.mulf %92, %94 : vector<16x128xf32>
    %c8 = arith.constant 8 : index
    %c0_39 = arith.constant 0 : index
    %c0_40 = arith.constant 0 : index
    %96 = vector.load %arg7[%c8, %c0_39, %c0_40] : memref<16x16x128xf32, #tpu.memory_space<vmem>>, vector<1x16x128xf32>
    %97 = vector.shape_cast %96 : vector<1x16x128xf32> to vector<16x128xf32>
    %98 = vector.extract_strided_slice %52 {offsets = [8, 0], sizes = [1, 128], strides = [1, 1]} : vector<16x128xf32> to vector<1x128xf32>
    %99 = vector.broadcast %98 : vector<1x128xf32> to vector<16x128xf32>
    %100 = arith.mulf %97, %99 : vector<16x128xf32>
    %c9 = arith.constant 9 : index
    %c0_41 = arith.constant 0 : index
    %c0_42 = arith.constant 0 : index
    %101 = vector.load %arg7[%c9, %c0_41, %c0_42] : memref<16x16x128xf32, #tpu.memory_space<vmem>>, vector<1x16x128xf32>
    %102 = vector.shape_cast %101 : vector<1x16x128xf32> to vector<16x128xf32>
    %103 = vector.extract_strided_slice %52 {offsets = [9, 0], sizes = [1, 128], strides = [1, 1]} : vector<16x128xf32> to vector<1x128xf32>
    %104 = vector.broadcast %103 : vector<1x128xf32> to vector<16x128xf32>
    %105 = arith.mulf %102, %104 : vector<16x128xf32>
    %c10 = arith.constant 10 : index
    %c0_43 = arith.constant 0 : index
    %c0_44 = arith.constant 0 : index
    %106 = vector.load %arg7[%c10, %c0_43, %c0_44] : memref<16x16x128xf32, #tpu.memory_space<vmem>>, vector<1x16x128xf32>
    %107 = vector.shape_cast %106 : vector<1x16x128xf32> to vector<16x128xf32>
    %108 = vector.extract_strided_slice %52 {offsets = [10, 0], sizes = [1, 128], strides = [1, 1]} : vector<16x128xf32> to vector<1x128xf32>
    %109 = vector.broadcast %108 : vector<1x128xf32> to vector<16x128xf32>
    %110 = arith.mulf %107, %109 : vector<16x128xf32>
    %c11 = arith.constant 11 : index
    %c0_45 = arith.constant 0 : index
    %c0_46 = arith.constant 0 : index
    %111 = vector.load %arg7[%c11, %c0_45, %c0_46] : memref<16x16x128xf32, #tpu.memory_space<vmem>>, vector<1x16x128xf32>
    %112 = vector.shape_cast %111 : vector<1x16x128xf32> to vector<16x128xf32>
    %113 = vector.extract_strided_slice %52 {offsets = [11, 0], sizes = [1, 128], strides = [1, 1]} : vector<16x128xf32> to vector<1x128xf32>
    %114 = vector.broadcast %113 : vector<1x128xf32> to vector<16x128xf32>
    %115 = arith.mulf %112, %114 : vector<16x128xf32>
    %c12 = arith.constant 12 : index
    %c0_47 = arith.constant 0 : index
    %c0_48 = arith.constant 0 : index
    %116 = vector.load %arg7[%c12, %c0_47, %c0_48] : memref<16x16x128xf32, #tpu.memory_space<vmem>>, vector<1x16x128xf32>
    %117 = vector.shape_cast %116 : vector<1x16x128xf32> to vector<16x128xf32>
    %118 = vector.extract_strided_slice %52 {offsets = [12, 0], sizes = [1, 128], strides = [1, 1]} : vector<16x128xf32> to vector<1x128xf32>
    %119 = vector.broadcast %118 : vector<1x128xf32> to vector<16x128xf32>
    %120 = arith.mulf %117, %119 : vector<16x128xf32>
    %c13 = arith.constant 13 : index
    %c0_49 = arith.constant 0 : index
    %c0_50 = arith.constant 0 : index
    %121 = vector.load %arg7[%c13, %c0_49, %c0_50] : memref<16x16x128xf32, #tpu.memory_space<vmem>>, vector<1x16x128xf32>
    %122 = vector.shape_cast %121 : vector<1x16x128xf32> to vector<16x128xf32>
    %123 = vector.extract_strided_slice %52 {offsets = [13, 0], sizes = [1, 128], strides = [1, 1]} : vector<16x128xf32> to vector<1x128xf32>
    %124 = vector.broadcast %123 : vector<1x128xf32> to vector<16x128xf32>
    %125 = arith.mulf %122, %124 : vector<16x128xf32>
    %c14 = arith.constant 14 : index
    %c0_51 = arith.constant 0 : index
    %c0_52 = arith.constant 0 : index
    %126 = vector.load %arg7[%c14, %c0_51, %c0_52] : memref<16x16x128xf32, #tpu.memory_space<vmem>>, vector<1x16x128xf32>
    %127 = vector.shape_cast %126 : vector<1x16x128xf32> to vector<16x128xf32>
    %128 = vector.extract_strided_slice %52 {offsets = [14, 0], sizes = [1, 128], strides = [1, 1]} : vector<16x128xf32> to vector<1x128xf32>
    %129 = vector.broadcast %128 : vector<1x128xf32> to vector<16x128xf32>
    %130 = arith.mulf %127, %129 : vector<16x128xf32>
    %c15 = arith.constant 15 : index
    %c0_53 = arith.constant 0 : index
    %c0_54 = arith.constant 0 : index
    %131 = vector.load %arg7[%c15, %c0_53, %c0_54] : memref<16x16x128xf32, #tpu.memory_space<vmem>>, vector<1x16x128xf32>
    %132 = vector.shape_cast %131 : vector<1x16x128xf32> to vector<16x128xf32>
    %133 = vector.extract_strided_slice %52 {offsets = [15, 0], sizes = [1, 128], strides = [1, 1]} : vector<16x128xf32> to vector<1x128xf32>
    %134 = vector.broadcast %133 : vector<1x128xf32> to vector<16x128xf32>
    %135 = arith.mulf %132, %134 : vector<16x128xf32>
    %136 = arith.addf %55, %60 : vector<16x128xf32>
    %137 = arith.addf %65, %70 : vector<16x128xf32>
    %138 = arith.addf %75, %80 : vector<16x128xf32>
    %139 = arith.addf %85, %90 : vector<16x128xf32>
    %140 = arith.addf %95, %100 : vector<16x128xf32>
    %141 = arith.addf %105, %110 : vector<16x128xf32>
    %142 = arith.addf %115, %120 : vector<16x128xf32>
    %143 = arith.addf %125, %130 : vector<16x128xf32>
    %144 = arith.addf %136, %137 : vector<16x128xf32>
    %145 = arith.addf %138, %139 : vector<16x128xf32>
    %146 = arith.addf %140, %141 : vector<16x128xf32>
    %147 = arith.addf %142, %143 : vector<16x128xf32>
    %148 = arith.addf %144, %145 : vector<16x128xf32>
    %149 = arith.addf %146, %147 : vector<16x128xf32>
    %150 = arith.addf %148, %149 : vector<16x128xf32>
    %151 = arith.addf %150, %135 : vector<16x128xf32>
    %152 = arith.mulf %51, %151 : vector<16x128xf32>
    %cst_55 = arith.constant dense<0.000000e+00> : vector<128xf32>
    %153 = vector.multi_reduction <add>, %152, %cst_55 [0] : vector<16x128xf32> to vector<128xf32>
    %154 = vector.shape_cast %153 : vector<128xf32> to vector<1x128xf32>
    %155 = vector.extract_strided_slice %49 {offsets = [1, 0], sizes = [1, 128], strides = [1, 1]} : vector<8x128xf32> to vector<1x128xf32>
    %156 = vector.broadcast %155 : vector<1x128xf32> to vector<16x128xf32>
    %157 = arith.mulf %156, %50 : vector<16x128xf32>
    %c0_56 = arith.constant 0 : index
    %c0_57 = arith.constant 0 : index
    %c0_58 = arith.constant 0 : index
    %158 = vector.load %arg7[%c0_56, %c0_57, %c0_58] : memref<16x16x128xf32, #tpu.memory_space<vmem>>, vector<1x16x128xf32>
    %159 = vector.shape_cast %158 : vector<1x16x128xf32> to vector<16x128xf32>
    %160 = vector.extract_strided_slice %151 {offsets = [0, 0], sizes = [1, 128], strides = [1, 1]} : vector<16x128xf32> to vector<1x128xf32>
    %161 = vector.broadcast %160 : vector<1x128xf32> to vector<16x128xf32>
    %162 = arith.mulf %159, %161 : vector<16x128xf32>
    %c1_59 = arith.constant 1 : index
    %c0_60 = arith.constant 0 : index
    %c0_61 = arith.constant 0 : index
    %163 = vector.load %arg7[%c1_59, %c0_60, %c0_61] : memref<16x16x128xf32, #tpu.memory_space<vmem>>, vector<1x16x128xf32>
    %164 = vector.shape_cast %163 : vector<1x16x128xf32> to vector<16x128xf32>
    %165 = vector.extract_strided_slice %151 {offsets = [1, 0], sizes = [1, 128], strides = [1, 1]} : vector<16x128xf32> to vector<1x128xf32>
    %166 = vector.broadcast %165 : vector<1x128xf32> to vector<16x128xf32>
    %167 = arith.mulf %164, %166 : vector<16x128xf32>
    %c2_62 = arith.constant 2 : index
    %c0_63 = arith.constant 0 : index
    %c0_64 = arith.constant 0 : index
    %168 = vector.load %arg7[%c2_62, %c0_63, %c0_64] : memref<16x16x128xf32, #tpu.memory_space<vmem>>, vector<1x16x128xf32>
    %169 = vector.shape_cast %168 : vector<1x16x128xf32> to vector<16x128xf32>
    %170 = vector.extract_strided_slice %151 {offsets = [2, 0], sizes = [1, 128], strides = [1, 1]} : vector<16x128xf32> to vector<1x128xf32>
    %171 = vector.broadcast %170 : vector<1x128xf32> to vector<16x128xf32>
    %172 = arith.mulf %169, %171 : vector<16x128xf32>
    %c3_65 = arith.constant 3 : index
    %c0_66 = arith.constant 0 : index
    %c0_67 = arith.constant 0 : index
    %173 = vector.load %arg7[%c3_65, %c0_66, %c0_67] : memref<16x16x128xf32, #tpu.memory_space<vmem>>, vector<1x16x128xf32>
    %174 = vector.shape_cast %173 : vector<1x16x128xf32> to vector<16x128xf32>
    %175 = vector.extract_strided_slice %151 {offsets = [3, 0], sizes = [1, 128], strides = [1, 1]} : vector<16x128xf32> to vector<1x128xf32>
    %176 = vector.broadcast %175 : vector<1x128xf32> to vector<16x128xf32>
    %177 = arith.mulf %174, %176 : vector<16x128xf32>
    %c4_68 = arith.constant 4 : index
    %c0_69 = arith.constant 0 : index
    %c0_70 = arith.constant 0 : index
    %178 = vector.load %arg7[%c4_68, %c0_69, %c0_70] : memref<16x16x128xf32, #tpu.memory_space<vmem>>, vector<1x16x128xf32>
    %179 = vector.shape_cast %178 : vector<1x16x128xf32> to vector<16x128xf32>
    %180 = vector.extract_strided_slice %151 {offsets = [4, 0], sizes = [1, 128], strides = [1, 1]} : vector<16x128xf32> to vector<1x128xf32>
    %181 = vector.broadcast %180 : vector<1x128xf32> to vector<16x128xf32>
    %182 = arith.mulf %179, %181 : vector<16x128xf32>
    %c5_71 = arith.constant 5 : index
    %c0_72 = arith.constant 0 : index
    %c0_73 = arith.constant 0 : index
    %183 = vector.load %arg7[%c5_71, %c0_72, %c0_73] : memref<16x16x128xf32, #tpu.memory_space<vmem>>, vector<1x16x128xf32>
    %184 = vector.shape_cast %183 : vector<1x16x128xf32> to vector<16x128xf32>
    %185 = vector.extract_strided_slice %151 {offsets = [5, 0], sizes = [1, 128], strides = [1, 1]} : vector<16x128xf32> to vector<1x128xf32>
    %186 = vector.broadcast %185 : vector<1x128xf32> to vector<16x128xf32>
    %187 = arith.mulf %184, %186 : vector<16x128xf32>
    %c6_74 = arith.constant 6 : index
    %c0_75 = arith.constant 0 : index
    %c0_76 = arith.constant 0 : index
    %188 = vector.load %arg7[%c6_74, %c0_75, %c0_76] : memref<16x16x128xf32, #tpu.memory_space<vmem>>, vector<1x16x128xf32>
    %189 = vector.shape_cast %188 : vector<1x16x128xf32> to vector<16x128xf32>
    %190 = vector.extract_strided_slice %151 {offsets = [6, 0], sizes = [1, 128], strides = [1, 1]} : vector<16x128xf32> to vector<1x128xf32>
    %191 = vector.broadcast %190 : vector<1x128xf32> to vector<16x128xf32>
    %192 = arith.mulf %189, %191 : vector<16x128xf32>
    %c7_77 = arith.constant 7 : index
    %c0_78 = arith.constant 0 : index
    %c0_79 = arith.constant 0 : index
    %193 = vector.load %arg7[%c7_77, %c0_78, %c0_79] : memref<16x16x128xf32, #tpu.memory_space<vmem>>, vector<1x16x128xf32>
    %194 = vector.shape_cast %193 : vector<1x16x128xf32> to vector<16x128xf32>
    %195 = vector.extract_strided_slice %151 {offsets = [7, 0], sizes = [1, 128], strides = [1, 1]} : vector<16x128xf32> to vector<1x128xf32>
    %196 = vector.broadcast %195 : vector<1x128xf32> to vector<16x128xf32>
    %197 = arith.mulf %194, %196 : vector<16x128xf32>
    %c8_80 = arith.constant 8 : index
    %c0_81 = arith.constant 0 : index
    %c0_82 = arith.constant 0 : index
    %198 = vector.load %arg7[%c8_80, %c0_81, %c0_82] : memref<16x16x128xf32, #tpu.memory_space<vmem>>, vector<1x16x128xf32>
    %199 = vector.shape_cast %198 : vector<1x16x128xf32> to vector<16x128xf32>
    %200 = vector.extract_strided_slice %151 {offsets = [8, 0], sizes = [1, 128], strides = [1, 1]} : vector<16x128xf32> to vector<1x128xf32>
    %201 = vector.broadcast %200 : vector<1x128xf32> to vector<16x128xf32>
    %202 = arith.mulf %199, %201 : vector<16x128xf32>
    %c9_83 = arith.constant 9 : index
    %c0_84 = arith.constant 0 : index
    %c0_85 = arith.constant 0 : index
    %203 = vector.load %arg7[%c9_83, %c0_84, %c0_85] : memref<16x16x128xf32, #tpu.memory_space<vmem>>, vector<1x16x128xf32>
    %204 = vector.shape_cast %203 : vector<1x16x128xf32> to vector<16x128xf32>
    %205 = vector.extract_strided_slice %151 {offsets = [9, 0], sizes = [1, 128], strides = [1, 1]} : vector<16x128xf32> to vector<1x128xf32>
    %206 = vector.broadcast %205 : vector<1x128xf32> to vector<16x128xf32>
    %207 = arith.mulf %204, %206 : vector<16x128xf32>
    %c10_86 = arith.constant 10 : index
    %c0_87 = arith.constant 0 : index
    %c0_88 = arith.constant 0 : index
    %208 = vector.load %arg7[%c10_86, %c0_87, %c0_88] : memref<16x16x128xf32, #tpu.memory_space<vmem>>, vector<1x16x128xf32>
    %209 = vector.shape_cast %208 : vector<1x16x128xf32> to vector<16x128xf32>
    %210 = vector.extract_strided_slice %151 {offsets = [10, 0], sizes = [1, 128], strides = [1, 1]} : vector<16x128xf32> to vector<1x128xf32>
    %211 = vector.broadcast %210 : vector<1x128xf32> to vector<16x128xf32>
    %212 = arith.mulf %209, %211 : vector<16x128xf32>
    %c11_89 = arith.constant 11 : index
    %c0_90 = arith.constant 0 : index
    %c0_91 = arith.constant 0 : index
    %213 = vector.load %arg7[%c11_89, %c0_90, %c0_91] : memref<16x16x128xf32, #tpu.memory_space<vmem>>, vector<1x16x128xf32>
    %214 = vector.shape_cast %213 : vector<1x16x128xf32> to vector<16x128xf32>
    %215 = vector.extract_strided_slice %151 {offsets = [11, 0], sizes = [1, 128], strides = [1, 1]} : vector<16x128xf32> to vector<1x128xf32>
    %216 = vector.broadcast %215 : vector<1x128xf32> to vector<16x128xf32>
    %217 = arith.mulf %214, %216 : vector<16x128xf32>
    %c12_92 = arith.constant 12 : index
    %c0_93 = arith.constant 0 : index
    %c0_94 = arith.constant 0 : index
    %218 = vector.load %arg7[%c12_92, %c0_93, %c0_94] : memref<16x16x128xf32, #tpu.memory_space<vmem>>, vector<1x16x128xf32>
    %219 = vector.shape_cast %218 : vector<1x16x128xf32> to vector<16x128xf32>
    %220 = vector.extract_strided_slice %151 {offsets = [12, 0], sizes = [1, 128], strides = [1, 1]} : vector<16x128xf32> to vector<1x128xf32>
    %221 = vector.broadcast %220 : vector<1x128xf32> to vector<16x128xf32>
    %222 = arith.mulf %219, %221 : vector<16x128xf32>
    %c13_95 = arith.constant 13 : index
    %c0_96 = arith.constant 0 : index
    %c0_97 = arith.constant 0 : index
    %223 = vector.load %arg7[%c13_95, %c0_96, %c0_97] : memref<16x16x128xf32, #tpu.memory_space<vmem>>, vector<1x16x128xf32>
    %224 = vector.shape_cast %223 : vector<1x16x128xf32> to vector<16x128xf32>
    %225 = vector.extract_strided_slice %151 {offsets = [13, 0], sizes = [1, 128], strides = [1, 1]} : vector<16x128xf32> to vector<1x128xf32>
    %226 = vector.broadcast %225 : vector<1x128xf32> to vector<16x128xf32>
    %227 = arith.mulf %224, %226 : vector<16x128xf32>
    %c14_98 = arith.constant 14 : index
    %c0_99 = arith.constant 0 : index
    %c0_100 = arith.constant 0 : index
    %228 = vector.load %arg7[%c14_98, %c0_99, %c0_100] : memref<16x16x128xf32, #tpu.memory_space<vmem>>, vector<1x16x128xf32>
    %229 = vector.shape_cast %228 : vector<1x16x128xf32> to vector<16x128xf32>
    %230 = vector.extract_strided_slice %151 {offsets = [14, 0], sizes = [1, 128], strides = [1, 1]} : vector<16x128xf32> to vector<1x128xf32>
    %231 = vector.broadcast %230 : vector<1x128xf32> to vector<16x128xf32>
    %232 = arith.mulf %229, %231 : vector<16x128xf32>
    %c15_101 = arith.constant 15 : index
    %c0_102 = arith.constant 0 : index
    %c0_103 = arith.constant 0 : index
    %233 = vector.load %arg7[%c15_101, %c0_102, %c0_103] : memref<16x16x128xf32, #tpu.memory_space<vmem>>, vector<1x16x128xf32>
    %234 = vector.shape_cast %233 : vector<1x16x128xf32> to vector<16x128xf32>
    %235 = vector.extract_strided_slice %151 {offsets = [15, 0], sizes = [1, 128], strides = [1, 1]} : vector<16x128xf32> to vector<1x128xf32>
    %236 = vector.broadcast %235 : vector<1x128xf32> to vector<16x128xf32>
    %237 = arith.mulf %234, %236 : vector<16x128xf32>
    %238 = arith.addf %157, %162 : vector<16x128xf32>
    %239 = arith.addf %167, %172 : vector<16x128xf32>
    %240 = arith.addf %177, %182 : vector<16x128xf32>
    %241 = arith.addf %187, %192 : vector<16x128xf32>
    %242 = arith.addf %197, %202 : vector<16x128xf32>
    %243 = arith.addf %207, %212 : vector<16x128xf32>
    %244 = arith.addf %217, %222 : vector<16x128xf32>
    %245 = arith.addf %227, %232 : vector<16x128xf32>
    %246 = arith.addf %238, %239 : vector<16x128xf32>
    %247 = arith.addf %240, %241 : vector<16x128xf32>
    %248 = arith.addf %242, %243 : vector<16x128xf32>
    %249 = arith.addf %244, %245 : vector<16x128xf32>
    %250 = arith.addf %246, %247 : vector<16x128xf32>
    %251 = arith.addf %248, %249 : vector<16x128xf32>
    %252 = arith.addf %250, %251 : vector<16x128xf32>
    %253 = arith.addf %252, %237 : vector<16x128xf32>
    %254 = arith.mulf %51, %253 : vector<16x128xf32>
    %cst_104 = arith.constant dense<0.000000e+00> : vector<128xf32>
    %255 = vector.multi_reduction <add>, %254, %cst_104 [0] : vector<16x128xf32> to vector<128xf32>
    %256 = vector.shape_cast %255 : vector<128xf32> to vector<1x128xf32>
    %257 = vector.extract_strided_slice %49 {offsets = [2, 0], sizes = [1, 128], strides = [1, 1]} : vector<8x128xf32> to vector<1x128xf32>
    %258 = vector.broadcast %257 : vector<1x128xf32> to vector<16x128xf32>
    %259 = arith.mulf %258, %50 : vector<16x128xf32>
    %c0_105 = arith.constant 0 : index
    %c0_106 = arith.constant 0 : index
    %c0_107 = arith.constant 0 : index
    %260 = vector.load %arg7[%c0_105, %c0_106, %c0_107] : memref<16x16x128xf32, #tpu.memory_space<vmem>>, vector<1x16x128xf32>
    %261 = vector.shape_cast %260 : vector<1x16x128xf32> to vector<16x128xf32>
    %262 = vector.extract_strided_slice %253 {offsets = [0, 0], sizes = [1, 128], strides = [1, 1]} : vector<16x128xf32> to vector<1x128xf32>
    %263 = vector.broadcast %262 : vector<1x128xf32> to vector<16x128xf32>
    %264 = arith.mulf %261, %263 : vector<16x128xf32>
    %c1_108 = arith.constant 1 : index
    %c0_109 = arith.constant 0 : index
    %c0_110 = arith.constant 0 : index
    %265 = vector.load %arg7[%c1_108, %c0_109, %c0_110] : memref<16x16x128xf32, #tpu.memory_space<vmem>>, vector<1x16x128xf32>
    %266 = vector.shape_cast %265 : vector<1x16x128xf32> to vector<16x128xf32>
    %267 = vector.extract_strided_slice %253 {offsets = [1, 0], sizes = [1, 128], strides = [1, 1]} : vector<16x128xf32> to vector<1x128xf32>
    %268 = vector.broadcast %267 : vector<1x128xf32> to vector<16x128xf32>
    %269 = arith.mulf %266, %268 : vector<16x128xf32>
    %c2_111 = arith.constant 2 : index
    %c0_112 = arith.constant 0 : index
    %c0_113 = arith.constant 0 : index
    %270 = vector.load %arg7[%c2_111, %c0_112, %c0_113] : memref<16x16x128xf32, #tpu.memory_space<vmem>>, vector<1x16x128xf32>
    %271 = vector.shape_cast %270 : vector<1x16x128xf32> to vector<16x128xf32>
    %272 = vector.extract_strided_slice %253 {offsets = [2, 0], sizes = [1, 128], strides = [1, 1]} : vector<16x128xf32> to vector<1x128xf32>
    %273 = vector.broadcast %272 : vector<1x128xf32> to vector<16x128xf32>
    %274 = arith.mulf %271, %273 : vector<16x128xf32>
    %c3_114 = arith.constant 3 : index
    %c0_115 = arith.constant 0 : index
    %c0_116 = arith.constant 0 : index
    %275 = vector.load %arg7[%c3_114, %c0_115, %c0_116] : memref<16x16x128xf32, #tpu.memory_space<vmem>>, vector<1x16x128xf32>
    %276 = vector.shape_cast %275 : vector<1x16x128xf32> to vector<16x128xf32>
    %277 = vector.extract_strided_slice %253 {offsets = [3, 0], sizes = [1, 128], strides = [1, 1]} : vector<16x128xf32> to vector<1x128xf32>
    %278 = vector.broadcast %277 : vector<1x128xf32> to vector<16x128xf32>
    %279 = arith.mulf %276, %278 : vector<16x128xf32>
    %c4_117 = arith.constant 4 : index
    %c0_118 = arith.constant 0 : index
    %c0_119 = arith.constant 0 : index
    %280 = vector.load %arg7[%c4_117, %c0_118, %c0_119] : memref<16x16x128xf32, #tpu.memory_space<vmem>>, vector<1x16x128xf32>
    %281 = vector.shape_cast %280 : vector<1x16x128xf32> to vector<16x128xf32>
    %282 = vector.extract_strided_slice %253 {offsets = [4, 0], sizes = [1, 128], strides = [1, 1]} : vector<16x128xf32> to vector<1x128xf32>
    %283 = vector.broadcast %282 : vector<1x128xf32> to vector<16x128xf32>
    %284 = arith.mulf %281, %283 : vector<16x128xf32>
    %c5_120 = arith.constant 5 : index
    %c0_121 = arith.constant 0 : index
    %c0_122 = arith.constant 0 : index
    %285 = vector.load %arg7[%c5_120, %c0_121, %c0_122] : memref<16x16x128xf32, #tpu.memory_space<vmem>>, vector<1x16x128xf32>
    %286 = vector.shape_cast %285 : vector<1x16x128xf32> to vector<16x128xf32>
    %287 = vector.extract_strided_slice %253 {offsets = [5, 0], sizes = [1, 128], strides = [1, 1]} : vector<16x128xf32> to vector<1x128xf32>
    %288 = vector.broadcast %287 : vector<1x128xf32> to vector<16x128xf32>
    %289 = arith.mulf %286, %288 : vector<16x128xf32>
    %c6_123 = arith.constant 6 : index
    %c0_124 = arith.constant 0 : index
    %c0_125 = arith.constant 0 : index
    %290 = vector.load %arg7[%c6_123, %c0_124, %c0_125] : memref<16x16x128xf32, #tpu.memory_space<vmem>>, vector<1x16x128xf32>
    %291 = vector.shape_cast %290 : vector<1x16x128xf32> to vector<16x128xf32>
    %292 = vector.extract_strided_slice %253 {offsets = [6, 0], sizes = [1, 128], strides = [1, 1]} : vector<16x128xf32> to vector<1x128xf32>
    %293 = vector.broadcast %292 : vector<1x128xf32> to vector<16x128xf32>
    %294 = arith.mulf %291, %293 : vector<16x128xf32>
    %c7_126 = arith.constant 7 : index
    %c0_127 = arith.constant 0 : index
    %c0_128 = arith.constant 0 : index
    %295 = vector.load %arg7[%c7_126, %c0_127, %c0_128] : memref<16x16x128xf32, #tpu.memory_space<vmem>>, vector<1x16x128xf32>
    %296 = vector.shape_cast %295 : vector<1x16x128xf32> to vector<16x128xf32>
    %297 = vector.extract_strided_slice %253 {offsets = [7, 0], sizes = [1, 128], strides = [1, 1]} : vector<16x128xf32> to vector<1x128xf32>
    %298 = vector.broadcast %297 : vector<1x128xf32> to vector<16x128xf32>
    %299 = arith.mulf %296, %298 : vector<16x128xf32>
    %c8_129 = arith.constant 8 : index
    %c0_130 = arith.constant 0 : index
    %c0_131 = arith.constant 0 : index
    %300 = vector.load %arg7[%c8_129, %c0_130, %c0_131] : memref<16x16x128xf32, #tpu.memory_space<vmem>>, vector<1x16x128xf32>
    %301 = vector.shape_cast %300 : vector<1x16x128xf32> to vector<16x128xf32>
    %302 = vector.extract_strided_slice %253 {offsets = [8, 0], sizes = [1, 128], strides = [1, 1]} : vector<16x128xf32> to vector<1x128xf32>
    %303 = vector.broadcast %302 : vector<1x128xf32> to vector<16x128xf32>
    %304 = arith.mulf %301, %303 : vector<16x128xf32>
    %c9_132 = arith.constant 9 : index
    %c0_133 = arith.constant 0 : index
    %c0_134 = arith.constant 0 : index
    %305 = vector.load %arg7[%c9_132, %c0_133, %c0_134] : memref<16x16x128xf32, #tpu.memory_space<vmem>>, vector<1x16x128xf32>
    %306 = vector.shape_cast %305 : vector<1x16x128xf32> to vector<16x128xf32>
    %307 = vector.extract_strided_slice %253 {offsets = [9, 0], sizes = [1, 128], strides = [1, 1]} : vector<16x128xf32> to vector<1x128xf32>
    %308 = vector.broadcast %307 : vector<1x128xf32> to vector<16x128xf32>
    %309 = arith.mulf %306, %308 : vector<16x128xf32>
    %c10_135 = arith.constant 10 : index
    %c0_136 = arith.constant 0 : index
    %c0_137 = arith.constant 0 : index
    %310 = vector.load %arg7[%c10_135, %c0_136, %c0_137] : memref<16x16x128xf32, #tpu.memory_space<vmem>>, vector<1x16x128xf32>
    %311 = vector.shape_cast %310 : vector<1x16x128xf32> to vector<16x128xf32>
    %312 = vector.extract_strided_slice %253 {offsets = [10, 0], sizes = [1, 128], strides = [1, 1]} : vector<16x128xf32> to vector<1x128xf32>
    %313 = vector.broadcast %312 : vector<1x128xf32> to vector<16x128xf32>
    %314 = arith.mulf %311, %313 : vector<16x128xf32>
    %c11_138 = arith.constant 11 : index
    %c0_139 = arith.constant 0 : index
    %c0_140 = arith.constant 0 : index
    %315 = vector.load %arg7[%c11_138, %c0_139, %c0_140] : memref<16x16x128xf32, #tpu.memory_space<vmem>>, vector<1x16x128xf32>
    %316 = vector.shape_cast %315 : vector<1x16x128xf32> to vector<16x128xf32>
    %317 = vector.extract_strided_slice %253 {offsets = [11, 0], sizes = [1, 128], strides = [1, 1]} : vector<16x128xf32> to vector<1x128xf32>
    %318 = vector.broadcast %317 : vector<1x128xf32> to vector<16x128xf32>
    %319 = arith.mulf %316, %318 : vector<16x128xf32>
    %c12_141 = arith.constant 12 : index
    %c0_142 = arith.constant 0 : index
    %c0_143 = arith.constant 0 : index
    %320 = vector.load %arg7[%c12_141, %c0_142, %c0_143] : memref<16x16x128xf32, #tpu.memory_space<vmem>>, vector<1x16x128xf32>
    %321 = vector.shape_cast %320 : vector<1x16x128xf32> to vector<16x128xf32>
    %322 = vector.extract_strided_slice %253 {offsets = [12, 0], sizes = [1, 128], strides = [1, 1]} : vector<16x128xf32> to vector<1x128xf32>
    %323 = vector.broadcast %322 : vector<1x128xf32> to vector<16x128xf32>
    %324 = arith.mulf %321, %323 : vector<16x128xf32>
    %c13_144 = arith.constant 13 : index
    %c0_145 = arith.constant 0 : index
    %c0_146 = arith.constant 0 : index
    %325 = vector.load %arg7[%c13_144, %c0_145, %c0_146] : memref<16x16x128xf32, #tpu.memory_space<vmem>>, vector<1x16x128xf32>
    %326 = vector.shape_cast %325 : vector<1x16x128xf32> to vector<16x128xf32>
    %327 = vector.extract_strided_slice %253 {offsets = [13, 0], sizes = [1, 128], strides = [1, 1]} : vector<16x128xf32> to vector<1x128xf32>
    %328 = vector.broadcast %327 : vector<1x128xf32> to vector<16x128xf32>
    %329 = arith.mulf %326, %328 : vector<16x128xf32>
    %c14_147 = arith.constant 14 : index
    %c0_148 = arith.constant 0 : index
    %c0_149 = arith.constant 0 : index
    %330 = vector.load %arg7[%c14_147, %c0_148, %c0_149] : memref<16x16x128xf32, #tpu.memory_space<vmem>>, vector<1x16x128xf32>
    %331 = vector.shape_cast %330 : vector<1x16x128xf32> to vector<16x128xf32>
    %332 = vector.extract_strided_slice %253 {offsets = [14, 0], sizes = [1, 128], strides = [1, 1]} : vector<16x128xf32> to vector<1x128xf32>
    %333 = vector.broadcast %332 : vector<1x128xf32> to vector<16x128xf32>
    %334 = arith.mulf %331, %333 : vector<16x128xf32>
    %c15_150 = arith.constant 15 : index
    %c0_151 = arith.constant 0 : index
    %c0_152 = arith.constant 0 : index
    %335 = vector.load %arg7[%c15_150, %c0_151, %c0_152] : memref<16x16x128xf32, #tpu.memory_space<vmem>>, vector<1x16x128xf32>
    %336 = vector.shape_cast %335 : vector<1x16x128xf32> to vector<16x128xf32>
    %337 = vector.extract_strided_slice %253 {offsets = [15, 0], sizes = [1, 128], strides = [1, 1]} : vector<16x128xf32> to vector<1x128xf32>
    %338 = vector.broadcast %337 : vector<1x128xf32> to vector<16x128xf32>
    %339 = arith.mulf %336, %338 : vector<16x128xf32>
    %340 = arith.addf %259, %264 : vector<16x128xf32>
    %341 = arith.addf %269, %274 : vector<16x128xf32>
    %342 = arith.addf %279, %284 : vector<16x128xf32>
    %343 = arith.addf %289, %294 : vector<16x128xf32>
    %344 = arith.addf %299, %304 : vector<16x128xf32>
    %345 = arith.addf %309, %314 : vector<16x128xf32>
    %346 = arith.addf %319, %324 : vector<16x128xf32>
    %347 = arith.addf %329, %334 : vector<16x128xf32>
    %348 = arith.addf %340, %341 : vector<16x128xf32>
    %349 = arith.addf %342, %343 : vector<16x128xf32>
    %350 = arith.addf %344, %345 : vector<16x128xf32>
    %351 = arith.addf %346, %347 : vector<16x128xf32>
    %352 = arith.addf %348, %349 : vector<16x128xf32>
    %353 = arith.addf %350, %351 : vector<16x128xf32>
    %354 = arith.addf %352, %353 : vector<16x128xf32>
    %355 = arith.addf %354, %339 : vector<16x128xf32>
    %356 = arith.mulf %51, %355 : vector<16x128xf32>
    %cst_153 = arith.constant dense<0.000000e+00> : vector<128xf32>
    %357 = vector.multi_reduction <add>, %356, %cst_153 [0] : vector<16x128xf32> to vector<128xf32>
    %358 = vector.shape_cast %357 : vector<128xf32> to vector<1x128xf32>
    %359 = vector.extract_strided_slice %49 {offsets = [3, 0], sizes = [1, 128], strides = [1, 1]} : vector<8x128xf32> to vector<1x128xf32>
    %360 = vector.broadcast %359 : vector<1x128xf32> to vector<16x128xf32>
    %361 = arith.mulf %360, %50 : vector<16x128xf32>
    %c0_154 = arith.constant 0 : index
    %c0_155 = arith.constant 0 : index
    %c0_156 = arith.constant 0 : index
    %362 = vector.load %arg7[%c0_154, %c0_155, %c0_156] : memref<16x16x128xf32, #tpu.memory_space<vmem>>, vector<1x16x128xf32>
    %363 = vector.shape_cast %362 : vector<1x16x128xf32> to vector<16x128xf32>
    %364 = vector.extract_strided_slice %355 {offsets = [0, 0], sizes = [1, 128], strides = [1, 1]} : vector<16x128xf32> to vector<1x128xf32>
    %365 = vector.broadcast %364 : vector<1x128xf32> to vector<16x128xf32>
    %366 = arith.mulf %363, %365 : vector<16x128xf32>
    %c1_157 = arith.constant 1 : index
    %c0_158 = arith.constant 0 : index
    %c0_159 = arith.constant 0 : index
    %367 = vector.load %arg7[%c1_157, %c0_158, %c0_159] : memref<16x16x128xf32, #tpu.memory_space<vmem>>, vector<1x16x128xf32>
    %368 = vector.shape_cast %367 : vector<1x16x128xf32> to vector<16x128xf32>
    %369 = vector.extract_strided_slice %355 {offsets = [1, 0], sizes = [1, 128], strides = [1, 1]} : vector<16x128xf32> to vector<1x128xf32>
    %370 = vector.broadcast %369 : vector<1x128xf32> to vector<16x128xf32>
    %371 = arith.mulf %368, %370 : vector<16x128xf32>
    %c2_160 = arith.constant 2 : index
    %c0_161 = arith.constant 0 : index
    %c0_162 = arith.constant 0 : index
    %372 = vector.load %arg7[%c2_160, %c0_161, %c0_162] : memref<16x16x128xf32, #tpu.memory_space<vmem>>, vector<1x16x128xf32>
    %373 = vector.shape_cast %372 : vector<1x16x128xf32> to vector<16x128xf32>
    %374 = vector.extract_strided_slice %355 {offsets = [2, 0], sizes = [1, 128], strides = [1, 1]} : vector<16x128xf32> to vector<1x128xf32>
    %375 = vector.broadcast %374 : vector<1x128xf32> to vector<16x128xf32>
    %376 = arith.mulf %373, %375 : vector<16x128xf32>
    %c3_163 = arith.constant 3 : index
    %c0_164 = arith.constant 0 : index
    %c0_165 = arith.constant 0 : index
    %377 = vector.load %arg7[%c3_163, %c0_164, %c0_165] : memref<16x16x128xf32, #tpu.memory_space<vmem>>, vector<1x16x128xf32>
    %378 = vector.shape_cast %377 : vector<1x16x128xf32> to vector<16x128xf32>
    %379 = vector.extract_strided_slice %355 {offsets = [3, 0], sizes = [1, 128], strides = [1, 1]} : vector<16x128xf32> to vector<1x128xf32>
    %380 = vector.broadcast %379 : vector<1x128xf32> to vector<16x128xf32>
    %381 = arith.mulf %378, %380 : vector<16x128xf32>
    %c4_166 = arith.constant 4 : index
    %c0_167 = arith.constant 0 : index
    %c0_168 = arith.constant 0 : index
    %382 = vector.load %arg7[%c4_166, %c0_167, %c0_168] : memref<16x16x128xf32, #tpu.memory_space<vmem>>, vector<1x16x128xf32>
    %383 = vector.shape_cast %382 : vector<1x16x128xf32> to vector<16x128xf32>
    %384 = vector.extract_strided_slice %355 {offsets = [4, 0], sizes = [1, 128], strides = [1, 1]} : vector<16x128xf32> to vector<1x128xf32>
    %385 = vector.broadcast %384 : vector<1x128xf32> to vector<16x128xf32>
    %386 = arith.mulf %383, %385 : vector<16x128xf32>
    %c5_169 = arith.constant 5 : index
    %c0_170 = arith.constant 0 : index
    %c0_171 = arith.constant 0 : index
    %387 = vector.load %arg7[%c5_169, %c0_170, %c0_171] : memref<16x16x128xf32, #tpu.memory_space<vmem>>, vector<1x16x128xf32>
    %388 = vector.shape_cast %387 : vector<1x16x128xf32> to vector<16x128xf32>
    %389 = vector.extract_strided_slice %355 {offsets = [5, 0], sizes = [1, 128], strides = [1, 1]} : vector<16x128xf32> to vector<1x128xf32>
    %390 = vector.broadcast %389 : vector<1x128xf32> to vector<16x128xf32>
    %391 = arith.mulf %388, %390 : vector<16x128xf32>
    %c6_172 = arith.constant 6 : index
    %c0_173 = arith.constant 0 : index
    %c0_174 = arith.constant 0 : index
    %392 = vector.load %arg7[%c6_172, %c0_173, %c0_174] : memref<16x16x128xf32, #tpu.memory_space<vmem>>, vector<1x16x128xf32>
    %393 = vector.shape_cast %392 : vector<1x16x128xf32> to vector<16x128xf32>
    %394 = vector.extract_strided_slice %355 {offsets = [6, 0], sizes = [1, 128], strides = [1, 1]} : vector<16x128xf32> to vector<1x128xf32>
    %395 = vector.broadcast %394 : vector<1x128xf32> to vector<16x128xf32>
    %396 = arith.mulf %393, %395 : vector<16x128xf32>
    %c7_175 = arith.constant 7 : index
    %c0_176 = arith.constant 0 : index
    %c0_177 = arith.constant 0 : index
    %397 = vector.load %arg7[%c7_175, %c0_176, %c0_177] : memref<16x16x128xf32, #tpu.memory_space<vmem>>, vector<1x16x128xf32>
    %398 = vector.shape_cast %397 : vector<1x16x128xf32> to vector<16x128xf32>
    %399 = vector.extract_strided_slice %355 {offsets = [7, 0], sizes = [1, 128], strides = [1, 1]} : vector<16x128xf32> to vector<1x128xf32>
    %400 = vector.broadcast %399 : vector<1x128xf32> to vector<16x128xf32>
    %401 = arith.mulf %398, %400 : vector<16x128xf32>
    %c8_178 = arith.constant 8 : index
    %c0_179 = arith.constant 0 : index
    %c0_180 = arith.constant 0 : index
    %402 = vector.load %arg7[%c8_178, %c0_179, %c0_180] : memref<16x16x128xf32, #tpu.memory_space<vmem>>, vector<1x16x128xf32>
    %403 = vector.shape_cast %402 : vector<1x16x128xf32> to vector<16x128xf32>
    %404 = vector.extract_strided_slice %355 {offsets = [8, 0], sizes = [1, 128], strides = [1, 1]} : vector<16x128xf32> to vector<1x128xf32>
    %405 = vector.broadcast %404 : vector<1x128xf32> to vector<16x128xf32>
    %406 = arith.mulf %403, %405 : vector<16x128xf32>
    %c9_181 = arith.constant 9 : index
    %c0_182 = arith.constant 0 : index
    %c0_183 = arith.constant 0 : index
    %407 = vector.load %arg7[%c9_181, %c0_182, %c0_183] : memref<16x16x128xf32, #tpu.memory_space<vmem>>, vector<1x16x128xf32>
    %408 = vector.shape_cast %407 : vector<1x16x128xf32> to vector<16x128xf32>
    %409 = vector.extract_strided_slice %355 {offsets = [9, 0], sizes = [1, 128], strides = [1, 1]} : vector<16x128xf32> to vector<1x128xf32>
    %410 = vector.broadcast %409 : vector<1x128xf32> to vector<16x128xf32>
    %411 = arith.mulf %408, %410 : vector<16x128xf32>
    %c10_184 = arith.constant 10 : index
    %c0_185 = arith.constant 0 : index
    %c0_186 = arith.constant 0 : index
    %412 = vector.load %arg7[%c10_184, %c0_185, %c0_186] : memref<16x16x128xf32, #tpu.memory_space<vmem>>, vector<1x16x128xf32>
    %413 = vector.shape_cast %412 : vector<1x16x128xf32> to vector<16x128xf32>
    %414 = vector.extract_strided_slice %355 {offsets = [10, 0], sizes = [1, 128], strides = [1, 1]} : vector<16x128xf32> to vector<1x128xf32>
    %415 = vector.broadcast %414 : vector<1x128xf32> to vector<16x128xf32>
    %416 = arith.mulf %413, %415 : vector<16x128xf32>
    %c11_187 = arith.constant 11 : index
    %c0_188 = arith.constant 0 : index
    %c0_189 = arith.constant 0 : index
    %417 = vector.load %arg7[%c11_187, %c0_188, %c0_189] : memref<16x16x128xf32, #tpu.memory_space<vmem>>, vector<1x16x128xf32>
    %418 = vector.shape_cast %417 : vector<1x16x128xf32> to vector<16x128xf32>
    %419 = vector.extract_strided_slice %355 {offsets = [11, 0], sizes = [1, 128], strides = [1, 1]} : vector<16x128xf32> to vector<1x128xf32>
    %420 = vector.broadcast %419 : vector<1x128xf32> to vector<16x128xf32>
    %421 = arith.mulf %418, %420 : vector<16x128xf32>
    %c12_190 = arith.constant 12 : index
    %c0_191 = arith.constant 0 : index
    %c0_192 = arith.constant 0 : index
    %422 = vector.load %arg7[%c12_190, %c0_191, %c0_192] : memref<16x16x128xf32, #tpu.memory_space<vmem>>, vector<1x16x128xf32>
    %423 = vector.shape_cast %422 : vector<1x16x128xf32> to vector<16x128xf32>
    %424 = vector.extract_strided_slice %355 {offsets = [12, 0], sizes = [1, 128], strides = [1, 1]} : vector<16x128xf32> to vector<1x128xf32>
    %425 = vector.broadcast %424 : vector<1x128xf32> to vector<16x128xf32>
    %426 = arith.mulf %423, %425 : vector<16x128xf32>
    %c13_193 = arith.constant 13 : index
    %c0_194 = arith.constant 0 : index
    %c0_195 = arith.constant 0 : index
    %427 = vector.load %arg7[%c13_193, %c0_194, %c0_195] : memref<16x16x128xf32, #tpu.memory_space<vmem>>, vector<1x16x128xf32>
    %428 = vector.shape_cast %427 : vector<1x16x128xf32> to vector<16x128xf32>
    %429 = vector.extract_strided_slice %355 {offsets = [13, 0], sizes = [1, 128], strides = [1, 1]} : vector<16x128xf32> to vector<1x128xf32>
    %430 = vector.broadcast %429 : vector<1x128xf32> to vector<16x128xf32>
    %431 = arith.mulf %428, %430 : vector<16x128xf32>
    %c14_196 = arith.constant 14 : index
    %c0_197 = arith.constant 0 : index
    %c0_198 = arith.constant 0 : index
    %432 = vector.load %arg7[%c14_196, %c0_197, %c0_198] : memref<16x16x128xf32, #tpu.memory_space<vmem>>, vector<1x16x128xf32>
    %433 = vector.shape_cast %432 : vector<1x16x128xf32> to vector<16x128xf32>
    %434 = vector.extract_strided_slice %355 {offsets = [14, 0], sizes = [1, 128], strides = [1, 1]} : vector<16x128xf32> to vector<1x128xf32>
    %435 = vector.broadcast %434 : vector<1x128xf32> to vector<16x128xf32>
    %436 = arith.mulf %433, %435 : vector<16x128xf32>
    %c15_199 = arith.constant 15 : index
    %c0_200 = arith.constant 0 : index
    %c0_201 = arith.constant 0 : index
    %437 = vector.load %arg7[%c15_199, %c0_200, %c0_201] : memref<16x16x128xf32, #tpu.memory_space<vmem>>, vector<1x16x128xf32>
    %438 = vector.shape_cast %437 : vector<1x16x128xf32> to vector<16x128xf32>
    %439 = vector.extract_strided_slice %355 {offsets = [15, 0], sizes = [1, 128], strides = [1, 1]} : vector<16x128xf32> to vector<1x128xf32>
    %440 = vector.broadcast %439 : vector<1x128xf32> to vector<16x128xf32>
    %441 = arith.mulf %438, %440 : vector<16x128xf32>
    %442 = arith.addf %361, %366 : vector<16x128xf32>
    %443 = arith.addf %371, %376 : vector<16x128xf32>
    %444 = arith.addf %381, %386 : vector<16x128xf32>
    %445 = arith.addf %391, %396 : vector<16x128xf32>
    %446 = arith.addf %401, %406 : vector<16x128xf32>
    %447 = arith.addf %411, %416 : vector<16x128xf32>
    %448 = arith.addf %421, %426 : vector<16x128xf32>
    %449 = arith.addf %431, %436 : vector<16x128xf32>
    %450 = arith.addf %442, %443 : vector<16x128xf32>
    %451 = arith.addf %444, %445 : vector<16x128xf32>
    %452 = arith.addf %446, %447 : vector<16x128xf32>
    %453 = arith.addf %448, %449 : vector<16x128xf32>
    %454 = arith.addf %450, %451 : vector<16x128xf32>
    %455 = arith.addf %452, %453 : vector<16x128xf32>
    %456 = arith.addf %454, %455 : vector<16x128xf32>
    %457 = arith.addf %456, %441 : vector<16x128xf32>
    %458 = arith.mulf %51, %457 : vector<16x128xf32>
    %cst_202 = arith.constant dense<0.000000e+00> : vector<128xf32>
    %459 = vector.multi_reduction <add>, %458, %cst_202 [0] : vector<16x128xf32> to vector<128xf32>
    %460 = vector.shape_cast %459 : vector<128xf32> to vector<1x128xf32>
    %461 = vector.extract_strided_slice %49 {offsets = [4, 0], sizes = [1, 128], strides = [1, 1]} : vector<8x128xf32> to vector<1x128xf32>
    %462 = vector.broadcast %461 : vector<1x128xf32> to vector<16x128xf32>
    %463 = arith.mulf %462, %50 : vector<16x128xf32>
    %c0_203 = arith.constant 0 : index
    %c0_204 = arith.constant 0 : index
    %c0_205 = arith.constant 0 : index
    %464 = vector.load %arg7[%c0_203, %c0_204, %c0_205] : memref<16x16x128xf32, #tpu.memory_space<vmem>>, vector<1x16x128xf32>
    %465 = vector.shape_cast %464 : vector<1x16x128xf32> to vector<16x128xf32>
    %466 = vector.extract_strided_slice %457 {offsets = [0, 0], sizes = [1, 128], strides = [1, 1]} : vector<16x128xf32> to vector<1x128xf32>
    %467 = vector.broadcast %466 : vector<1x128xf32> to vector<16x128xf32>
    %468 = arith.mulf %465, %467 : vector<16x128xf32>
    %c1_206 = arith.constant 1 : index
    %c0_207 = arith.constant 0 : index
    %c0_208 = arith.constant 0 : index
    %469 = vector.load %arg7[%c1_206, %c0_207, %c0_208] : memref<16x16x128xf32, #tpu.memory_space<vmem>>, vector<1x16x128xf32>
    %470 = vector.shape_cast %469 : vector<1x16x128xf32> to vector<16x128xf32>
    %471 = vector.extract_strided_slice %457 {offsets = [1, 0], sizes = [1, 128], strides = [1, 1]} : vector<16x128xf32> to vector<1x128xf32>
    %472 = vector.broadcast %471 : vector<1x128xf32> to vector<16x128xf32>
    %473 = arith.mulf %470, %472 : vector<16x128xf32>
    %c2_209 = arith.constant 2 : index
    %c0_210 = arith.constant 0 : index
    %c0_211 = arith.constant 0 : index
    %474 = vector.load %arg7[%c2_209, %c0_210, %c0_211] : memref<16x16x128xf32, #tpu.memory_space<vmem>>, vector<1x16x128xf32>
    %475 = vector.shape_cast %474 : vector<1x16x128xf32> to vector<16x128xf32>
    %476 = vector.extract_strided_slice %457 {offsets = [2, 0], sizes = [1, 128], strides = [1, 1]} : vector<16x128xf32> to vector<1x128xf32>
    %477 = vector.broadcast %476 : vector<1x128xf32> to vector<16x128xf32>
    %478 = arith.mulf %475, %477 : vector<16x128xf32>
    %c3_212 = arith.constant 3 : index
    %c0_213 = arith.constant 0 : index
    %c0_214 = arith.constant 0 : index
    %479 = vector.load %arg7[%c3_212, %c0_213, %c0_214] : memref<16x16x128xf32, #tpu.memory_space<vmem>>, vector<1x16x128xf32>
    %480 = vector.shape_cast %479 : vector<1x16x128xf32> to vector<16x128xf32>
    %481 = vector.extract_strided_slice %457 {offsets = [3, 0], sizes = [1, 128], strides = [1, 1]} : vector<16x128xf32> to vector<1x128xf32>
    %482 = vector.broadcast %481 : vector<1x128xf32> to vector<16x128xf32>
    %483 = arith.mulf %480, %482 : vector<16x128xf32>
    %c4_215 = arith.constant 4 : index
    %c0_216 = arith.constant 0 : index
    %c0_217 = arith.constant 0 : index
    %484 = vector.load %arg7[%c4_215, %c0_216, %c0_217] : memref<16x16x128xf32, #tpu.memory_space<vmem>>, vector<1x16x128xf32>
    %485 = vector.shape_cast %484 : vector<1x16x128xf32> to vector<16x128xf32>
    %486 = vector.extract_strided_slice %457 {offsets = [4, 0], sizes = [1, 128], strides = [1, 1]} : vector<16x128xf32> to vector<1x128xf32>
    %487 = vector.broadcast %486 : vector<1x128xf32> to vector<16x128xf32>
    %488 = arith.mulf %485, %487 : vector<16x128xf32>
    %c5_218 = arith.constant 5 : index
    %c0_219 = arith.constant 0 : index
    %c0_220 = arith.constant 0 : index
    %489 = vector.load %arg7[%c5_218, %c0_219, %c0_220] : memref<16x16x128xf32, #tpu.memory_space<vmem>>, vector<1x16x128xf32>
    %490 = vector.shape_cast %489 : vector<1x16x128xf32> to vector<16x128xf32>
    %491 = vector.extract_strided_slice %457 {offsets = [5, 0], sizes = [1, 128], strides = [1, 1]} : vector<16x128xf32> to vector<1x128xf32>
    %492 = vector.broadcast %491 : vector<1x128xf32> to vector<16x128xf32>
    %493 = arith.mulf %490, %492 : vector<16x128xf32>
    %c6_221 = arith.constant 6 : index
    %c0_222 = arith.constant 0 : index
    %c0_223 = arith.constant 0 : index
    %494 = vector.load %arg7[%c6_221, %c0_222, %c0_223] : memref<16x16x128xf32, #tpu.memory_space<vmem>>, vector<1x16x128xf32>
    %495 = vector.shape_cast %494 : vector<1x16x128xf32> to vector<16x128xf32>
    %496 = vector.extract_strided_slice %457 {offsets = [6, 0], sizes = [1, 128], strides = [1, 1]} : vector<16x128xf32> to vector<1x128xf32>
    %497 = vector.broadcast %496 : vector<1x128xf32> to vector<16x128xf32>
    %498 = arith.mulf %495, %497 : vector<16x128xf32>
    %c7_224 = arith.constant 7 : index
    %c0_225 = arith.constant 0 : index
    %c0_226 = arith.constant 0 : index
    %499 = vector.load %arg7[%c7_224, %c0_225, %c0_226] : memref<16x16x128xf32, #tpu.memory_space<vmem>>, vector<1x16x128xf32>
    %500 = vector.shape_cast %499 : vector<1x16x128xf32> to vector<16x128xf32>
    %501 = vector.extract_strided_slice %457 {offsets = [7, 0], sizes = [1, 128], strides = [1, 1]} : vector<16x128xf32> to vector<1x128xf32>
    %502 = vector.broadcast %501 : vector<1x128xf32> to vector<16x128xf32>
    %503 = arith.mulf %500, %502 : vector<16x128xf32>
    %c8_227 = arith.constant 8 : index
    %c0_228 = arith.constant 0 : index
    %c0_229 = arith.constant 0 : index
    %504 = vector.load %arg7[%c8_227, %c0_228, %c0_229] : memref<16x16x128xf32, #tpu.memory_space<vmem>>, vector<1x16x128xf32>
    %505 = vector.shape_cast %504 : vector<1x16x128xf32> to vector<16x128xf32>
    %506 = vector.extract_strided_slice %457 {offsets = [8, 0], sizes = [1, 128], strides = [1, 1]} : vector<16x128xf32> to vector<1x128xf32>
    %507 = vector.broadcast %506 : vector<1x128xf32> to vector<16x128xf32>
    %508 = arith.mulf %505, %507 : vector<16x128xf32>
    %c9_230 = arith.constant 9 : index
    %c0_231 = arith.constant 0 : index
    %c0_232 = arith.constant 0 : index
    %509 = vector.load %arg7[%c9_230, %c0_231, %c0_232] : memref<16x16x128xf32, #tpu.memory_space<vmem>>, vector<1x16x128xf32>
    %510 = vector.shape_cast %509 : vector<1x16x128xf32> to vector<16x128xf32>
    %511 = vector.extract_strided_slice %457 {offsets = [9, 0], sizes = [1, 128], strides = [1, 1]} : vector<16x128xf32> to vector<1x128xf32>
    %512 = vector.broadcast %511 : vector<1x128xf32> to vector<16x128xf32>
    %513 = arith.mulf %510, %512 : vector<16x128xf32>
    %c10_233 = arith.constant 10 : index
    %c0_234 = arith.constant 0 : index
    %c0_235 = arith.constant 0 : index
    %514 = vector.load %arg7[%c10_233, %c0_234, %c0_235] : memref<16x16x128xf32, #tpu.memory_space<vmem>>, vector<1x16x128xf32>
    %515 = vector.shape_cast %514 : vector<1x16x128xf32> to vector<16x128xf32>
    %516 = vector.extract_strided_slice %457 {offsets = [10, 0], sizes = [1, 128], strides = [1, 1]} : vector<16x128xf32> to vector<1x128xf32>
    %517 = vector.broadcast %516 : vector<1x128xf32> to vector<16x128xf32>
    %518 = arith.mulf %515, %517 : vector<16x128xf32>
    %c11_236 = arith.constant 11 : index
    %c0_237 = arith.constant 0 : index
    %c0_238 = arith.constant 0 : index
    %519 = vector.load %arg7[%c11_236, %c0_237, %c0_238] : memref<16x16x128xf32, #tpu.memory_space<vmem>>, vector<1x16x128xf32>
    %520 = vector.shape_cast %519 : vector<1x16x128xf32> to vector<16x128xf32>
    %521 = vector.extract_strided_slice %457 {offsets = [11, 0], sizes = [1, 128], strides = [1, 1]} : vector<16x128xf32> to vector<1x128xf32>
    %522 = vector.broadcast %521 : vector<1x128xf32> to vector<16x128xf32>
    %523 = arith.mulf %520, %522 : vector<16x128xf32>
    %c12_239 = arith.constant 12 : index
    %c0_240 = arith.constant 0 : index
    %c0_241 = arith.constant 0 : index
    %524 = vector.load %arg7[%c12_239, %c0_240, %c0_241] : memref<16x16x128xf32, #tpu.memory_space<vmem>>, vector<1x16x128xf32>
    %525 = vector.shape_cast %524 : vector<1x16x128xf32> to vector<16x128xf32>
    %526 = vector.extract_strided_slice %457 {offsets = [12, 0], sizes = [1, 128], strides = [1, 1]} : vector<16x128xf32> to vector<1x128xf32>
    %527 = vector.broadcast %526 : vector<1x128xf32> to vector<16x128xf32>
    %528 = arith.mulf %525, %527 : vector<16x128xf32>
    %c13_242 = arith.constant 13 : index
    %c0_243 = arith.constant 0 : index
    %c0_244 = arith.constant 0 : index
    %529 = vector.load %arg7[%c13_242, %c0_243, %c0_244] : memref<16x16x128xf32, #tpu.memory_space<vmem>>, vector<1x16x128xf32>
    %530 = vector.shape_cast %529 : vector<1x16x128xf32> to vector<16x128xf32>
    %531 = vector.extract_strided_slice %457 {offsets = [13, 0], sizes = [1, 128], strides = [1, 1]} : vector<16x128xf32> to vector<1x128xf32>
    %532 = vector.broadcast %531 : vector<1x128xf32> to vector<16x128xf32>
    %533 = arith.mulf %530, %532 : vector<16x128xf32>
    %c14_245 = arith.constant 14 : index
    %c0_246 = arith.constant 0 : index
    %c0_247 = arith.constant 0 : index
    %534 = vector.load %arg7[%c14_245, %c0_246, %c0_247] : memref<16x16x128xf32, #tpu.memory_space<vmem>>, vector<1x16x128xf32>
    %535 = vector.shape_cast %534 : vector<1x16x128xf32> to vector<16x128xf32>
    %536 = vector.extract_strided_slice %457 {offsets = [14, 0], sizes = [1, 128], strides = [1, 1]} : vector<16x128xf32> to vector<1x128xf32>
    %537 = vector.broadcast %536 : vector<1x128xf32> to vector<16x128xf32>
    %538 = arith.mulf %535, %537 : vector<16x128xf32>
    %c15_248 = arith.constant 15 : index
    %c0_249 = arith.constant 0 : index
    %c0_250 = arith.constant 0 : index
    %539 = vector.load %arg7[%c15_248, %c0_249, %c0_250] : memref<16x16x128xf32, #tpu.memory_space<vmem>>, vector<1x16x128xf32>
    %540 = vector.shape_cast %539 : vector<1x16x128xf32> to vector<16x128xf32>
    %541 = vector.extract_strided_slice %457 {offsets = [15, 0], sizes = [1, 128], strides = [1, 1]} : vector<16x128xf32> to vector<1x128xf32>
    %542 = vector.broadcast %541 : vector<1x128xf32> to vector<16x128xf32>
    %543 = arith.mulf %540, %542 : vector<16x128xf32>
    %544 = arith.addf %463, %468 : vector<16x128xf32>
    %545 = arith.addf %473, %478 : vector<16x128xf32>
    %546 = arith.addf %483, %488 : vector<16x128xf32>
    %547 = arith.addf %493, %498 : vector<16x128xf32>
    %548 = arith.addf %503, %508 : vector<16x128xf32>
    %549 = arith.addf %513, %518 : vector<16x128xf32>
    %550 = arith.addf %523, %528 : vector<16x128xf32>
    %551 = arith.addf %533, %538 : vector<16x128xf32>
    %552 = arith.addf %544, %545 : vector<16x128xf32>
    %553 = arith.addf %546, %547 : vector<16x128xf32>
    %554 = arith.addf %548, %549 : vector<16x128xf32>
    %555 = arith.addf %550, %551 : vector<16x128xf32>
    %556 = arith.addf %552, %553 : vector<16x128xf32>
    %557 = arith.addf %554, %555 : vector<16x128xf32>
    %558 = arith.addf %556, %557 : vector<16x128xf32>
    %559 = arith.addf %558, %543 : vector<16x128xf32>
    %560 = arith.mulf %51, %559 : vector<16x128xf32>
    %cst_251 = arith.constant dense<0.000000e+00> : vector<128xf32>
    %561 = vector.multi_reduction <add>, %560, %cst_251 [0] : vector<16x128xf32> to vector<128xf32>
    %562 = vector.shape_cast %561 : vector<128xf32> to vector<1x128xf32>
    %563 = vector.extract_strided_slice %49 {offsets = [5, 0], sizes = [1, 128], strides = [1, 1]} : vector<8x128xf32> to vector<1x128xf32>
    %564 = vector.broadcast %563 : vector<1x128xf32> to vector<16x128xf32>
    %565 = arith.mulf %564, %50 : vector<16x128xf32>
    %c0_252 = arith.constant 0 : index
    %c0_253 = arith.constant 0 : index
    %c0_254 = arith.constant 0 : index
    %566 = vector.load %arg7[%c0_252, %c0_253, %c0_254] : memref<16x16x128xf32, #tpu.memory_space<vmem>>, vector<1x16x128xf32>
    %567 = vector.shape_cast %566 : vector<1x16x128xf32> to vector<16x128xf32>
    %568 = vector.extract_strided_slice %559 {offsets = [0, 0], sizes = [1, 128], strides = [1, 1]} : vector<16x128xf32> to vector<1x128xf32>
    %569 = vector.broadcast %568 : vector<1x128xf32> to vector<16x128xf32>
    %570 = arith.mulf %567, %569 : vector<16x128xf32>
    %c1_255 = arith.constant 1 : index
    %c0_256 = arith.constant 0 : index
    %c0_257 = arith.constant 0 : index
    %571 = vector.load %arg7[%c1_255, %c0_256, %c0_257] : memref<16x16x128xf32, #tpu.memory_space<vmem>>, vector<1x16x128xf32>
    %572 = vector.shape_cast %571 : vector<1x16x128xf32> to vector<16x128xf32>
    %573 = vector.extract_strided_slice %559 {offsets = [1, 0], sizes = [1, 128], strides = [1, 1]} : vector<16x128xf32> to vector<1x128xf32>
    %574 = vector.broadcast %573 : vector<1x128xf32> to vector<16x128xf32>
    %575 = arith.mulf %572, %574 : vector<16x128xf32>
    %c2_258 = arith.constant 2 : index
    %c0_259 = arith.constant 0 : index
    %c0_260 = arith.constant 0 : index
    %576 = vector.load %arg7[%c2_258, %c0_259, %c0_260] : memref<16x16x128xf32, #tpu.memory_space<vmem>>, vector<1x16x128xf32>
    %577 = vector.shape_cast %576 : vector<1x16x128xf32> to vector<16x128xf32>
    %578 = vector.extract_strided_slice %559 {offsets = [2, 0], sizes = [1, 128], strides = [1, 1]} : vector<16x128xf32> to vector<1x128xf32>
    %579 = vector.broadcast %578 : vector<1x128xf32> to vector<16x128xf32>
    %580 = arith.mulf %577, %579 : vector<16x128xf32>
    %c3_261 = arith.constant 3 : index
    %c0_262 = arith.constant 0 : index
    %c0_263 = arith.constant 0 : index
    %581 = vector.load %arg7[%c3_261, %c0_262, %c0_263] : memref<16x16x128xf32, #tpu.memory_space<vmem>>, vector<1x16x128xf32>
    %582 = vector.shape_cast %581 : vector<1x16x128xf32> to vector<16x128xf32>
    %583 = vector.extract_strided_slice %559 {offsets = [3, 0], sizes = [1, 128], strides = [1, 1]} : vector<16x128xf32> to vector<1x128xf32>
    %584 = vector.broadcast %583 : vector<1x128xf32> to vector<16x128xf32>
    %585 = arith.mulf %582, %584 : vector<16x128xf32>
    %c4_264 = arith.constant 4 : index
    %c0_265 = arith.constant 0 : index
    %c0_266 = arith.constant 0 : index
    %586 = vector.load %arg7[%c4_264, %c0_265, %c0_266] : memref<16x16x128xf32, #tpu.memory_space<vmem>>, vector<1x16x128xf32>
    %587 = vector.shape_cast %586 : vector<1x16x128xf32> to vector<16x128xf32>
    %588 = vector.extract_strided_slice %559 {offsets = [4, 0], sizes = [1, 128], strides = [1, 1]} : vector<16x128xf32> to vector<1x128xf32>
    %589 = vector.broadcast %588 : vector<1x128xf32> to vector<16x128xf32>
    %590 = arith.mulf %587, %589 : vector<16x128xf32>
    %c5_267 = arith.constant 5 : index
    %c0_268 = arith.constant 0 : index
    %c0_269 = arith.constant 0 : index
    %591 = vector.load %arg7[%c5_267, %c0_268, %c0_269] : memref<16x16x128xf32, #tpu.memory_space<vmem>>, vector<1x16x128xf32>
    %592 = vector.shape_cast %591 : vector<1x16x128xf32> to vector<16x128xf32>
    %593 = vector.extract_strided_slice %559 {offsets = [5, 0], sizes = [1, 128], strides = [1, 1]} : vector<16x128xf32> to vector<1x128xf32>
    %594 = vector.broadcast %593 : vector<1x128xf32> to vector<16x128xf32>
    %595 = arith.mulf %592, %594 : vector<16x128xf32>
    %c6_270 = arith.constant 6 : index
    %c0_271 = arith.constant 0 : index
    %c0_272 = arith.constant 0 : index
    %596 = vector.load %arg7[%c6_270, %c0_271, %c0_272] : memref<16x16x128xf32, #tpu.memory_space<vmem>>, vector<1x16x128xf32>
    %597 = vector.shape_cast %596 : vector<1x16x128xf32> to vector<16x128xf32>
    %598 = vector.extract_strided_slice %559 {offsets = [6, 0], sizes = [1, 128], strides = [1, 1]} : vector<16x128xf32> to vector<1x128xf32>
    %599 = vector.broadcast %598 : vector<1x128xf32> to vector<16x128xf32>
    %600 = arith.mulf %597, %599 : vector<16x128xf32>
    %c7_273 = arith.constant 7 : index
    %c0_274 = arith.constant 0 : index
    %c0_275 = arith.constant 0 : index
    %601 = vector.load %arg7[%c7_273, %c0_274, %c0_275] : memref<16x16x128xf32, #tpu.memory_space<vmem>>, vector<1x16x128xf32>
    %602 = vector.shape_cast %601 : vector<1x16x128xf32> to vector<16x128xf32>
    %603 = vector.extract_strided_slice %559 {offsets = [7, 0], sizes = [1, 128], strides = [1, 1]} : vector<16x128xf32> to vector<1x128xf32>
    %604 = vector.broadcast %603 : vector<1x128xf32> to vector<16x128xf32>
    %605 = arith.mulf %602, %604 : vector<16x128xf32>
    %c8_276 = arith.constant 8 : index
    %c0_277 = arith.constant 0 : index
    %c0_278 = arith.constant 0 : index
    %606 = vector.load %arg7[%c8_276, %c0_277, %c0_278] : memref<16x16x128xf32, #tpu.memory_space<vmem>>, vector<1x16x128xf32>
    %607 = vector.shape_cast %606 : vector<1x16x128xf32> to vector<16x128xf32>
    %608 = vector.extract_strided_slice %559 {offsets = [8, 0], sizes = [1, 128], strides = [1, 1]} : vector<16x128xf32> to vector<1x128xf32>
    %609 = vector.broadcast %608 : vector<1x128xf32> to vector<16x128xf32>
    %610 = arith.mulf %607, %609 : vector<16x128xf32>
    %c9_279 = arith.constant 9 : index
    %c0_280 = arith.constant 0 : index
    %c0_281 = arith.constant 0 : index
    %611 = vector.load %arg7[%c9_279, %c0_280, %c0_281] : memref<16x16x128xf32, #tpu.memory_space<vmem>>, vector<1x16x128xf32>
    %612 = vector.shape_cast %611 : vector<1x16x128xf32> to vector<16x128xf32>
    %613 = vector.extract_strided_slice %559 {offsets = [9, 0], sizes = [1, 128], strides = [1, 1]} : vector<16x128xf32> to vector<1x128xf32>
    %614 = vector.broadcast %613 : vector<1x128xf32> to vector<16x128xf32>
    %615 = arith.mulf %612, %614 : vector<16x128xf32>
    %c10_282 = arith.constant 10 : index
    %c0_283 = arith.constant 0 : index
    %c0_284 = arith.constant 0 : index
    %616 = vector.load %arg7[%c10_282, %c0_283, %c0_284] : memref<16x16x128xf32, #tpu.memory_space<vmem>>, vector<1x16x128xf32>
    %617 = vector.shape_cast %616 : vector<1x16x128xf32> to vector<16x128xf32>
    %618 = vector.extract_strided_slice %559 {offsets = [10, 0], sizes = [1, 128], strides = [1, 1]} : vector<16x128xf32> to vector<1x128xf32>
    %619 = vector.broadcast %618 : vector<1x128xf32> to vector<16x128xf32>
    %620 = arith.mulf %617, %619 : vector<16x128xf32>
    %c11_285 = arith.constant 11 : index
    %c0_286 = arith.constant 0 : index
    %c0_287 = arith.constant 0 : index
    %621 = vector.load %arg7[%c11_285, %c0_286, %c0_287] : memref<16x16x128xf32, #tpu.memory_space<vmem>>, vector<1x16x128xf32>
    %622 = vector.shape_cast %621 : vector<1x16x128xf32> to vector<16x128xf32>
    %623 = vector.extract_strided_slice %559 {offsets = [11, 0], sizes = [1, 128], strides = [1, 1]} : vector<16x128xf32> to vector<1x128xf32>
    %624 = vector.broadcast %623 : vector<1x128xf32> to vector<16x128xf32>
    %625 = arith.mulf %622, %624 : vector<16x128xf32>
    %c12_288 = arith.constant 12 : index
    %c0_289 = arith.constant 0 : index
    %c0_290 = arith.constant 0 : index
    %626 = vector.load %arg7[%c12_288, %c0_289, %c0_290] : memref<16x16x128xf32, #tpu.memory_space<vmem>>, vector<1x16x128xf32>
    %627 = vector.shape_cast %626 : vector<1x16x128xf32> to vector<16x128xf32>
    %628 = vector.extract_strided_slice %559 {offsets = [12, 0], sizes = [1, 128], strides = [1, 1]} : vector<16x128xf32> to vector<1x128xf32>
    %629 = vector.broadcast %628 : vector<1x128xf32> to vector<16x128xf32>
    %630 = arith.mulf %627, %629 : vector<16x128xf32>
    %c13_291 = arith.constant 13 : index
    %c0_292 = arith.constant 0 : index
    %c0_293 = arith.constant 0 : index
    %631 = vector.load %arg7[%c13_291, %c0_292, %c0_293] : memref<16x16x128xf32, #tpu.memory_space<vmem>>, vector<1x16x128xf32>
    %632 = vector.shape_cast %631 : vector<1x16x128xf32> to vector<16x128xf32>
    %633 = vector.extract_strided_slice %559 {offsets = [13, 0], sizes = [1, 128], strides = [1, 1]} : vector<16x128xf32> to vector<1x128xf32>
    %634 = vector.broadcast %633 : vector<1x128xf32> to vector<16x128xf32>
    %635 = arith.mulf %632, %634 : vector<16x128xf32>
    %c14_294 = arith.constant 14 : index
    %c0_295 = arith.constant 0 : index
    %c0_296 = arith.constant 0 : index
    %636 = vector.load %arg7[%c14_294, %c0_295, %c0_296] : memref<16x16x128xf32, #tpu.memory_space<vmem>>, vector<1x16x128xf32>
    %637 = vector.shape_cast %636 : vector<1x16x128xf32> to vector<16x128xf32>
    %638 = vector.extract_strided_slice %559 {offsets = [14, 0], sizes = [1, 128], strides = [1, 1]} : vector<16x128xf32> to vector<1x128xf32>
    %639 = vector.broadcast %638 : vector<1x128xf32> to vector<16x128xf32>
    %640 = arith.mulf %637, %639 : vector<16x128xf32>
    %c15_297 = arith.constant 15 : index
    %c0_298 = arith.constant 0 : index
    %c0_299 = arith.constant 0 : index
    %641 = vector.load %arg7[%c15_297, %c0_298, %c0_299] : memref<16x16x128xf32, #tpu.memory_space<vmem>>, vector<1x16x128xf32>
    %642 = vector.shape_cast %641 : vector<1x16x128xf32> to vector<16x128xf32>
    %643 = vector.extract_strided_slice %559 {offsets = [15, 0], sizes = [1, 128], strides = [1, 1]} : vector<16x128xf32> to vector<1x128xf32>
    %644 = vector.broadcast %643 : vector<1x128xf32> to vector<16x128xf32>
    %645 = arith.mulf %642, %644 : vector<16x128xf32>
    %646 = arith.addf %565, %570 : vector<16x128xf32>
    %647 = arith.addf %575, %580 : vector<16x128xf32>
    %648 = arith.addf %585, %590 : vector<16x128xf32>
    %649 = arith.addf %595, %600 : vector<16x128xf32>
    %650 = arith.addf %605, %610 : vector<16x128xf32>
    %651 = arith.addf %615, %620 : vector<16x128xf32>
    %652 = arith.addf %625, %630 : vector<16x128xf32>
    %653 = arith.addf %635, %640 : vector<16x128xf32>
    %654 = arith.addf %646, %647 : vector<16x128xf32>
    %655 = arith.addf %648, %649 : vector<16x128xf32>
    %656 = arith.addf %650, %651 : vector<16x128xf32>
    %657 = arith.addf %652, %653 : vector<16x128xf32>
    %658 = arith.addf %654, %655 : vector<16x128xf32>
    %659 = arith.addf %656, %657 : vector<16x128xf32>
    %660 = arith.addf %658, %659 : vector<16x128xf32>
    %661 = arith.addf %660, %645 : vector<16x128xf32>
    %662 = arith.mulf %51, %661 : vector<16x128xf32>
    %cst_300 = arith.constant dense<0.000000e+00> : vector<128xf32>
    %663 = vector.multi_reduction <add>, %662, %cst_300 [0] : vector<16x128xf32> to vector<128xf32>
    %664 = vector.shape_cast %663 : vector<128xf32> to vector<1x128xf32>
    %665 = vector.extract_strided_slice %49 {offsets = [6, 0], sizes = [1, 128], strides = [1, 1]} : vector<8x128xf32> to vector<1x128xf32>
    %666 = vector.broadcast %665 : vector<1x128xf32> to vector<16x128xf32>
    %667 = arith.mulf %666, %50 : vector<16x128xf32>
    %c0_301 = arith.constant 0 : index
    %c0_302 = arith.constant 0 : index
    %c0_303 = arith.constant 0 : index
    %668 = vector.load %arg7[%c0_301, %c0_302, %c0_303] : memref<16x16x128xf32, #tpu.memory_space<vmem>>, vector<1x16x128xf32>
    %669 = vector.shape_cast %668 : vector<1x16x128xf32> to vector<16x128xf32>
    %670 = vector.extract_strided_slice %661 {offsets = [0, 0], sizes = [1, 128], strides = [1, 1]} : vector<16x128xf32> to vector<1x128xf32>
    %671 = vector.broadcast %670 : vector<1x128xf32> to vector<16x128xf32>
    %672 = arith.mulf %669, %671 : vector<16x128xf32>
    %c1_304 = arith.constant 1 : index
    %c0_305 = arith.constant 0 : index
    %c0_306 = arith.constant 0 : index
    %673 = vector.load %arg7[%c1_304, %c0_305, %c0_306] : memref<16x16x128xf32, #tpu.memory_space<vmem>>, vector<1x16x128xf32>
    %674 = vector.shape_cast %673 : vector<1x16x128xf32> to vector<16x128xf32>
    %675 = vector.extract_strided_slice %661 {offsets = [1, 0], sizes = [1, 128], strides = [1, 1]} : vector<16x128xf32> to vector<1x128xf32>
    %676 = vector.broadcast %675 : vector<1x128xf32> to vector<16x128xf32>
    %677 = arith.mulf %674, %676 : vector<16x128xf32>
    %c2_307 = arith.constant 2 : index
    %c0_308 = arith.constant 0 : index
    %c0_309 = arith.constant 0 : index
    %678 = vector.load %arg7[%c2_307, %c0_308, %c0_309] : memref<16x16x128xf32, #tpu.memory_space<vmem>>, vector<1x16x128xf32>
    %679 = vector.shape_cast %678 : vector<1x16x128xf32> to vector<16x128xf32>
    %680 = vector.extract_strided_slice %661 {offsets = [2, 0], sizes = [1, 128], strides = [1, 1]} : vector<16x128xf32> to vector<1x128xf32>
    %681 = vector.broadcast %680 : vector<1x128xf32> to vector<16x128xf32>
    %682 = arith.mulf %679, %681 : vector<16x128xf32>
    %c3_310 = arith.constant 3 : index
    %c0_311 = arith.constant 0 : index
    %c0_312 = arith.constant 0 : index
    %683 = vector.load %arg7[%c3_310, %c0_311, %c0_312] : memref<16x16x128xf32, #tpu.memory_space<vmem>>, vector<1x16x128xf32>
    %684 = vector.shape_cast %683 : vector<1x16x128xf32> to vector<16x128xf32>
    %685 = vector.extract_strided_slice %661 {offsets = [3, 0], sizes = [1, 128], strides = [1, 1]} : vector<16x128xf32> to vector<1x128xf32>
    %686 = vector.broadcast %685 : vector<1x128xf32> to vector<16x128xf32>
    %687 = arith.mulf %684, %686 : vector<16x128xf32>
    %c4_313 = arith.constant 4 : index
    %c0_314 = arith.constant 0 : index
    %c0_315 = arith.constant 0 : index
    %688 = vector.load %arg7[%c4_313, %c0_314, %c0_315] : memref<16x16x128xf32, #tpu.memory_space<vmem>>, vector<1x16x128xf32>
    %689 = vector.shape_cast %688 : vector<1x16x128xf32> to vector<16x128xf32>
    %690 = vector.extract_strided_slice %661 {offsets = [4, 0], sizes = [1, 128], strides = [1, 1]} : vector<16x128xf32> to vector<1x128xf32>
    %691 = vector.broadcast %690 : vector<1x128xf32> to vector<16x128xf32>
    %692 = arith.mulf %689, %691 : vector<16x128xf32>
    %c5_316 = arith.constant 5 : index
    %c0_317 = arith.constant 0 : index
    %c0_318 = arith.constant 0 : index
    %693 = vector.load %arg7[%c5_316, %c0_317, %c0_318] : memref<16x16x128xf32, #tpu.memory_space<vmem>>, vector<1x16x128xf32>
    %694 = vector.shape_cast %693 : vector<1x16x128xf32> to vector<16x128xf32>
    %695 = vector.extract_strided_slice %661 {offsets = [5, 0], sizes = [1, 128], strides = [1, 1]} : vector<16x128xf32> to vector<1x128xf32>
    %696 = vector.broadcast %695 : vector<1x128xf32> to vector<16x128xf32>
    %697 = arith.mulf %694, %696 : vector<16x128xf32>
    %c6_319 = arith.constant 6 : index
    %c0_320 = arith.constant 0 : index
    %c0_321 = arith.constant 0 : index
    %698 = vector.load %arg7[%c6_319, %c0_320, %c0_321] : memref<16x16x128xf32, #tpu.memory_space<vmem>>, vector<1x16x128xf32>
    %699 = vector.shape_cast %698 : vector<1x16x128xf32> to vector<16x128xf32>
    %700 = vector.extract_strided_slice %661 {offsets = [6, 0], sizes = [1, 128], strides = [1, 1]} : vector<16x128xf32> to vector<1x128xf32>
    %701 = vector.broadcast %700 : vector<1x128xf32> to vector<16x128xf32>
    %702 = arith.mulf %699, %701 : vector<16x128xf32>
    %c7_322 = arith.constant 7 : index
    %c0_323 = arith.constant 0 : index
    %c0_324 = arith.constant 0 : index
    %703 = vector.load %arg7[%c7_322, %c0_323, %c0_324] : memref<16x16x128xf32, #tpu.memory_space<vmem>>, vector<1x16x128xf32>
    %704 = vector.shape_cast %703 : vector<1x16x128xf32> to vector<16x128xf32>
    %705 = vector.extract_strided_slice %661 {offsets = [7, 0], sizes = [1, 128], strides = [1, 1]} : vector<16x128xf32> to vector<1x128xf32>
    %706 = vector.broadcast %705 : vector<1x128xf32> to vector<16x128xf32>
    %707 = arith.mulf %704, %706 : vector<16x128xf32>
    %c8_325 = arith.constant 8 : index
    %c0_326 = arith.constant 0 : index
    %c0_327 = arith.constant 0 : index
    %708 = vector.load %arg7[%c8_325, %c0_326, %c0_327] : memref<16x16x128xf32, #tpu.memory_space<vmem>>, vector<1x16x128xf32>
    %709 = vector.shape_cast %708 : vector<1x16x128xf32> to vector<16x128xf32>
    %710 = vector.extract_strided_slice %661 {offsets = [8, 0], sizes = [1, 128], strides = [1, 1]} : vector<16x128xf32> to vector<1x128xf32>
    %711 = vector.broadcast %710 : vector<1x128xf32> to vector<16x128xf32>
    %712 = arith.mulf %709, %711 : vector<16x128xf32>
    %c9_328 = arith.constant 9 : index
    %c0_329 = arith.constant 0 : index
    %c0_330 = arith.constant 0 : index
    %713 = vector.load %arg7[%c9_328, %c0_329, %c0_330] : memref<16x16x128xf32, #tpu.memory_space<vmem>>, vector<1x16x128xf32>
    %714 = vector.shape_cast %713 : vector<1x16x128xf32> to vector<16x128xf32>
    %715 = vector.extract_strided_slice %661 {offsets = [9, 0], sizes = [1, 128], strides = [1, 1]} : vector<16x128xf32> to vector<1x128xf32>
    %716 = vector.broadcast %715 : vector<1x128xf32> to vector<16x128xf32>
    %717 = arith.mulf %714, %716 : vector<16x128xf32>
    %c10_331 = arith.constant 10 : index
    %c0_332 = arith.constant 0 : index
    %c0_333 = arith.constant 0 : index
    %718 = vector.load %arg7[%c10_331, %c0_332, %c0_333] : memref<16x16x128xf32, #tpu.memory_space<vmem>>, vector<1x16x128xf32>
    %719 = vector.shape_cast %718 : vector<1x16x128xf32> to vector<16x128xf32>
    %720 = vector.extract_strided_slice %661 {offsets = [10, 0], sizes = [1, 128], strides = [1, 1]} : vector<16x128xf32> to vector<1x128xf32>
    %721 = vector.broadcast %720 : vector<1x128xf32> to vector<16x128xf32>
    %722 = arith.mulf %719, %721 : vector<16x128xf32>
    %c11_334 = arith.constant 11 : index
    %c0_335 = arith.constant 0 : index
    %c0_336 = arith.constant 0 : index
    %723 = vector.load %arg7[%c11_334, %c0_335, %c0_336] : memref<16x16x128xf32, #tpu.memory_space<vmem>>, vector<1x16x128xf32>
    %724 = vector.shape_cast %723 : vector<1x16x128xf32> to vector<16x128xf32>
    %725 = vector.extract_strided_slice %661 {offsets = [11, 0], sizes = [1, 128], strides = [1, 1]} : vector<16x128xf32> to vector<1x128xf32>
    %726 = vector.broadcast %725 : vector<1x128xf32> to vector<16x128xf32>
    %727 = arith.mulf %724, %726 : vector<16x128xf32>
    %c12_337 = arith.constant 12 : index
    %c0_338 = arith.constant 0 : index
    %c0_339 = arith.constant 0 : index
    %728 = vector.load %arg7[%c12_337, %c0_338, %c0_339] : memref<16x16x128xf32, #tpu.memory_space<vmem>>, vector<1x16x128xf32>
    %729 = vector.shape_cast %728 : vector<1x16x128xf32> to vector<16x128xf32>
    %730 = vector.extract_strided_slice %661 {offsets = [12, 0], sizes = [1, 128], strides = [1, 1]} : vector<16x128xf32> to vector<1x128xf32>
    %731 = vector.broadcast %730 : vector<1x128xf32> to vector<16x128xf32>
    %732 = arith.mulf %729, %731 : vector<16x128xf32>
    %c13_340 = arith.constant 13 : index
    %c0_341 = arith.constant 0 : index
    %c0_342 = arith.constant 0 : index
    %733 = vector.load %arg7[%c13_340, %c0_341, %c0_342] : memref<16x16x128xf32, #tpu.memory_space<vmem>>, vector<1x16x128xf32>
    %734 = vector.shape_cast %733 : vector<1x16x128xf32> to vector<16x128xf32>
    %735 = vector.extract_strided_slice %661 {offsets = [13, 0], sizes = [1, 128], strides = [1, 1]} : vector<16x128xf32> to vector<1x128xf32>
    %736 = vector.broadcast %735 : vector<1x128xf32> to vector<16x128xf32>
    %737 = arith.mulf %734, %736 : vector<16x128xf32>
    %c14_343 = arith.constant 14 : index
    %c0_344 = arith.constant 0 : index
    %c0_345 = arith.constant 0 : index
    %738 = vector.load %arg7[%c14_343, %c0_344, %c0_345] : memref<16x16x128xf32, #tpu.memory_space<vmem>>, vector<1x16x128xf32>
    %739 = vector.shape_cast %738 : vector<1x16x128xf32> to vector<16x128xf32>
    %740 = vector.extract_strided_slice %661 {offsets = [14, 0], sizes = [1, 128], strides = [1, 1]} : vector<16x128xf32> to vector<1x128xf32>
    %741 = vector.broadcast %740 : vector<1x128xf32> to vector<16x128xf32>
    %742 = arith.mulf %739, %741 : vector<16x128xf32>
    %c15_346 = arith.constant 15 : index
    %c0_347 = arith.constant 0 : index
    %c0_348 = arith.constant 0 : index
    %743 = vector.load %arg7[%c15_346, %c0_347, %c0_348] : memref<16x16x128xf32, #tpu.memory_space<vmem>>, vector<1x16x128xf32>
    %744 = vector.shape_cast %743 : vector<1x16x128xf32> to vector<16x128xf32>
    %745 = vector.extract_strided_slice %661 {offsets = [15, 0], sizes = [1, 128], strides = [1, 1]} : vector<16x128xf32> to vector<1x128xf32>
    %746 = vector.broadcast %745 : vector<1x128xf32> to vector<16x128xf32>
    %747 = arith.mulf %744, %746 : vector<16x128xf32>
    %748 = arith.addf %667, %672 : vector<16x128xf32>
    %749 = arith.addf %677, %682 : vector<16x128xf32>
    %750 = arith.addf %687, %692 : vector<16x128xf32>
    %751 = arith.addf %697, %702 : vector<16x128xf32>
    %752 = arith.addf %707, %712 : vector<16x128xf32>
    %753 = arith.addf %717, %722 : vector<16x128xf32>
    %754 = arith.addf %727, %732 : vector<16x128xf32>
    %755 = arith.addf %737, %742 : vector<16x128xf32>
    %756 = arith.addf %748, %749 : vector<16x128xf32>
    %757 = arith.addf %750, %751 : vector<16x128xf32>
    %758 = arith.addf %752, %753 : vector<16x128xf32>
    %759 = arith.addf %754, %755 : vector<16x128xf32>
    %760 = arith.addf %756, %757 : vector<16x128xf32>
    %761 = arith.addf %758, %759 : vector<16x128xf32>
    %762 = arith.addf %760, %761 : vector<16x128xf32>
    %763 = arith.addf %762, %747 : vector<16x128xf32>
    %764 = arith.mulf %51, %763 : vector<16x128xf32>
    %cst_349 = arith.constant dense<0.000000e+00> : vector<128xf32>
    %765 = vector.multi_reduction <add>, %764, %cst_349 [0] : vector<16x128xf32> to vector<128xf32>
    %766 = vector.shape_cast %765 : vector<128xf32> to vector<1x128xf32>
    %767 = vector.extract_strided_slice %49 {offsets = [7, 0], sizes = [1, 128], strides = [1, 1]} : vector<8x128xf32> to vector<1x128xf32>
    %768 = vector.broadcast %767 : vector<1x128xf32> to vector<16x128xf32>
    %769 = arith.mulf %768, %50 : vector<16x128xf32>
    %c0_350 = arith.constant 0 : index
    %c0_351 = arith.constant 0 : index
    %c0_352 = arith.constant 0 : index
    %770 = vector.load %arg7[%c0_350, %c0_351, %c0_352] : memref<16x16x128xf32, #tpu.memory_space<vmem>>, vector<1x16x128xf32>
    %771 = vector.shape_cast %770 : vector<1x16x128xf32> to vector<16x128xf32>
    %772 = vector.extract_strided_slice %763 {offsets = [0, 0], sizes = [1, 128], strides = [1, 1]} : vector<16x128xf32> to vector<1x128xf32>
    %773 = vector.broadcast %772 : vector<1x128xf32> to vector<16x128xf32>
    %774 = arith.mulf %771, %773 : vector<16x128xf32>
    %c1_353 = arith.constant 1 : index
    %c0_354 = arith.constant 0 : index
    %c0_355 = arith.constant 0 : index
    %775 = vector.load %arg7[%c1_353, %c0_354, %c0_355] : memref<16x16x128xf32, #tpu.memory_space<vmem>>, vector<1x16x128xf32>
    %776 = vector.shape_cast %775 : vector<1x16x128xf32> to vector<16x128xf32>
    %777 = vector.extract_strided_slice %763 {offsets = [1, 0], sizes = [1, 128], strides = [1, 1]} : vector<16x128xf32> to vector<1x128xf32>
    %778 = vector.broadcast %777 : vector<1x128xf32> to vector<16x128xf32>
    %779 = arith.mulf %776, %778 : vector<16x128xf32>
    %c2_356 = arith.constant 2 : index
    %c0_357 = arith.constant 0 : index
    %c0_358 = arith.constant 0 : index
    %780 = vector.load %arg7[%c2_356, %c0_357, %c0_358] : memref<16x16x128xf32, #tpu.memory_space<vmem>>, vector<1x16x128xf32>
    %781 = vector.shape_cast %780 : vector<1x16x128xf32> to vector<16x128xf32>
    %782 = vector.extract_strided_slice %763 {offsets = [2, 0], sizes = [1, 128], strides = [1, 1]} : vector<16x128xf32> to vector<1x128xf32>
    %783 = vector.broadcast %782 : vector<1x128xf32> to vector<16x128xf32>
    %784 = arith.mulf %781, %783 : vector<16x128xf32>
    %c3_359 = arith.constant 3 : index
    %c0_360 = arith.constant 0 : index
    %c0_361 = arith.constant 0 : index
    %785 = vector.load %arg7[%c3_359, %c0_360, %c0_361] : memref<16x16x128xf32, #tpu.memory_space<vmem>>, vector<1x16x128xf32>
    %786 = vector.shape_cast %785 : vector<1x16x128xf32> to vector<16x128xf32>
    %787 = vector.extract_strided_slice %763 {offsets = [3, 0], sizes = [1, 128], strides = [1, 1]} : vector<16x128xf32> to vector<1x128xf32>
    %788 = vector.broadcast %787 : vector<1x128xf32> to vector<16x128xf32>
    %789 = arith.mulf %786, %788 : vector<16x128xf32>
    %c4_362 = arith.constant 4 : index
    %c0_363 = arith.constant 0 : index
    %c0_364 = arith.constant 0 : index
    %790 = vector.load %arg7[%c4_362, %c0_363, %c0_364] : memref<16x16x128xf32, #tpu.memory_space<vmem>>, vector<1x16x128xf32>
    %791 = vector.shape_cast %790 : vector<1x16x128xf32> to vector<16x128xf32>
    %792 = vector.extract_strided_slice %763 {offsets = [4, 0], sizes = [1, 128], strides = [1, 1]} : vector<16x128xf32> to vector<1x128xf32>
    %793 = vector.broadcast %792 : vector<1x128xf32> to vector<16x128xf32>
    %794 = arith.mulf %791, %793 : vector<16x128xf32>
    %c5_365 = arith.constant 5 : index
    %c0_366 = arith.constant 0 : index
    %c0_367 = arith.constant 0 : index
    %795 = vector.load %arg7[%c5_365, %c0_366, %c0_367] : memref<16x16x128xf32, #tpu.memory_space<vmem>>, vector<1x16x128xf32>
    %796 = vector.shape_cast %795 : vector<1x16x128xf32> to vector<16x128xf32>
    %797 = vector.extract_strided_slice %763 {offsets = [5, 0], sizes = [1, 128], strides = [1, 1]} : vector<16x128xf32> to vector<1x128xf32>
    %798 = vector.broadcast %797 : vector<1x128xf32> to vector<16x128xf32>
    %799 = arith.mulf %796, %798 : vector<16x128xf32>
    %c6_368 = arith.constant 6 : index
    %c0_369 = arith.constant 0 : index
    %c0_370 = arith.constant 0 : index
    %800 = vector.load %arg7[%c6_368, %c0_369, %c0_370] : memref<16x16x128xf32, #tpu.memory_space<vmem>>, vector<1x16x128xf32>
    %801 = vector.shape_cast %800 : vector<1x16x128xf32> to vector<16x128xf32>
    %802 = vector.extract_strided_slice %763 {offsets = [6, 0], sizes = [1, 128], strides = [1, 1]} : vector<16x128xf32> to vector<1x128xf32>
    %803 = vector.broadcast %802 : vector<1x128xf32> to vector<16x128xf32>
    %804 = arith.mulf %801, %803 : vector<16x128xf32>
    %c7_371 = arith.constant 7 : index
    %c0_372 = arith.constant 0 : index
    %c0_373 = arith.constant 0 : index
    %805 = vector.load %arg7[%c7_371, %c0_372, %c0_373] : memref<16x16x128xf32, #tpu.memory_space<vmem>>, vector<1x16x128xf32>
    %806 = vector.shape_cast %805 : vector<1x16x128xf32> to vector<16x128xf32>
    %807 = vector.extract_strided_slice %763 {offsets = [7, 0], sizes = [1, 128], strides = [1, 1]} : vector<16x128xf32> to vector<1x128xf32>
    %808 = vector.broadcast %807 : vector<1x128xf32> to vector<16x128xf32>
    %809 = arith.mulf %806, %808 : vector<16x128xf32>
    %c8_374 = arith.constant 8 : index
    %c0_375 = arith.constant 0 : index
    %c0_376 = arith.constant 0 : index
    %810 = vector.load %arg7[%c8_374, %c0_375, %c0_376] : memref<16x16x128xf32, #tpu.memory_space<vmem>>, vector<1x16x128xf32>
    %811 = vector.shape_cast %810 : vector<1x16x128xf32> to vector<16x128xf32>
    %812 = vector.extract_strided_slice %763 {offsets = [8, 0], sizes = [1, 128], strides = [1, 1]} : vector<16x128xf32> to vector<1x128xf32>
    %813 = vector.broadcast %812 : vector<1x128xf32> to vector<16x128xf32>
    %814 = arith.mulf %811, %813 : vector<16x128xf32>
    %c9_377 = arith.constant 9 : index
    %c0_378 = arith.constant 0 : index
    %c0_379 = arith.constant 0 : index
    %815 = vector.load %arg7[%c9_377, %c0_378, %c0_379] : memref<16x16x128xf32, #tpu.memory_space<vmem>>, vector<1x16x128xf32>
    %816 = vector.shape_cast %815 : vector<1x16x128xf32> to vector<16x128xf32>
    %817 = vector.extract_strided_slice %763 {offsets = [9, 0], sizes = [1, 128], strides = [1, 1]} : vector<16x128xf32> to vector<1x128xf32>
    %818 = vector.broadcast %817 : vector<1x128xf32> to vector<16x128xf32>
    %819 = arith.mulf %816, %818 : vector<16x128xf32>
    %c10_380 = arith.constant 10 : index
    %c0_381 = arith.constant 0 : index
    %c0_382 = arith.constant 0 : index
    %820 = vector.load %arg7[%c10_380, %c0_381, %c0_382] : memref<16x16x128xf32, #tpu.memory_space<vmem>>, vector<1x16x128xf32>
    %821 = vector.shape_cast %820 : vector<1x16x128xf32> to vector<16x128xf32>
    %822 = vector.extract_strided_slice %763 {offsets = [10, 0], sizes = [1, 128], strides = [1, 1]} : vector<16x128xf32> to vector<1x128xf32>
    %823 = vector.broadcast %822 : vector<1x128xf32> to vector<16x128xf32>
    %824 = arith.mulf %821, %823 : vector<16x128xf32>
    %c11_383 = arith.constant 11 : index
    %c0_384 = arith.constant 0 : index
    %c0_385 = arith.constant 0 : index
    %825 = vector.load %arg7[%c11_383, %c0_384, %c0_385] : memref<16x16x128xf32, #tpu.memory_space<vmem>>, vector<1x16x128xf32>
    %826 = vector.shape_cast %825 : vector<1x16x128xf32> to vector<16x128xf32>
    %827 = vector.extract_strided_slice %763 {offsets = [11, 0], sizes = [1, 128], strides = [1, 1]} : vector<16x128xf32> to vector<1x128xf32>
    %828 = vector.broadcast %827 : vector<1x128xf32> to vector<16x128xf32>
    %829 = arith.mulf %826, %828 : vector<16x128xf32>
    %c12_386 = arith.constant 12 : index
    %c0_387 = arith.constant 0 : index
    %c0_388 = arith.constant 0 : index
    %830 = vector.load %arg7[%c12_386, %c0_387, %c0_388] : memref<16x16x128xf32, #tpu.memory_space<vmem>>, vector<1x16x128xf32>
    %831 = vector.shape_cast %830 : vector<1x16x128xf32> to vector<16x128xf32>
    %832 = vector.extract_strided_slice %763 {offsets = [12, 0], sizes = [1, 128], strides = [1, 1]} : vector<16x128xf32> to vector<1x128xf32>
    %833 = vector.broadcast %832 : vector<1x128xf32> to vector<16x128xf32>
    %834 = arith.mulf %831, %833 : vector<16x128xf32>
    %c13_389 = arith.constant 13 : index
    %c0_390 = arith.constant 0 : index
    %c0_391 = arith.constant 0 : index
    %835 = vector.load %arg7[%c13_389, %c0_390, %c0_391] : memref<16x16x128xf32, #tpu.memory_space<vmem>>, vector<1x16x128xf32>
    %836 = vector.shape_cast %835 : vector<1x16x128xf32> to vector<16x128xf32>
    %837 = vector.extract_strided_slice %763 {offsets = [13, 0], sizes = [1, 128], strides = [1, 1]} : vector<16x128xf32> to vector<1x128xf32>
    %838 = vector.broadcast %837 : vector<1x128xf32> to vector<16x128xf32>
    %839 = arith.mulf %836, %838 : vector<16x128xf32>
    %c14_392 = arith.constant 14 : index
    %c0_393 = arith.constant 0 : index
    %c0_394 = arith.constant 0 : index
    %840 = vector.load %arg7[%c14_392, %c0_393, %c0_394] : memref<16x16x128xf32, #tpu.memory_space<vmem>>, vector<1x16x128xf32>
    %841 = vector.shape_cast %840 : vector<1x16x128xf32> to vector<16x128xf32>
    %842 = vector.extract_strided_slice %763 {offsets = [14, 0], sizes = [1, 128], strides = [1, 1]} : vector<16x128xf32> to vector<1x128xf32>
    %843 = vector.broadcast %842 : vector<1x128xf32> to vector<16x128xf32>
    %844 = arith.mulf %841, %843 : vector<16x128xf32>
    %c15_395 = arith.constant 15 : index
    %c0_396 = arith.constant 0 : index
    %c0_397 = arith.constant 0 : index
    %845 = vector.load %arg7[%c15_395, %c0_396, %c0_397] : memref<16x16x128xf32, #tpu.memory_space<vmem>>, vector<1x16x128xf32>
    %846 = vector.shape_cast %845 : vector<1x16x128xf32> to vector<16x128xf32>
    %847 = vector.extract_strided_slice %763 {offsets = [15, 0], sizes = [1, 128], strides = [1, 1]} : vector<16x128xf32> to vector<1x128xf32>
    %848 = vector.broadcast %847 : vector<1x128xf32> to vector<16x128xf32>
    %849 = arith.mulf %846, %848 : vector<16x128xf32>
    %850 = arith.addf %769, %774 : vector<16x128xf32>
    %851 = arith.addf %779, %784 : vector<16x128xf32>
    %852 = arith.addf %789, %794 : vector<16x128xf32>
    %853 = arith.addf %799, %804 : vector<16x128xf32>
    %854 = arith.addf %809, %814 : vector<16x128xf32>
    %855 = arith.addf %819, %824 : vector<16x128xf32>
    %856 = arith.addf %829, %834 : vector<16x128xf32>
    %857 = arith.addf %839, %844 : vector<16x128xf32>
    %858 = arith.addf %850, %851 : vector<16x128xf32>
    %859 = arith.addf %852, %853 : vector<16x128xf32>
    %860 = arith.addf %854, %855 : vector<16x128xf32>
    %861 = arith.addf %856, %857 : vector<16x128xf32>
    %862 = arith.addf %858, %859 : vector<16x128xf32>
    %863 = arith.addf %860, %861 : vector<16x128xf32>
    %864 = arith.addf %862, %863 : vector<16x128xf32>
    %865 = arith.addf %864, %849 : vector<16x128xf32>
    %866 = arith.mulf %51, %865 : vector<16x128xf32>
    %cst_398 = arith.constant dense<0.000000e+00> : vector<128xf32>
    %867 = vector.multi_reduction <add>, %866, %cst_398 [0] : vector<16x128xf32> to vector<128xf32>
    %868 = vector.shape_cast %867 : vector<128xf32> to vector<1x128xf32>
    %869 = tpu.concatenate %154, %256, %358, %460, %562, %664, %766, %868 in 0 : vector<1x128xf32>, vector<1x128xf32>, vector<1x128xf32>, vector<1x128xf32>, vector<1x128xf32>, vector<1x128xf32>, vector<1x128xf32>, vector<1x128xf32> -> vector<8x128xf32>
    %870 = vector.extract_strided_slice %869 {offsets = [0, 0], sizes = [8, 64], strides = [1, 1]} : vector<8x128xf32> to vector<8x64xf32>
    %871 = vector.extract_strided_slice %869 {offsets = [0, 64], sizes = [8, 64], strides = [1, 1]} : vector<8x128xf32> to vector<8x64xf32>
    %872 = tpu.concatenate %870, %871 in 0 : vector<8x64xf32>, vector<8x64xf32> -> vector<16x64xf32>
    %c0_399 = arith.constant 0 : index
    %c0_400 = arith.constant 0 : index
    %873 = vector.load %arg10[%c0_399, %c0_400] : memref<64x32xf32, #tpu.memory_space<vmem>>, vector<64x32xf32>
    %cst_401 = arith.constant dense<0.000000e+00> : vector<16x32xf32>
    %874 = tpu.matmul %872, %873, %cst_401 {dimension_numbers = #tpu.dot_dimension_numbers<[1], [0], [0], [1], [0, 0, 1, 1], [], []>} : vector<16x64xf32>, vector<64x32xf32>, vector<16x32xf32> -> vector<16x32xf32>
    %c0_402 = arith.constant 0 : index
    %c0_403 = arith.constant 0 : index
    %875 = vector.load %arg11[%c0_402, %c0_403] : memref<1x32xf32, #tpu.memory_space<vmem>>, vector<1x32xf32>
    %876 = vector.broadcast %875 : vector<1x32xf32> to vector<16x32xf32>
    %877 = arith.addf %874, %876 : vector<16x32xf32>
    %878 = arith.addf %877, %0 : vector<16x32xf32>
    %c0_404 = arith.constant 0 : index
    %c0_405 = arith.constant 0 : index
    %879 = vector.load %arg12[%c0_404, %c0_405] : memref<16x32xf32, #tpu.memory_space<vmem>>, vector<16x32xf32>
    tpu.vector_store %arg12[%c0_404, %c0_405], %878 {strides = array<i32>} : memref<16x32xf32, #tpu.memory_space<vmem>>, vector<16x32xf32>,
    return
  }
  func.func @transform_0(%arg0: i32) -> (i32, i32) {
    %c0_i32 = arith.constant 0 : i32
    %c0_i32_0 = arith.constant 0 : i32
    %c0_i32_1 = arith.constant 0 : i32
    return %c0_i32, %c0_i32_0 : i32, i32
  }
  func.func @transform_1(%arg0: i32) -> (i32, i32) {
    %c0_i32 = arith.constant 0 : i32
    %c0_i32_0 = arith.constant 0 : i32
    %c0_i32_1 = arith.constant 0 : i32
    return %c0_i32, %c0_i32_0 : i32, i32
  }
  func.func @transform_2(%arg0: i32) -> (i32, i32) {
    %c0_i32 = arith.constant 0 : i32
    %c0_i32_0 = arith.constant 0 : i32
    %c0_i32_1 = arith.constant 0 : i32
    return %c0_i32, %c0_i32_0 : i32, i32
  }
  func.func @transform_3(%arg0: i32) -> (i32, i32) {
    %c0_i32 = arith.constant 0 : i32
    %c0_i32_0 = arith.constant 0 : i32
    %c0_i32_1 = arith.constant 0 : i32
    return %c0_i32, %c0_i32_0 : i32, i32
  }
  func.func @transform_4(%arg0: i32) -> (i32, i32) {
    %c0_i32 = arith.constant 0 : i32
    %c0_i32_0 = arith.constant 0 : i32
    %c0_i32_1 = arith.constant 0 : i32
    return %c0_i32, %c0_i32_0 : i32, i32
  }
  func.func @transform_5(%arg0: i32) -> (i32, i32) {
    %c0_i32 = arith.constant 0 : i32
    %c0_i32_0 = arith.constant 0 : i32
    %c0_i32_1 = arith.constant 0 : i32
    return %c0_i32, %c0_i32_0 : i32, i32
  }
  func.func @transform_6(%arg0: i32) -> (i32, i32, i32) {
    %c0_i32 = arith.constant 0 : i32
    %c0_i32_0 = arith.constant 0 : i32
    %c0_i32_1 = arith.constant 0 : i32
    %c0_i32_2 = arith.constant 0 : i32
    return %c0_i32, %c0_i32_0, %c0_i32_1 : i32, i32, i32
  }
  func.func @transform_7(%arg0: i32) -> (i32, i32) {
    %c0_i32 = arith.constant 0 : i32
    %c0_i32_0 = arith.constant 0 : i32
    %c0_i32_1 = arith.constant 0 : i32
    return %c0_i32, %c0_i32_0 : i32, i32
  }
  func.func @transform_8(%arg0: i32) -> (i32, i32) {
    %c0_i32 = arith.constant 0 : i32
    %c0_i32_0 = arith.constant 0 : i32
    %c0_i32_1 = arith.constant 0 : i32
    return %c0_i32, %c0_i32_0 : i32, i32
  }
  func.func @transform_9(%arg0: i32) -> (i32, i32) {
    %c0_i32 = arith.constant 0 : i32
    %c0_i32_0 = arith.constant 0 : i32
    %c0_i32_1 = arith.constant 0 : i32
    return %c0_i32, %c0_i32_0 : i32, i32
  }
  func.func @transform_10(%arg0: i32) -> (i32, i32) {
    %c0_i32 = arith.constant 0 : i32
    %c0_i32_0 = arith.constant 0 : i32
    %c0_i32_1 = arith.constant 0 : i32
    return %c0_i32, %c0_i32_0 : i32, i32
  }
  func.func @transform_11(%arg0: i32) -> (i32, i32) {
    %c0_i32 = arith.constant 0 : i32
    %c0_i32_0 = arith.constant 0 : i32
    %c0_i32_1 = arith.constant 0 : i32
    return %c0_i32, %c0_i32_0 : i32, i32
  }
}

</mosaic_0001>

<bundles_post_ra>
// kernel: tile.29
= control target key start
LH: loop header
LB: loop body
LE: loop exit
PB: predicated region body
PF: predicated region fallthrough
CT: control target
= control target key end

     0   :  { %vm1283_vm0 = vcmask 1047556   ;;  %s2489_s10 = smov 64   ;;  %vm1285_vm1 = vcmask 523264   ;;  %vm1574_vm2 = vcmask 1048064   ;;  %s3620_s0 = inlined_call_operand.vmem [shape: f32[16,16,2,64], index: 0, kind: input, shape index: {}]   ;;  %s3621_s1 = inlined_call_operand.vmem [shape: f32[16,16,128], index: 1, kind: output, shape index: {}]  }
   0x1   :  { %v2419_v0 = vld [vmem:[%s3620_s0 + $0xe] sm:$0x3]  ;;  %v2420_v1 = vld [vmem:[%s3620_s0 + $0xc] sm:$0x3]  ;;  %v2421_v2 = vld [vmem:[%s3620_s0 + $0xa] sm:$0x3] }
   0x2   :  { %1249 = vst [vmem:[#allocation0 + $0x38] sm:$0x3] %v2419_v0  ;;  %1254 = vst [vmem:[#allocation0 + $0x30] sm:$0x3] %v2420_v1  ;;  %v2422_v3 = vld [vmem:[%s3620_s0 + $0x8] sm:$0x3] }
   0x3   :  { %1259 = vst [vmem:[#allocation0 + $0x28] sm:$0x3] %v2421_v2  ;;  %v2423_v4 = vld [vmem:[%s3620_s0 + $0x6] sm:$0x3]  ;;  %v2424_v5 = vld [vmem:[%s3620_s0 + $0x4] sm:$0x3] }
   0x4   :  { %1264 = vst [vmem:[#allocation0 + $0x20] sm:$0x3] %v2422_v3  ;;  %1269 = vst [vmem:[#allocation0 + $0x18] sm:$0x3] %v2423_v4  ;;  %v2425_v6 = vld [vmem:[%s3620_s0 + $0x2] sm:$0x3] }
   0x5   :  { %1274 = vst [vmem:[#allocation0 + $0x10] sm:$0x3] %v2424_v5  ;;  %v1279_v7 = vld [vmem:[%s3620_s0] sm:$0x3]  ;;  %1278 = vst [vmem:[#allocation0 + $0x8] sm:$0x3] %v2425_v6 }
   0x6   :  { %1280 = vst [vmem:[#allocation0] sm:$0x3] %v1279_v7  ;;  %v2355_v8 = vld [vmem:[%s3620_s0 + $0x8e] sm:$0x3]  ;;  %v2356_v9 = vld [vmem:[%s3620_s0 + $0x8c] sm:$0x3] }
   0x7   :  { %v2357_v10 = vld [vmem:[%s3620_s0 + $0x8a] sm:$0x3]  ;;  %929 = vst [vmem:[#allocation0 + $0x238] sm:$0x3] %v2355_v8  ;;  %934 = vst [vmem:[#allocation0 + $0x230] sm:$0x3] %v2356_v9 }
   0x8   :  { %939 = vst [vmem:[#allocation0 + $0x228] sm:$0x3] %v2357_v10  ;;  %v2358_v11 = vld [vmem:[%s3620_s0 + $0x88] sm:$0x3]  ;;  %v2359_v12 = vld [vmem:[%s3620_s0 + $0x86] sm:$0x3] }
   0x9   :  { %v2360_v13 = vld [vmem:[%s3620_s0 + $0x84] sm:$0x3]  ;;  %944 = vst [vmem:[#allocation0 + $0x220] sm:$0x3] %v2358_v11  ;;  %949 = vst [vmem:[#allocation0 + $0x218] sm:$0x3] %v2359_v12 }
   0xa   :  { %954 = vst [vmem:[#allocation0 + $0x210] sm:$0x3] %v2360_v13  ;;  %v2361_v14 = vld [vmem:[%s3620_s0 + $0x82] sm:$0x3]  ;;  %v2362_v15 = vld [vmem:[%s3620_s0 + $0x80] sm:$0x3] }
   0xb   :  { %v2387_v16 = vld [vmem:[%s3620_s0 + $0x4e] sm:$0x3]  ;;  %959 = vst [vmem:[#allocation0 + $0x208] sm:$0x3] %v2361_v14  ;;  %964 = vst [vmem:[#allocation0 + $0x200] sm:$0x3] %v2362_v15 }
   0xc   :  { %1089 = vst [vmem:[#allocation0 + $0x138] sm:$0x3] %v2387_v16  ;;  %v2388_v17 = vld [vmem:[%s3620_s0 + $0x4c] sm:$0x3]  ;;  %v2389_v18 = vld [vmem:[%s3620_s0 + $0x4a] sm:$0x3] }
   0xd   :  { %v2390_v19 = vld [vmem:[%s3620_s0 + $0x48] sm:$0x3]  ;;  %1094 = vst [vmem:[#allocation0 + $0x130] sm:$0x3] %v2388_v17  ;;  %1099 = vst [vmem:[#allocation0 + $0x128] sm:$0x3] %v2389_v18 }
   0xe   :  { %1104 = vst [vmem:[#allocation0 + $0x120] sm:$0x3] %v2390_v19  ;;  %v2391_v20 = vld [vmem:[%s3620_s0 + $0x46] sm:$0x3]  ;;  %v2392_v21 = vld [vmem:[%s3620_s0 + $0x44] sm:$0x3] }
   0xf   :  { %v2393_v22 = vld [vmem:[%s3620_s0 + $0x42] sm:$0x3]  ;;  %1109 = vst [vmem:[#allocation0 + $0x118] sm:$0x3] %v2391_v20  ;;  %1114 = vst [vmem:[#allocation0 + $0x110] sm:$0x3] %v2392_v21 }
  0x10   :  { %1119 = vst [vmem:[#allocation0 + $0x108] sm:$0x3] %v2393_v22  ;;  %v2394_v23 = vld [vmem:[%s3620_s0 + $0x40] sm:$0x3]  ;;  %v2323_v24 = vld [vmem:[%s3620_s0 + $0xce] sm:$0x3] }
  0x11   :  { %v2324_v25 = vld [vmem:[%s3620_s0 + $0xcc] sm:$0x3]  ;;  %v1569_v26 = vld [vmem:[#allocation0 + $0x1] ss:$8 sm:$0xf0]  }
  0x12   :  { %1124 = vst [vmem:[#allocation0 + $0x100] sm:$0x3] %v2394_v23  ;;  %769 = vst [vmem:[#allocation0 + $0x338] sm:$0x3] %v2323_v24  ;;  %v2325_v27 = vld [vmem:[%s3620_s0 + $0xca] sm:$0x3] }
  0x13   :  { %774 = vst [vmem:[#allocation0 + $0x330] sm:$0x3] %v2324_v25  ;;  %v1567_v28 = vld [vmem:[#allocation0 + $0x1] ss:$8 sm:$0xf]  }
  0x14   :  { %779 = vst [vmem:[#allocation0 + $0x328] sm:$0x3] %v2325_v27  ;;  %v2326_v29 = vld [vmem:[%s3620_s0 + $0xc8] sm:$0x3]  ;;  %v1571_v30 = vsel %vm1283_vm0, %v1569_v26, %v1567_v28  ;;  %v2327_v31 = vld [vmem:[%s3620_s0 + $0xc6] sm:$0x3] }
  0x15   :  { %784 = vst [vmem:[#allocation0 + $0x320] sm:$0x3] %v2326_v29  ;;  %v2328_v32 = vld [vmem:[%s3620_s0 + $0xc4] sm:$0x3]  ;;  %v2329_v33 = vld [vmem:[%s3620_s0 + $0xc2] sm:$0x3]  ;;  %1572 = vrot.lane.b32.xlu0 %v1571_v30, %s2489_s10 }
  0x16   :  { %v1590_v34 = vld [vmem:[#allocation0 + $0x201] ss:$8 sm:$0xf0]   ;;  %789 = vst [vmem:[#allocation0 + $0x318] sm:$0x3] %v2327_v31 }
  0x17   :  { %794 = vst [vmem:[#allocation0 + $0x310] sm:$0x3] %v2328_v32  ;;  %799 = vst [vmem:[#allocation0 + $0x308] sm:$0x3] %v2329_v33  ;;  %v2330_v35 = vld [vmem:[%s3620_s0 + $0xc0] sm:$0x3] }
  0x18   :  { %v1588_v36 = vld [vmem:[#allocation0 + $0x201] ss:$8 sm:$0xf]   ;;  %804 = vst [vmem:[#allocation0 + $0x300] sm:$0x3] %v2330_v35 }
  0x19   :  { %v2291_v37 = vld [vmem:[%s3620_s0 + $0x10e] sm:$0x3]  ;;  %v1592_v38 = vsel %vm1283_vm0, %v1590_v34, %v1588_v36  ;;  %v1579_v39 = vld [vmem:[#allocation0 + $0x101] ss:$8 sm:$0xf0]  }
  0x1a   :  { %609 = vst [vmem:[#allocation0 + $0x438] sm:$0x3] %v2291_v37  ;;  %v2292_v40 = vld [vmem:[%s3620_s0 + $0x10c] sm:$0x3]  ;;  %1593 = vrot.lane.b32.xlu1 %v1592_v38, %s2489_s10  ;;  %v2293_v41 = vld [vmem:[%s3620_s0 + $0x10a] sm:$0x3] }
  0x1b   :  { %614 = vst [vmem:[#allocation0 + $0x430] sm:$0x3] %v2292_v40  ;;  %v2294_v42 = vld [vmem:[%s3620_s0 + $0x108] sm:$0x3]  ;;  %v2295_v43 = vld [vmem:[%s3620_s0 + $0x106] sm:$0x3] }
  0x1c   :  { %v1577_v44 = vld [vmem:[#allocation0 + $0x101] ss:$8 sm:$0xf]   ;;  %619 = vst [vmem:[#allocation0 + $0x428] sm:$0x3] %v2293_v41 }
  0x1d   :  { %624 = vst [vmem:[#allocation0 + $0x420] sm:$0x3] %v2294_v42  ;;  %629 = vst [vmem:[#allocation0 + $0x418] sm:$0x3] %v2295_v43  ;;  %v2296_v45 = vld [vmem:[%s3620_s0 + $0x104] sm:$0x3]  ;;  %v1581_v46 = vsel %vm1283_vm0, %v1579_v39, %v1577_v44 }
  0x1e   :  { %634 = vst [vmem:[#allocation0 + $0x410] sm:$0x3] %v2296_v45  ;;  %v2297_v47 = vld [vmem:[%s3620_s0 + $0x102] sm:$0x3]  ;;  %v2298_v48 = vld [vmem:[%s3620_s0 + $0x100] sm:$0x3]  ;;  %1582 = vrot.lane.b32.xlu0 %v1581_v46, %s2489_s10 }
  0x1f   :  { %v2259_v49 = vld [vmem:[%s3620_s0 + $0x14e] sm:$0x3]  ;;  %v1601_v50 = vld [vmem:[#allocation0 + $0x301] ss:$8 sm:$0xf0]  }
  0x20   :  { %639 = vst [vmem:[#allocation0 + $0x408] sm:$0x3] %v2297_v47  ;;  %644 = vst [vmem:[#allocation0 + $0x400] sm:$0x3] %v2298_v48  ;;  %v2260_v51 = vld [vmem:[%s3620_s0 + $0x14c] sm:$0x3] }
  0x21   :  { %449 = vst [vmem:[#allocation0 + $0x538] sm:$0x3] %v2259_v49  ;;  %454 = vst [vmem:[#allocation0 + $0x530] sm:$0x3] %v2260_v51  ;;  %v2261_v52 = vld [vmem:[%s3620_s0 + $0x14a] sm:$0x3] }
  0x22   :  { %v2262_v53 = vld [vmem:[%s3620_s0 + $0x148] sm:$0x3]  ;;  %v2263_v54 = vld [vmem:[%s3620_s0 + $0x146] sm:$0x3]  ;;  %459 = vst [vmem:[#allocation0 + $0x528] sm:$0x3] %v2261_v52 }
  0x23   :  { %v1599_v55 = vld [vmem:[#allocation0 + $0x301] ss:$8 sm:$0xf]   ;;  %464 = vst [vmem:[#allocation0 + $0x520] sm:$0x3] %v2262_v53 }
  0x24   :  { %469 = vst [vmem:[#allocation0 + $0x518] sm:$0x3] %v2263_v54  ;;  %v2264_v56 = vld [vmem:[%s3620_s0 + $0x144] sm:$0x3]  ;;  %v1603_v57 = vsel %vm1283_vm0, %v1601_v50, %v1599_v55  ;;  %v2265_v58 = vld [vmem:[%s3620_s0 + $0x142] sm:$0x3] }
  0x25   :  { %474 = vst [vmem:[#allocation0 + $0x510] sm:$0x3] %v2264_v56  ;;  %v2266_v59 = vld [vmem:[%s3620_s0 + $0x140] sm:$0x3]  ;;  %v2227_v60 = vld [vmem:[%s3620_s0 + $0x18e] sm:$0x3]  ;;  %1604 = vrot.lane.b32.xlu1 %v1603_v57, %s2489_s10 }
  0x26   :  { %479 = vst [vmem:[#allocation0 + $0x508] sm:$0x3] %v2265_v58  ;;  %484 = vst [vmem:[#allocation0 + $0x500] sm:$0x3] %v2266_v59  ;;  %v2228_v61 = vld [vmem:[%s3620_s0 + $0x18c] sm:$0x3] }
  0x27   :  { %289 = vst [vmem:[#allocation0 + $0x638] sm:$0x3] %v2227_v60  ;;  %v2229_v62 = vld [vmem:[%s3620_s0 + $0x18a] sm:$0x3]  ;;  %v2230_v63 = vld [vmem:[%s3620_s0 + $0x188] sm:$0x3] }
  0x28   :  { %v1612_v0 = vld [vmem:[#allocation0 + $0x401] ss:$8 sm:$0xf0]   ;;  %294 = vst [vmem:[#allocation0 + $0x630] sm:$0x3] %v2228_v61 }
  0x29   :  { %299 = vst [vmem:[#allocation0 + $0x628] sm:$0x3] %v2229_v62  ;;  %304 = vst [vmem:[#allocation0 + $0x620] sm:$0x3] %v2230_v63  ;;  %v2231_v1 = vld [vmem:[%s3620_s0 + $0x186] sm:$0x3] }
  0x2a   :  { %309 = vst [vmem:[#allocation0 + $0x618] sm:$0x3] %v2231_v1  ;;  %v2232_v2 = vld [vmem:[%s3620_s0 + $0x184] sm:$0x3]  ;;  %v2233_v3 = vld [vmem:[%s3620_s0 + $0x182] sm:$0x3] }
  0x2b   :  { %v2234_v4 = vld [vmem:[%s3620_s0 + $0x180] sm:$0x3]  ;;  %314 = vst [vmem:[#allocation0 + $0x610] sm:$0x3] %v2232_v2  ;;  %319 = vst [vmem:[#allocation0 + $0x608] sm:$0x3] %v2233_v3 }
  0x2c   :  { %v1610_v5 = vld [vmem:[#allocation0 + $0x401] ss:$8 sm:$0xf]   ;;  %324 = vst [vmem:[#allocation0 + $0x600] sm:$0x3] %v2234_v4 }
  0x2d   :  { %v2195_v6 = vld [vmem:[%s3620_s0 + $0x1ce] sm:$0x3]  ;;  %v1614_v7 = vsel %vm1283_vm0, %v1612_v0, %v1610_v5  ;;  %v2196_v8 = vld [vmem:[%s3620_s0 + $0x1cc] sm:$0x3]  ;;  %v2197_v9 = vld [vmem:[%s3620_s0 + $0x1ca] sm:$0x3] }
  0x2e   :  { %129 = vst [vmem:[#allocation0 + $0x738] sm:$0x3] %v2195_v6  ;;  %v2198_v10 = vld [vmem:[%s3620_s0 + $0x1c8] sm:$0x3]  ;;  %1615 = vrot.lane.b32.xlu0 %v1614_v7, %s2489_s10  ;;  %134 = vst [vmem:[#allocation0 + $0x730] sm:$0x3] %v2196_v8 }
  0x2f   :  { %v1623_v11 = vld [vmem:[#allocation0 + $0x501] ss:$8 sm:$0xf0]   ;;  %139 = vst [vmem:[#allocation0 + $0x728] sm:$0x3] %v2197_v9 }
  0x30   :  { %144 = vst [vmem:[#allocation0 + $0x720] sm:$0x3] %v2198_v10  ;;  %v2199_v12 = vld [vmem:[%s3620_s0 + $0x1c6] sm:$0x3]  ;;  %v2200_v13 = vld [vmem:[%s3620_s0 + $0x1c4] sm:$0x3] }
  0x31   :  { %149 = vst [vmem:[#allocation0 + $0x718] sm:$0x3] %v2199_v12  ;;  %v2201_v14 = vld [vmem:[%s3620_s0 + $0x1c2] sm:$0x3]  ;;  %v2202_v15 = vld [vmem:[%s3620_s0 + $0x1c0] sm:$0x3] }
  0x32   :  { %v1621_v16 = vld [vmem:[#allocation0 + $0x501] ss:$8 sm:$0xf]   ;;  %154 = vst [vmem:[#allocation0 + $0x710] sm:$0x3] %v2200_v13 }
  0x33   :  { %159 = vst [vmem:[#allocation0 + $0x708] sm:$0x3] %v2201_v14  ;;  %164 = vst [vmem:[#allocation0 + $0x700] sm:$0x3] %v2202_v15  ;;  %v2411_v17 = vld [vmem:[%s3620_s0 + $0x1e] sm:$0x3]  ;;  %v1625_v18 = vsel %vm1283_vm0, %v1623_v11, %v1621_v16 }
  0x34   :  { %v1634_v19 = vld [vmem:[#allocation0 + $0x601] ss:$8 sm:$0xf0]   ;;  %1209 = vst [vmem:[#allocation0 + $0x78] sm:$0x3] %v2411_v17  ;;  %1626 = vrot.lane.b32.xlu1 %v1625_v18, %s2489_s10 }
  0x35   :  { %v2412_v20 = vld [vmem:[%s3620_s0 + $0x1c] sm:$0x3]  ;;  %v2413_v21 = vld [vmem:[%s3620_s0 + $0x1a] sm:$0x3]  ;;  %v2414_v22 = vld [vmem:[%s3620_s0 + $0x18] sm:$0x3] }
  0x36   :  { %1214 = vst [vmem:[#allocation0 + $0x70] sm:$0x3] %v2412_v20  ;;  %v2415_v23 = vld [vmem:[%s3620_s0 + $0x16] sm:$0x3]  ;;  %1219 = vst [vmem:[#allocation0 + $0x68] sm:$0x3] %v2413_v21 }
  0x37   :  { %v1632_v24 = vld [vmem:[#allocation0 + $0x601] ss:$8 sm:$0xf]   ;;  %1224 = vst [vmem:[#allocation0 + $0x60] sm:$0x3] %v2414_v22 }
  0x38   :  { %1229 = vst [vmem:[#allocation0 + $0x58] sm:$0x3] %v2415_v23  ;;  %v2416_v25 = vld [vmem:[%s3620_s0 + $0x14] sm:$0x3]  ;;  %v1636_v26 = vsel %vm1283_vm0, %v1634_v19, %v1632_v24  ;;  %v2417_v27 = vld [vmem:[%s3620_s0 + $0x12] sm:$0x3] }
  0x39   :  { %1234 = vst [vmem:[#allocation0 + $0x50] sm:$0x3] %v2416_v25  ;;  %v2418_v28 = vld [vmem:[%s3620_s0 + $0x10] sm:$0x3]  ;;  %v2379_v29 = vld [vmem:[%s3620_s0 + $0x5e] sm:$0x3]  ;;  %1637 = vrot.lane.b32.xlu0 %v1636_v26, %s2489_s10 }
  0x3a   :  { %v1645_v30 = vld [vmem:[#allocation0 + $0x701] ss:$8 sm:$0xf0]   ;;  %1239 = vst [vmem:[#allocation0 + $0x48] sm:$0x3] %v2417_v27 }
  0x3b   :  { %1244 = vst [vmem:[#allocation0 + $0x40] sm:$0x3] %v2418_v28  ;;  %1049 = vst [vmem:[#allocation0 + $0x178] sm:$0x3] %v2379_v29  ;;  %v2380_v31 = vld [vmem:[%s3620_s0 + $0x5c] sm:$0x3] }
  0x3c   :  { %1054 = vst [vmem:[#allocation0 + $0x170] sm:$0x3] %v2380_v31  ;;  %v2381_v32 = vld [vmem:[%s3620_s0 + $0x5a] sm:$0x3]  ;;  %v2382_v33 = vld [vmem:[%s3620_s0 + $0x58] sm:$0x3] }
  0x3d   :  { %v2383_v34 = vld [vmem:[%s3620_s0 + $0x56] sm:$0x3]  ;;  %v1643_v35 = vld [vmem:[#allocation0 + $0x701] ss:$8 sm:$0xf]  }
  0x3e   :  { %1059 = vst [vmem:[#allocation0 + $0x168] sm:$0x3] %v2381_v32  ;;  %1064 = vst [vmem:[#allocation0 + $0x160] sm:$0x3] %v2382_v33  ;;  %v2384_v36 = vld [vmem:[%s3620_s0 + $0x54] sm:$0x3]  ;;  %v1647_v37 = vsel %vm1283_vm0, %v1645_v30, %v1643_v35 }
  0x3f   :  { %1069 = vst [vmem:[#allocation0 + $0x158] sm:$0x3] %v2383_v34  ;;  %1074 = vst [vmem:[#allocation0 + $0x150] sm:$0x3] %v2384_v36  ;;  %v2385_v38 = vld [vmem:[%s3620_s0 + $0x52] sm:$0x3]  ;;  %1648 = vrot.lane.b32.xlu1 %v1647_v37, %s2489_s10 }
  0x40   :  { %v2386_v39 = vld [vmem:[%s3620_s0 + $0x50] sm:$0x3]  ;;  %v2347_v40 = vld [vmem:[%s3620_s0 + $0x9e] sm:$0x3]  ;;  %1079 = vst [vmem:[#allocation0 + $0x148] sm:$0x3] %v2385_v38 }
  0x41   :  { %1084 = vst [vmem:[#allocation0 + $0x140] sm:$0x3] %v2386_v39  ;;  %889 = vst [vmem:[#allocation0 + $0x278] sm:$0x3] %v2347_v40  ;;  %v2348_v41 = vld [vmem:[%s3620_s0 + $0x9c] sm:$0x3] }
  0x42   :  { %v2349_v42 = vld [vmem:[%s3620_s0 + $0x9a] sm:$0x3]  ;;  %v2350_v43 = vld [vmem:[%s3620_s0 + $0x98] sm:$0x3]  ;;  %894 = vst [vmem:[#allocation0 + $0x270] sm:$0x3] %v2348_v41 }
  0x43   :  { %v1656_v44 = vld [vmem:[#allocation0 + $0x41] ss:$8 sm:$0xf0]   ;;  %899 = vst [vmem:[#allocation0 + $0x268] sm:$0x3] %v2349_v42 }
  0x44   :  { %904 = vst [vmem:[#allocation0 + $0x260] sm:$0x3] %v2350_v43  ;;  %v2351_v45 = vld [vmem:[%s3620_s0 + $0x96] sm:$0x3]  ;;  %v2352_v46 = vld [vmem:[%s3620_s0 + $0x94] sm:$0x3] }
  0x45   :  { %909 = vst [vmem:[#allocation0 + $0x258] sm:$0x3] %v2351_v45  ;;  %v2353_v47 = vld [vmem:[%s3620_s0 + $0x92] sm:$0x3]  ;;  %v2354_v48 = vld [vmem:[%s3620_s0 + $0x90] sm:$0x3] }
  0x46   :  { %v1654_v49 = vld [vmem:[#allocation0 + $0x41] ss:$8 sm:$0xf]   ;;  %914 = vst [vmem:[#allocation0 + $0x250] sm:$0x3] %v2352_v46 }
  0x47   :  { %919 = vst [vmem:[#allocation0 + $0x248] sm:$0x3] %v2353_v47  ;;  %924 = vst [vmem:[#allocation0 + $0x240] sm:$0x3] %v2354_v48  ;;  %v2315_v50 = vld [vmem:[%s3620_s0 + $0xde] sm:$0x3]  ;;  %v1658_v51 = vsel %vm1283_vm0, %v1656_v44, %v1654_v49 }
  0x48   :  { %729 = vst [vmem:[#allocation0 + $0x378] sm:$0x3] %v2315_v50  ;;  %v2316_v52 = vld [vmem:[%s3620_s0 + $0xdc] sm:$0x3]  ;;  %v2317_v53 = vld [vmem:[%s3620_s0 + $0xda] sm:$0x3]  ;;  %1659 = vrot.lane.b32.xlu0 %v1658_v51, %s2489_s10 }
  0x49   :  { %v2318_v54 = vld [vmem:[%s3620_s0 + $0xd8] sm:$0x3]  ;;  %734 = vst [vmem:[#allocation0 + $0x370] sm:$0x3] %v2316_v52  ;;  %739 = vst [vmem:[#allocation0 + $0x368] sm:$0x3] %v2317_v53 }
  0x4a   :  { %v1667_v55 = vld [vmem:[#allocation0 + $0x141] ss:$8 sm:$0xf0]   ;;  %744 = vst [vmem:[#allocation0 + $0x360] sm:$0x3] %v2318_v54 }
  0x4b   :  { %v2319_v56 = vld [vmem:[%s3620_s0 + $0xd6] sm:$0x3]  ;;  %v2320_v57 = vld [vmem:[%s3620_s0 + $0xd4] sm:$0x3]  ;;  %v2321_v58 = vld [vmem:[%s3620_s0 + $0xd2] sm:$0x3] }
  0x4c   :  { %749 = vst [vmem:[#allocation0 + $0x358] sm:$0x3] %v2319_v56  ;;  %v2322_v59 = vld [vmem:[%s3620_s0 + $0xd0] sm:$0x3]  ;;  %754 = vst [vmem:[#allocation0 + $0x350] sm:$0x3] %v2320_v57 }
  0x4d   :  { %v1665_v60 = vld [vmem:[#allocation0 + $0x141] ss:$8 sm:$0xf]   ;;  %759 = vst [vmem:[#allocation0 + $0x348] sm:$0x3] %v2321_v58 }
  0x4e   :  { %764 = vst [vmem:[#allocation0 + $0x340] sm:$0x3] %v2322_v59  ;;  %v2283_v61 = vld [vmem:[%s3620_s0 + $0x11e] sm:$0x3]  ;;  %v1669_v62 = vsel %vm1283_vm0, %v1667_v55, %v1665_v60  ;;  %v2284_v0 = vld [vmem:[%s3620_s0 + $0x11c] sm:$0x3] }
  0x4f   :  { %v1678_v63 = vld [vmem:[#allocation0 + $0x241] ss:$8 sm:$0xf0]   ;;  %569 = vst [vmem:[#allocation0 + $0x478] sm:$0x3] %v2283_v61  ;;  %1670 = vrot.lane.b32.xlu1 %v1669_v62, %s2489_s10 }
  0x50   :  { %574 = vst [vmem:[#allocation0 + $0x470] sm:$0x3] %v2284_v0  ;;  %v2285_v1 = vld [vmem:[%s3620_s0 + $0x11a] sm:$0x3]  ;;  %v2286_v2 = vld [vmem:[%s3620_s0 + $0x118] sm:$0x3] }
  0x51   :  { %v2287_v3 = vld [vmem:[%s3620_s0 + $0x116] sm:$0x3]  ;;  %v1676_v4 = vld [vmem:[#allocation0 + $0x241] ss:$8 sm:$0xf]  }
  0x52   :  { %579 = vst [vmem:[#allocation0 + $0x468] sm:$0x3] %v2285_v1  ;;  %584 = vst [vmem:[#allocation0 + $0x460] sm:$0x3] %v2286_v2  ;;  %v2288_v5 = vld [vmem:[%s3620_s0 + $0x114] sm:$0x3]  ;;  %v1680_v6 = vsel %vm1283_vm0, %v1678_v63, %v1676_v4 }
  0x53   :  { %589 = vst [vmem:[#allocation0 + $0x458] sm:$0x3] %v2287_v3  ;;  %594 = vst [vmem:[#allocation0 + $0x450] sm:$0x3] %v2288_v5  ;;  %v2289_v7 = vld [vmem:[%s3620_s0 + $0x112] sm:$0x3]  ;;  %1681 = vrot.lane.b32.xlu0 %v1680_v6, %s2489_s10 }
  0x54   :  { %v2290_v8 = vld [vmem:[%s3620_s0 + $0x110] sm:$0x3]  ;;  %v2251_v9 = vld [vmem:[%s3620_s0 + $0x15e] sm:$0x3]  ;;  %599 = vst [vmem:[#allocation0 + $0x448] sm:$0x3] %v2289_v7 }
  0x55   :  { %v1689_v10 = vld [vmem:[#allocation0 + $0x341] ss:$8 sm:$0xf0]   ;;  %604 = vst [vmem:[#allocation0 + $0x440] sm:$0x3] %v2290_v8 }
  0x56   :  { %409 = vst [vmem:[#allocation0 + $0x578] sm:$0x3] %v2251_v9  ;;  %v2252_v11 = vld [vmem:[%s3620_s0 + $0x15c] sm:$0x3]  ;;  %v2253_v12 = vld [vmem:[%s3620_s0 + $0x15a] sm:$0x3] }
  0x57   :  { %414 = vst [vmem:[#allocation0 + $0x570] sm:$0x3] %v2252_v11  ;;  %v2254_v13 = vld [vmem:[%s3620_s0 + $0x158] sm:$0x3]  ;;  %v2255_v14 = vld [vmem:[%s3620_s0 + $0x156] sm:$0x3] }
  0x58   :  { %v1687_v15 = vld [vmem:[#allocation0 + $0x341] ss:$8 sm:$0xf]   ;;  %419 = vst [vmem:[#allocation0 + $0x568] sm:$0x3] %v2253_v12 }
  0x59   :  { %424 = vst [vmem:[#allocation0 + $0x560] sm:$0x3] %v2254_v13  ;;  %429 = vst [vmem:[#allocation0 + $0x558] sm:$0x3] %v2255_v14  ;;  %v2256_v16 = vld [vmem:[%s3620_s0 + $0x154] sm:$0x3]  ;;  %v1691_v17 = vsel %vm1283_vm0, %v1689_v10, %v1687_v15 }
  0x5a   :  { %434 = vst [vmem:[#allocation0 + $0x550] sm:$0x3] %v2256_v16  ;;  %v2257_v18 = vld [vmem:[%s3620_s0 + $0x152] sm:$0x3]  ;;  %v2258_v19 = vld [vmem:[%s3620_s0 + $0x150] sm:$0x3]  ;;  %1692 = vrot.lane.b32.xlu1 %v1691_v17, %s2489_s10 }
  0x5b   :  { %v2219_v20 = vld [vmem:[%s3620_s0 + $0x19e] sm:$0x3]  ;;  %439 = vst [vmem:[#allocation0 + $0x548] sm:$0x3] %v2257_v18  ;;  %444 = vst [vmem:[#allocation0 + $0x540] sm:$0x3] %v2258_v19 }
  0x5c   :  { %249 = vst [vmem:[#allocation0 + $0x678] sm:$0x3] %v2219_v20  ;;  %v2220_v21 = vld [vmem:[%s3620_s0 + $0x19c] sm:$0x3]  ;;  %v2221_v22 = vld [vmem:[%s3620_s0 + $0x19a] sm:$0x3] }
  0x5d   :  { %v2222_v23 = vld [vmem:[%s3620_s0 + $0x198] sm:$0x3]  ;;  %254 = vst [vmem:[#allocation0 + $0x670] sm:$0x3] %v2220_v21  ;;  %259 = vst [vmem:[#allocation0 + $0x668] sm:$0x3] %v2221_v22 }
  0x5e   :  { %v1700_v24 = vld [vmem:[#allocation0 + $0x441] ss:$8 sm:$0xf0]   ;;  %264 = vst [vmem:[#allocation0 + $0x660] sm:$0x3] %v2222_v23 }
  0x5f   :  { %v2223_v25 = vld [vmem:[%s3620_s0 + $0x196] sm:$0x3]  ;;  %v2224_v26 = vld [vmem:[%s3620_s0 + $0x194] sm:$0x3]  ;;  %v2225_v27 = vld [vmem:[%s3620_s0 + $0x192] sm:$0x3] }
  0x60   :  { %269 = vst [vmem:[#allocation0 + $0x658] sm:$0x3] %v2223_v25  ;;  %v2226_v28 = vld [vmem:[%s3620_s0 + $0x190] sm:$0x3]  ;;  %274 = vst [vmem:[#allocation0 + $0x650] sm:$0x3] %v2224_v26 }
  0x61   :  { %v1698_v29 = vld [vmem:[#allocation0 + $0x441] ss:$8 sm:$0xf]   ;;  %279 = vst [vmem:[#allocation0 + $0x648] sm:$0x3] %v2225_v27 }
  0x62   :  { %284 = vst [vmem:[#allocation0 + $0x640] sm:$0x3] %v2226_v28  ;;  %v2187_v30 = vld [vmem:[%s3620_s0 + $0x1de] sm:$0x3]  ;;  %v1702_v31 = vsel %vm1283_vm0, %v1700_v24, %v1698_v29  ;;  %v2188_v32 = vld [vmem:[%s3620_s0 + $0x1dc] sm:$0x3] }
  0x63   :  { %89 = vst [vmem:[#allocation0 + $0x778] sm:$0x3] %v2187_v30  ;;  %v2189_v33 = vld [vmem:[%s3620_s0 + $0x1da] sm:$0x3]  ;;  %v2190_v34 = vld [vmem:[%s3620_s0 + $0x1d8] sm:$0x3]  ;;  %1703 = vrot.lane.b32.xlu0 %v1702_v31, %s2489_s10 }
  0x64   :  { %v1711_v35 = vld [vmem:[#allocation0 + $0x541] ss:$8 sm:$0xf0]   ;;  %94 = vst [vmem:[#allocation0 + $0x770] sm:$0x3] %v2188_v32 }
  0x65   :  { %99 = vst [vmem:[#allocation0 + $0x768] sm:$0x3] %v2189_v33  ;;  %104 = vst [vmem:[#allocation0 + $0x760] sm:$0x3] %v2190_v34  ;;  %v2191_v36 = vld [vmem:[%s3620_s0 + $0x1d6] sm:$0x3] }
  0x66   :  { %109 = vst [vmem:[#allocation0 + $0x758] sm:$0x3] %v2191_v36  ;;  %v2192_v37 = vld [vmem:[%s3620_s0 + $0x1d4] sm:$0x3]  ;;  %v2193_v38 = vld [vmem:[%s3620_s0 + $0x1d2] sm:$0x3] }
  0x67   :  { %v2194_v39 = vld [vmem:[%s3620_s0 + $0x1d0] sm:$0x3]  ;;  %114 = vst [vmem:[#allocation0 + $0x750] sm:$0x3] %v2192_v37  ;;  %119 = vst [vmem:[#allocation0 + $0x748] sm:$0x3] %v2193_v38 }
  0x68   :  { %v1709_v40 = vld [vmem:[#allocation0 + $0x541] ss:$8 sm:$0xf]   ;;  %124 = vst [vmem:[#allocation0 + $0x740] sm:$0x3] %v2194_v39 }
  0x69   :  { %v2403_v41 = vld [vmem:[%s3620_s0 + $0x2e] sm:$0x3]  ;;  %v1713_v42 = vsel %vm1283_vm0, %v1711_v35, %v1709_v40  ;;  %v1722_v43 = vld [vmem:[#allocation0 + $0x641] ss:$8 sm:$0xf0]  }
  0x6a   :  { %1169 = vst [vmem:[#allocation0 + $0xb8] sm:$0x3] %v2403_v41  ;;  %v2404_v44 = vld [vmem:[%s3620_s0 + $0x2c] sm:$0x3]  ;;  %1714 = vrot.lane.b32.xlu1 %v1713_v42, %s2489_s10  ;;  %v2405_v45 = vld [vmem:[%s3620_s0 + $0x2a] sm:$0x3] }
  0x6b   :  { %1174 = vst [vmem:[#allocation0 + $0xb0] sm:$0x3] %v2404_v44  ;;  %v2406_v46 = vld [vmem:[%s3620_s0 + $0x28] sm:$0x3]  ;;  %v2407_v47 = vld [vmem:[%s3620_s0 + $0x26] sm:$0x3] }
  0x6c   :  { %v1720_v48 = vld [vmem:[#allocation0 + $0x641] ss:$8 sm:$0xf]   ;;  %1179 = vst [vmem:[#allocation0 + $0xa8] sm:$0x3] %v2405_v45 }
  0x6d   :  { %1184 = vst [vmem:[#allocation0 + $0xa0] sm:$0x3] %v2406_v46  ;;  %1189 = vst [vmem:[#allocation0 + $0x98] sm:$0x3] %v2407_v47  ;;  %v2408_v49 = vld [vmem:[%s3620_s0 + $0x24] sm:$0x3]  ;;  %v1724_v50 = vsel %vm1283_vm0, %v1722_v43, %v1720_v48 }
  0x6e   :  { %1194 = vst [vmem:[#allocation0 + $0x90] sm:$0x3] %v2408_v49  ;;  %v2409_v51 = vld [vmem:[%s3620_s0 + $0x22] sm:$0x3]  ;;  %v2410_v52 = vld [vmem:[%s3620_s0 + $0x20] sm:$0x3]  ;;  %1725 = vrot.lane.b32.xlu0 %v1724_v50, %s2489_s10 }
  0x6f   :  { %v2371_v53 = vld [vmem:[%s3620_s0 + $0x6e] sm:$0x3]  ;;  %v1733_v54 = vld [vmem:[#allocation0 + $0x741] ss:$8 sm:$0xf0]  }
  0x70   :  { %1199 = vst [vmem:[#allocation0 + $0x88] sm:$0x3] %v2409_v51  ;;  %1204 = vst [vmem:[#allocation0 + $0x80] sm:$0x3] %v2410_v52  ;;  %v2372_v55 = vld [vmem:[%s3620_s0 + $0x6c] sm:$0x3] }
  0x71   :  { %1009 = vst [vmem:[#allocation0 + $0x1b8] sm:$0x3] %v2371_v53  ;;  %1014 = vst [vmem:[#allocation0 + $0x1b0] sm:$0x3] %v2372_v55  ;;  %v2373_v56 = vld [vmem:[%s3620_s0 + $0x6a] sm:$0x3] }
  0x72   :  { %v2374_v57 = vld [vmem:[%s3620_s0 + $0x68] sm:$0x3]  ;;  %v2375_v58 = vld [vmem:[%s3620_s0 + $0x66] sm:$0x3]  ;;  %1019 = vst [vmem:[#allocation0 + $0x1a8] sm:$0x3] %v2373_v56 }
  0x73   :  { %v1731_v59 = vld [vmem:[#allocation0 + $0x741] ss:$8 sm:$0xf]   ;;  %1024 = vst [vmem:[#allocation0 + $0x1a0] sm:$0x3] %v2374_v57 }
  0x74   :  { %1029 = vst [vmem:[#allocation0 + $0x198] sm:$0x3] %v2375_v58  ;;  %v2376_v60 = vld [vmem:[%s3620_s0 + $0x64] sm:$0x3]  ;;  %v1735_v61 = vsel %vm1283_vm0, %v1733_v54, %v1731_v59  ;;  %v2377_v62 = vld [vmem:[%s3620_s0 + $0x62] sm:$0x3] }
  0x75   :  { %1034 = vst [vmem:[#allocation0 + $0x190] sm:$0x3] %v2376_v60  ;;  %v2378_v63 = vld [vmem:[%s3620_s0 + $0x60] sm:$0x3]  ;;  %v2339_v0 = vld [vmem:[%s3620_s0 + $0xae] sm:$0x3]  ;;  %1736 = vrot.lane.b32.xlu1 %v1735_v61, %s2489_s10 }
  0x76   :  { %1039 = vst [vmem:[#allocation0 + $0x188] sm:$0x3] %v2377_v62  ;;  %1044 = vst [vmem:[#allocation0 + $0x180] sm:$0x3] %v2378_v63  ;;  %v2340_v1 = vld [vmem:[%s3620_s0 + $0xac] sm:$0x3] }
  0x77   :  { %849 = vst [vmem:[#allocation0 + $0x2b8] sm:$0x3] %v2339_v0  ;;  %v2341_v2 = vld [vmem:[%s3620_s0 + $0xaa] sm:$0x3]  ;;  %v2342_v3 = vld [vmem:[%s3620_s0 + $0xa8] sm:$0x3] }
  0x78   :  { %v1744_v4 = vld [vmem:[#allocation0 + $0x81] ss:$8 sm:$0xf0]   ;;  %854 = vst [vmem:[#allocation0 + $0x2b0] sm:$0x3] %v2340_v1 }
  0x79   :  { %859 = vst [vmem:[#allocation0 + $0x2a8] sm:$0x3] %v2341_v2  ;;  %864 = vst [vmem:[#allocation0 + $0x2a0] sm:$0x3] %v2342_v3  ;;  %v2343_v5 = vld [vmem:[%s3620_s0 + $0xa6] sm:$0x3] }
  0x7a   :  { %869 = vst [vmem:[#allocation0 + $0x298] sm:$0x3] %v2343_v5  ;;  %v2344_v6 = vld [vmem:[%s3620_s0 + $0xa4] sm:$0x3]  ;;  %v2345_v7 = vld [vmem:[%s3620_s0 + $0xa2] sm:$0x3] }
  0x7b   :  { %v2346_v8 = vld [vmem:[%s3620_s0 + $0xa0] sm:$0x3]  ;;  %874 = vst [vmem:[#allocation0 + $0x290] sm:$0x3] %v2344_v6  ;;  %879 = vst [vmem:[#allocation0 + $0x288] sm:$0x3] %v2345_v7 }
  0x7c   :  { %v1742_v9 = vld [vmem:[#allocation0 + $0x81] ss:$8 sm:$0xf]   ;;  %884 = vst [vmem:[#allocation0 + $0x280] sm:$0x3] %v2346_v8 }
  0x7d   :  { %v2307_v10 = vld [vmem:[%s3620_s0 + $0xee] sm:$0x3]  ;;  %v1746_v11 = vsel %vm1283_vm0, %v1744_v4, %v1742_v9  ;;  %v2308_v12 = vld [vmem:[%s3620_s0 + $0xec] sm:$0x3]  ;;  %v2309_v13 = vld [vmem:[%s3620_s0 + $0xea] sm:$0x3] }
  0x7e   :  { %689 = vst [vmem:[#allocation0 + $0x3b8] sm:$0x3] %v2307_v10  ;;  %v2310_v14 = vld [vmem:[%s3620_s0 + $0xe8] sm:$0x3]  ;;  %1747 = vrot.lane.b32.xlu0 %v1746_v11, %s2489_s10  ;;  %694 = vst [vmem:[#allocation0 + $0x3b0] sm:$0x3] %v2308_v12 }
  0x7f   :  { %v1755_v15 = vld [vmem:[#allocation0 + $0x181] ss:$8 sm:$0xf0]   ;;  %699 = vst [vmem:[#allocation0 + $0x3a8] sm:$0x3] %v2309_v13 }
  0x80   :  { %704 = vst [vmem:[#allocation0 + $0x3a0] sm:$0x3] %v2310_v14  ;;  %v2311_v16 = vld [vmem:[%s3620_s0 + $0xe6] sm:$0x3]  ;;  %v2312_v17 = vld [vmem:[%s3620_s0 + $0xe4] sm:$0x3] }
  0x81   :  { %709 = vst [vmem:[#allocation0 + $0x398] sm:$0x3] %v2311_v16  ;;  %v2313_v18 = vld [vmem:[%s3620_s0 + $0xe2] sm:$0x3]  ;;  %v2314_v19 = vld [vmem:[%s3620_s0 + $0xe0] sm:$0x3] }
  0x82   :  { %v1753_v20 = vld [vmem:[#allocation0 + $0x181] ss:$8 sm:$0xf]   ;;  %714 = vst [vmem:[#allocation0 + $0x390] sm:$0x3] %v2312_v17 }
  0x83   :  { %719 = vst [vmem:[#allocation0 + $0x388] sm:$0x3] %v2313_v18  ;;  %724 = vst [vmem:[#allocation0 + $0x380] sm:$0x3] %v2314_v19  ;;  %v2275_v21 = vld [vmem:[%s3620_s0 + $0x12e] sm:$0x3]  ;;  %v1757_v22 = vsel %vm1283_vm0, %v1755_v15, %v1753_v20 }
  0x84   :  { %v1766_v23 = vld [vmem:[#allocation0 + $0x281] ss:$8 sm:$0xf0]   ;;  %529 = vst [vmem:[#allocation0 + $0x4b8] sm:$0x3] %v2275_v21  ;;  %1758 = vrot.lane.b32.xlu1 %v1757_v22, %s2489_s10 }
  0x85   :  { %v2276_v24 = vld [vmem:[%s3620_s0 + $0x12c] sm:$0x3]  ;;  %v2277_v25 = vld [vmem:[%s3620_s0 + $0x12a] sm:$0x3]  ;;  %v2278_v26 = vld [vmem:[%s3620_s0 + $0x128] sm:$0x3] }
  0x86   :  { %534 = vst [vmem:[#allocation0 + $0x4b0] sm:$0x3] %v2276_v24  ;;  %v2279_v27 = vld [vmem:[%s3620_s0 + $0x126] sm:$0x3]  ;;  %539 = vst [vmem:[#allocation0 + $0x4a8] sm:$0x3] %v2277_v25 }
  0x87   :  { %v1764_v28 = vld [vmem:[#allocation0 + $0x281] ss:$8 sm:$0xf]   ;;  %544 = vst [vmem:[#allocation0 + $0x4a0] sm:$0x3] %v2278_v26 }
  0x88   :  { %549 = vst [vmem:[#allocation0 + $0x498] sm:$0x3] %v2279_v27  ;;  %v2280_v29 = vld [vmem:[%s3620_s0 + $0x124] sm:$0x3]  ;;  %v1768_v30 = vsel %vm1283_vm0, %v1766_v23, %v1764_v28  ;;  %v2281_v31 = vld [vmem:[%s3620_s0 + $0x122] sm:$0x3] }
  0x89   :  { %554 = vst [vmem:[#allocation0 + $0x490] sm:$0x3] %v2280_v29  ;;  %v2282_v32 = vld [vmem:[%s3620_s0 + $0x120] sm:$0x3]  ;;  %v2243_v33 = vld [vmem:[%s3620_s0 + $0x16e] sm:$0x3]  ;;  %1769 = vrot.lane.b32.xlu0 %v1768_v30, %s2489_s10 }
  0x8a   :  { %v1777_v34 = vld [vmem:[#allocation0 + $0x381] ss:$8 sm:$0xf0]   ;;  %559 = vst [vmem:[#allocation0 + $0x488] sm:$0x3] %v2281_v31 }
  0x8b   :  { %564 = vst [vmem:[#allocation0 + $0x480] sm:$0x3] %v2282_v32  ;;  %369 = vst [vmem:[#allocation0 + $0x5b8] sm:$0x3] %v2243_v33  ;;  %v2244_v35 = vld [vmem:[%s3620_s0 + $0x16c] sm:$0x3] }
  0x8c   :  { %374 = vst [vmem:[#allocation0 + $0x5b0] sm:$0x3] %v2244_v35  ;;  %v2245_v36 = vld [vmem:[%s3620_s0 + $0x16a] sm:$0x3]  ;;  %v2246_v37 = vld [vmem:[%s3620_s0 + $0x168] sm:$0x3] }
  0x8d   :  { %v2247_v38 = vld [vmem:[%s3620_s0 + $0x166] sm:$0x3]  ;;  %v1775_v39 = vld [vmem:[#allocation0 + $0x381] ss:$8 sm:$0xf]  }
  0x8e   :  { %379 = vst [vmem:[#allocation0 + $0x5a8] sm:$0x3] %v2245_v36  ;;  %384 = vst [vmem:[#allocation0 + $0x5a0] sm:$0x3] %v2246_v37  ;;  %v2248_v40 = vld [vmem:[%s3620_s0 + $0x164] sm:$0x3]  ;;  %v1779_v41 = vsel %vm1283_vm0, %v1777_v34, %v1775_v39 }
  0x8f   :  { %389 = vst [vmem:[#allocation0 + $0x598] sm:$0x3] %v2247_v38  ;;  %394 = vst [vmem:[#allocation0 + $0x590] sm:$0x3] %v2248_v40  ;;  %v2249_v42 = vld [vmem:[%s3620_s0 + $0x162] sm:$0x3]  ;;  %1780 = vrot.lane.b32.xlu1 %v1779_v41, %s2489_s10 }
  0x90   :  { %v2250_v43 = vld [vmem:[%s3620_s0 + $0x160] sm:$0x3]  ;;  %v2211_v44 = vld [vmem:[%s3620_s0 + $0x1ae] sm:$0x3]  ;;  %399 = vst [vmem:[#allocation0 + $0x588] sm:$0x3] %v2249_v42 }
  0x91   :  { %404 = vst [vmem:[#allocation0 + $0x580] sm:$0x3] %v2250_v43  ;;  %209 = vst [vmem:[#allocation0 + $0x6b8] sm:$0x3] %v2211_v44  ;;  %v2212_v45 = vld [vmem:[%s3620_s0 + $0x1ac] sm:$0x3] }
  0x92   :  { %v2213_v46 = vld [vmem:[%s3620_s0 + $0x1aa] sm:$0x3]  ;;  %v2214_v47 = vld [vmem:[%s3620_s0 + $0x1a8] sm:$0x3]  ;;  %214 = vst [vmem:[#allocation0 + $0x6b0] sm:$0x3] %v2212_v45 }
  0x93   :  { %v1788_v48 = vld [vmem:[#allocation0 + $0x481] ss:$8 sm:$0xf0]   ;;  %219 = vst [vmem:[#allocation0 + $0x6a8] sm:$0x3] %v2213_v46 }
  0x94   :  { %224 = vst [vmem:[#allocation0 + $0x6a0] sm:$0x3] %v2214_v47  ;;  %v2215_v49 = vld [vmem:[%s3620_s0 + $0x1a6] sm:$0x3]  ;;  %v2216_v50 = vld [vmem:[%s3620_s0 + $0x1a4] sm:$0x3] }
  0x95   :  { %229 = vst [vmem:[#allocation0 + $0x698] sm:$0x3] %v2215_v49  ;;  %v2217_v51 = vld [vmem:[%s3620_s0 + $0x1a2] sm:$0x3]  ;;  %v2218_v52 = vld [vmem:[%s3620_s0 + $0x1a0] sm:$0x3] }
  0x96   :  { %v1786_v53 = vld [vmem:[#allocation0 + $0x481] ss:$8 sm:$0xf]   ;;  %234 = vst [vmem:[#allocation0 + $0x690] sm:$0x3] %v2216_v50 }
  0x97   :  { %239 = vst [vmem:[#allocation0 + $0x688] sm:$0x3] %v2217_v51  ;;  %244 = vst [vmem:[#allocation0 + $0x680] sm:$0x3] %v2218_v52  ;;  %v2179_v54 = vld [vmem:[%s3620_s0 + $0x1ee] sm:$0x3]  ;;  %v1790_v55 = vsel %vm1283_vm0, %v1788_v48, %v1786_v53 }
  0x98   :  { %49 = vst [vmem:[#allocation0 + $0x7b8] sm:$0x3] %v2179_v54  ;;  %v2180_v56 = vld [vmem:[%s3620_s0 + $0x1ec] sm:$0x3]  ;;  %v2181_v57 = vld [vmem:[%s3620_s0 + $0x1ea] sm:$0x3]  ;;  %1791 = vrot.lane.b32.xlu0 %v1790_v55, %s2489_s10 }
  0x99   :  { %v2182_v58 = vld [vmem:[%s3620_s0 + $0x1e8] sm:$0x3]  ;;  %54 = vst [vmem:[#allocation0 + $0x7b0] sm:$0x3] %v2180_v56  ;;  %59 = vst [vmem:[#allocation0 + $0x7a8] sm:$0x3] %v2181_v57 }
  0x9a   :  { %v1799_v59 = vld [vmem:[#allocation0 + $0x581] ss:$8 sm:$0xf0]   ;;  %64 = vst [vmem:[#allocation0 + $0x7a0] sm:$0x3] %v2182_v58 }
  0x9b   :  { %v2183_v60 = vld [vmem:[%s3620_s0 + $0x1e6] sm:$0x3]  ;;  %v2184_v61 = vld [vmem:[%s3620_s0 + $0x1e4] sm:$0x3]  ;;  %v2185_v62 = vld [vmem:[%s3620_s0 + $0x1e2] sm:$0x3] }
  0x9c   :  { %69 = vst [vmem:[#allocation0 + $0x798] sm:$0x3] %v2183_v60  ;;  %v2186_v63 = vld [vmem:[%s3620_s0 + $0x1e0] sm:$0x3]  ;;  %74 = vst [vmem:[#allocation0 + $0x790] sm:$0x3] %v2184_v61 }
  0x9d   :  { %v1797_v0 = vld [vmem:[#allocation0 + $0x581] ss:$8 sm:$0xf]   ;;  %79 = vst [vmem:[#allocation0 + $0x788] sm:$0x3] %v2185_v62 }
  0x9e   :  { %84 = vst [vmem:[#allocation0 + $0x780] sm:$0x3] %v2186_v63  ;;  %v2395_v1 = vld [vmem:[%s3620_s0 + $0x3e] sm:$0x3]  ;;  %v1801_v2 = vsel %vm1283_vm0, %v1799_v59, %v1797_v0  ;;  %v2396_v4 = vld [vmem:[%s3620_s0 + $0x3c] sm:$0x3] }
  0x9f   :  { %v1810_v3 = vld [vmem:[#allocation0 + $0x681] ss:$8 sm:$0xf0]   ;;  %1129 = vst [vmem:[#allocation0 + $0xf8] sm:$0x3] %v2395_v1  ;;  %1802 = vrot.lane.b32.xlu1 %v1801_v2, %s2489_s10 }
  0xa0   :  { %1134 = vst [vmem:[#allocation0 + $0xf0] sm:$0x3] %v2396_v4  ;;  %v2397_v5 = vld [vmem:[%s3620_s0 + $0x3a] sm:$0x3]  ;;  %v2398_v6 = vld [vmem:[%s3620_s0 + $0x38] sm:$0x3] }
  0xa1   :  { %v2399_v7 = vld [vmem:[%s3620_s0 + $0x36] sm:$0x3]  ;;  %v1808_v8 = vld [vmem:[#allocation0 + $0x681] ss:$8 sm:$0xf]  }
  0xa2   :  { %1139 = vst [vmem:[#allocation0 + $0xe8] sm:$0x3] %v2397_v5  ;;  %1144 = vst [vmem:[#allocation0 + $0xe0] sm:$0x3] %v2398_v6  ;;  %v2400_v9 = vld [vmem:[%s3620_s0 + $0x34] sm:$0x3]  ;;  %v1812_v10 = vsel %vm1283_vm0, %v1810_v3, %v1808_v8 }
  0xa3   :  { %1149 = vst [vmem:[#allocation0 + $0xd8] sm:$0x3] %v2399_v7  ;;  %1154 = vst [vmem:[#allocation0 + $0xd0] sm:$0x3] %v2400_v9  ;;  %v2401_v11 = vld [vmem:[%s3620_s0 + $0x32] sm:$0x3]  ;;  %1813 = vrot.lane.b32.xlu0 %v1812_v10, %s2489_s10 }
  0xa4   :  { %v2402_v12 = vld [vmem:[%s3620_s0 + $0x30] sm:$0x3]  ;;  %v2363_v13 = vld [vmem:[%s3620_s0 + $0x7e] sm:$0x3]  ;;  %1159 = vst [vmem:[#allocation0 + $0xc8] sm:$0x3] %v2401_v11 }
  0xa5   :  { %v1821_v14 = vld [vmem:[#allocation0 + $0x781] ss:$8 sm:$0xf0]   ;;  %1164 = vst [vmem:[#allocation0 + $0xc0] sm:$0x3] %v2402_v12 }
  0xa6   :  { %969 = vst [vmem:[#allocation0 + $0x1f8] sm:$0x3] %v2363_v13  ;;  %v2364_v15 = vld [vmem:[%s3620_s0 + $0x7c] sm:$0x3]  ;;  %v2365_v16 = vld [vmem:[%s3620_s0 + $0x7a] sm:$0x3] }
  0xa7   :  { %974 = vst [vmem:[#allocation0 + $0x1f0] sm:$0x3] %v2364_v15  ;;  %v2366_v17 = vld [vmem:[%s3620_s0 + $0x78] sm:$0x3]  ;;  %v2367_v18 = vld [vmem:[%s3620_s0 + $0x76] sm:$0x3] }
  0xa8   :  { %v1819_v19 = vld [vmem:[#allocation0 + $0x781] ss:$8 sm:$0xf]   ;;  %979 = vst [vmem:[#allocation0 + $0x1e8] sm:$0x3] %v2365_v16 }
  0xa9   :  { %984 = vst [vmem:[#allocation0 + $0x1e0] sm:$0x3] %v2366_v17  ;;  %989 = vst [vmem:[#allocation0 + $0x1d8] sm:$0x3] %v2367_v18  ;;  %v2368_v20 = vld [vmem:[%s3620_s0 + $0x74] sm:$0x3]  ;;  %v1823_v21 = vsel %vm1283_vm0, %v1821_v14, %v1819_v19 }
  0xaa   :  { %994 = vst [vmem:[#allocation0 + $0x1d0] sm:$0x3] %v2368_v20  ;;  %v2369_v22 = vld [vmem:[%s3620_s0 + $0x72] sm:$0x3]  ;;  %v2370_v23 = vld [vmem:[%s3620_s0 + $0x70] sm:$0x3]  ;;  %1824 = vrot.lane.b32.xlu1 %v1823_v21, %s2489_s10 }
  0xab   :  { %v2331_v24 = vld [vmem:[%s3620_s0 + $0xbe] sm:$0x3]  ;;  %999 = vst [vmem:[#allocation0 + $0x1c8] sm:$0x3] %v2369_v22  ;;  %1004 = vst [vmem:[#allocation0 + $0x1c0] sm:$0x3] %v2370_v23 }
  0xac   :  { %809 = vst [vmem:[#allocation0 + $0x2f8] sm:$0x3] %v2331_v24  ;;  %v2332_v25 = vld [vmem:[%s3620_s0 + $0xbc] sm:$0x3]  ;;  %v2333_v26 = vld [vmem:[%s3620_s0 + $0xba] sm:$0x3] }
  0xad   :  { %v2334_v27 = vld [vmem:[%s3620_s0 + $0xb8] sm:$0x3]  ;;  %814 = vst [vmem:[#allocation0 + $0x2f0] sm:$0x3] %v2332_v25  ;;  %819 = vst [vmem:[#allocation0 + $0x2e8] sm:$0x3] %v2333_v26 }
  0xae   :  { %v1832_v28 = vld [vmem:[#allocation0 + $0xc1] ss:$8 sm:$0xf0]   ;;  %824 = vst [vmem:[#allocation0 + $0x2e0] sm:$0x3] %v2334_v27 }
  0xaf   :  { %v2335_v29 = vld [vmem:[%s3620_s0 + $0xb6] sm:$0x3]  ;;  %v2336_v30 = vld [vmem:[%s3620_s0 + $0xb4] sm:$0x3]  ;;  %v2337_v31 = vld [vmem:[%s3620_s0 + $0xb2] sm:$0x3] }
  0xb0   :  { %829 = vst [vmem:[#allocation0 + $0x2d8] sm:$0x3] %v2335_v29  ;;  %v2338_v32 = vld [vmem:[%s3620_s0 + $0xb0] sm:$0x3]  ;;  %834 = vst [vmem:[#allocation0 + $0x2d0] sm:$0x3] %v2336_v30 }
  0xb1   :  { %v1830_v33 = vld [vmem:[#allocation0 + $0xc1] ss:$8 sm:$0xf]   ;;  %839 = vst [vmem:[#allocation0 + $0x2c8] sm:$0x3] %v2337_v31 }
  0xb2   :  { %844 = vst [vmem:[#allocation0 + $0x2c0] sm:$0x3] %v2338_v32  ;;  %v2299_v34 = vld [vmem:[%s3620_s0 + $0xfe] sm:$0x3]  ;;  %v1834_v35 = vsel %vm1283_vm0, %v1832_v28, %v1830_v33  ;;  %v2300_v36 = vld [vmem:[%s3620_s0 + $0xfc] sm:$0x3]  ;;  %v1573_v28 = vpop.permute.xlu0 %1572  }
  0xb3   :  { %649 = vst [vmem:[#allocation0 + $0x3f8] sm:$0x3] %v2299_v34  ;;  %v2301_v37 = vld [vmem:[%s3620_s0 + $0xfa] sm:$0x3]  ;;  %v2302_v38 = vld [vmem:[%s3620_s0 + $0xf8] sm:$0x3]  ;;  %1835 = vrot.lane.b32.xlu0 %v1834_v35, %s2489_s10 }
  0xb4   :  { %v1843_v39 = vld [vmem:[#allocation0 + $0x1c1] ss:$8 sm:$0xf0]   ;;  %654 = vst [vmem:[#allocation0 + $0x3f0] sm:$0x3] %v2300_v36 }
  0xb5   :  { %659 = vst [vmem:[#allocation0 + $0x3e8] sm:$0x3] %v2301_v37  ;;  %664 = vst [vmem:[#allocation0 + $0x3e0] sm:$0x3] %v2302_v38  ;;  %v2303_v40 = vld [vmem:[%s3620_s0 + $0xf6] sm:$0x3]  ;;  %v1594_v37 = vpop.permute.xlu1 %1593  }
  0xb6   :  { %669 = vst [vmem:[#allocation0 + $0x3d8] sm:$0x3] %v2303_v40  ;;  %v2304_v41 = vld [vmem:[%s3620_s0 + $0xf4] sm:$0x3]  ;;  %v2305_v42 = vld [vmem:[%s3620_s0 + $0xf2] sm:$0x3] }
  0xb7   :  { %v2306_v43 = vld [vmem:[%s3620_s0 + $0xf0] sm:$0x3]  ;;  %674 = vst [vmem:[#allocation0 + $0x3d0] sm:$0x3] %v2304_v41  ;;  %679 = vst [vmem:[#allocation0 + $0x3c8] sm:$0x3] %v2305_v42 }
  0xb8   :  { %v1841_v44 = vld [vmem:[#allocation0 + $0x1c1] ss:$8 sm:$0xf]   ;;  %684 = vst [vmem:[#allocation0 + $0x3c0] sm:$0x3] %v2306_v43 }
  0xb9   :  { %v2267_v45 = vld [vmem:[%s3620_s0 + $0x13e] sm:$0x3]  ;;  %v1845_v46 = vsel %vm1283_vm0, %v1843_v39, %v1841_v44  ;;  %v1854_v47 = vld [vmem:[#allocation0 + $0x2c1] ss:$8 sm:$0xf0]  }
  0xba   :  { %489 = vst [vmem:[#allocation0 + $0x4f8] sm:$0x3] %v2267_v45  ;;  %v2268_v48 = vld [vmem:[%s3620_s0 + $0x13c] sm:$0x3]  ;;  %1846 = vrot.lane.b32.xlu1 %v1845_v46, %s2489_s10  ;;  %v2269_v49 = vld [vmem:[%s3620_s0 + $0x13a] sm:$0x3] }
  0xbb   :  { %494 = vst [vmem:[#allocation0 + $0x4f0] sm:$0x3] %v2268_v48  ;;  %v2270_v50 = vld [vmem:[%s3620_s0 + $0x138] sm:$0x3]  ;;  %v2271_v51 = vld [vmem:[%s3620_s0 + $0x136] sm:$0x3] }
  0xbc   :  { %v1852_v52 = vld [vmem:[#allocation0 + $0x2c1] ss:$8 sm:$0xf]   ;;  %499 = vst [vmem:[#allocation0 + $0x4e8] sm:$0x3] %v2269_v49 }
  0xbd   :  { %504 = vst [vmem:[#allocation0 + $0x4e0] sm:$0x3] %v2270_v50  ;;  %509 = vst [vmem:[#allocation0 + $0x4d8] sm:$0x3] %v2271_v51  ;;  %v2272_v53 = vld [vmem:[%s3620_s0 + $0x134] sm:$0x3]  ;;  %v1856_v54 = vsel %vm1283_vm0, %v1854_v47, %v1852_v52  ;;  %v1583_v47 = vpop.permute.xlu0 %1582  }
  0xbe   :  { %514 = vst [vmem:[#allocation0 + $0x4d0] sm:$0x3] %v2272_v53  ;;  %v2273_v55 = vld [vmem:[%s3620_s0 + $0x132] sm:$0x3]  ;;  %v2274_v56 = vld [vmem:[%s3620_s0 + $0x130] sm:$0x3]  ;;  %1857 = vrot.lane.b32.xlu0 %v1856_v54, %s2489_s10 }
  0xbf   :  { %v2235_v57 = vld [vmem:[%s3620_s0 + $0x17e] sm:$0x3]  ;;  %v1865_v58 = vld [vmem:[#allocation0 + $0x3c1] ss:$8 sm:$0xf0]  }
  0xc0   :  { %519 = vst [vmem:[#allocation0 + $0x4c8] sm:$0x3] %v2273_v55  ;;  %524 = vst [vmem:[#allocation0 + $0x4c0] sm:$0x3] %v2274_v56  ;;  %v2236_v59 = vld [vmem:[%s3620_s0 + $0x17c] sm:$0x3] }
  0xc1   :  { %329 = vst [vmem:[#allocation0 + $0x5f8] sm:$0x3] %v2235_v57  ;;  %334 = vst [vmem:[#allocation0 + $0x5f0] sm:$0x3] %v2236_v59  ;;  %v2237_v60 = vld [vmem:[%s3620_s0 + $0x17a] sm:$0x3]  ;;  %v1605_v59 = vpop.permute.xlu1 %1604  }
  0xc2   :  { %v2238_v61 = vld [vmem:[%s3620_s0 + $0x178] sm:$0x3]  ;;  %v2239_v62 = vld [vmem:[%s3620_s0 + $0x176] sm:$0x3]  ;;  %339 = vst [vmem:[#allocation0 + $0x5e8] sm:$0x3] %v2237_v60 }
  0xc3   :  { %v1863_v63 = vld [vmem:[#allocation0 + $0x3c1] ss:$8 sm:$0xf]   ;;  %344 = vst [vmem:[#allocation0 + $0x5e0] sm:$0x3] %v2238_v61 }
  0xc4   :  { %349 = vst [vmem:[#allocation0 + $0x5d8] sm:$0x3] %v2239_v62  ;;  %v2240_v0 = vld [vmem:[%s3620_s0 + $0x174] sm:$0x3]  ;;  %v1867_v1 = vsel %vm1283_vm0, %v1865_v58, %v1863_v63  ;;  %v2241_v2 = vld [vmem:[%s3620_s0 + $0x172] sm:$0x3] }
  0xc5   :  { %354 = vst [vmem:[#allocation0 + $0x5d0] sm:$0x3] %v2240_v0  ;;  %v2242_v3 = vld [vmem:[%s3620_s0 + $0x170] sm:$0x3]  ;;  %v2203_v4 = vld [vmem:[%s3620_s0 + $0x1be] sm:$0x3]  ;;  %1868 = vrot.lane.b32.xlu1 %v1867_v1, %s2489_s10 }
  0xc6   :  { %359 = vst [vmem:[#allocation0 + $0x5c8] sm:$0x3] %v2241_v2  ;;  %364 = vst [vmem:[#allocation0 + $0x5c0] sm:$0x3] %v2242_v3  ;;  %v2204_v5 = vld [vmem:[%s3620_s0 + $0x1bc] sm:$0x3] }
  0xc7   :  { %169 = vst [vmem:[#allocation0 + $0x6f8] sm:$0x3] %v2203_v4  ;;  %v2205_v6 = vld [vmem:[%s3620_s0 + $0x1ba] sm:$0x3]  ;;  %v2206_v7 = vld [vmem:[%s3620_s0 + $0x1b8] sm:$0x3] }
  0xc8   :  { %v1876_v8 = vld [vmem:[#allocation0 + $0x4c1] ss:$8 sm:$0xf0]   ;;  %174 = vst [vmem:[#allocation0 + $0x6f0] sm:$0x3] %v2204_v5 }
  0xc9   :  { %179 = vst [vmem:[#allocation0 + $0x6e8] sm:$0x3] %v2205_v6  ;;  %184 = vst [vmem:[#allocation0 + $0x6e0] sm:$0x3] %v2206_v7  ;;  %v2207_v9 = vld [vmem:[%s3620_s0 + $0x1b6] sm:$0x3] }
  0xca   :  { %189 = vst [vmem:[#allocation0 + $0x6d8] sm:$0x3] %v2207_v9  ;;  %v2208_v10 = vld [vmem:[%s3620_s0 + $0x1b4] sm:$0x3]  ;;  %v2209_v11 = vld [vmem:[%s3620_s0 + $0x1b2] sm:$0x3] }
  0xcb   :  { %v2210_v12 = vld [vmem:[%s3620_s0 + $0x1b0] sm:$0x3]  ;;  %194 = vst [vmem:[#allocation0 + $0x6d0] sm:$0x3] %v2208_v10  ;;  %199 = vst [vmem:[#allocation0 + $0x6c8] sm:$0x3] %v2209_v11  ;;  %v1616_v11 = vpop.permute.xlu0 %1615  }
  0xcc   :  { %v1874_v13 = vld [vmem:[#allocation0 + $0x4c1] ss:$8 sm:$0xf]   ;;  %204 = vst [vmem:[#allocation0 + $0x6c0] sm:$0x3] %v2210_v12 }
  0xcd   :  { %v2171_v14 = vld [vmem:[%s3620_s0 + $0x1fe] sm:$0x3]  ;;  %v1878_v15 = vsel %vm1283_vm0, %v1876_v8, %v1874_v13  ;;  %v2172_v16 = vld [vmem:[%s3620_s0 + $0x1fc] sm:$0x3]  ;;  %v2173_v17 = vld [vmem:[%s3620_s0 + $0x1fa] sm:$0x3] }
  0xce   :  { %9 = vst [vmem:[#allocation0 + $0x7f8] sm:$0x3] %v2171_v14  ;;  %v2174_v18 = vld [vmem:[%s3620_s0 + $0x1f8] sm:$0x3]  ;;  %1879 = vrot.lane.b32.xlu0 %v1878_v15, %s2489_s10  ;;  %14 = vst [vmem:[#allocation0 + $0x7f0] sm:$0x3] %v2172_v16 }
  0xcf   :  { %v1887_v19 = vld [vmem:[#allocation0 + $0x5c1] ss:$8 sm:$0xf0]   ;;  %19 = vst [vmem:[#allocation0 + $0x7e8] sm:$0x3] %v2173_v17 }
  0xd0   :  { %24 = vst [vmem:[#allocation0 + $0x7e0] sm:$0x3] %v2174_v18  ;;  %v2175_v20 = vld [vmem:[%s3620_s0 + $0x1f6] sm:$0x3]  ;;  %v2176_v21 = vld [vmem:[%s3620_s0 + $0x1f4] sm:$0x3] }
  0xd1   :  { %29 = vst [vmem:[#allocation0 + $0x7d8] sm:$0x3] %v2175_v20  ;;  %v2177_v22 = vld [vmem:[%s3620_s0 + $0x1f2] sm:$0x3]  ;;  %v2178_v23 = vld [vmem:[%s3620_s0 + $0x1f0] sm:$0x3] }
  0xd2   :  { %v1885_v24 = vld [vmem:[#allocation0 + $0x5c1] ss:$8 sm:$0xf]   ;;  %34 = vst [vmem:[#allocation0 + $0x7d0] sm:$0x3] %v2176_v21 }
  0xd3   :  { %39 = vst [vmem:[#allocation0 + $0x7c8] sm:$0x3] %v2177_v22  ;;  %44 = vst [vmem:[#allocation0 + $0x7c0] sm:$0x3] %v2178_v23  ;;  %v1889_v26 = vsel %vm1283_vm0, %v1887_v19, %v1885_v24  ;;  %v1627_v24 = vpop.permute.xlu1 %1626  }
  0xd4   :  { %v1281_v25 = vld [vmem:[#allocation0] ss:$8 sm:$0xf]   ;;  %v1898_v27 = vld [vmem:[#allocation0 + $0x6c1] ss:$8 sm:$0xf0]   ;;  %1890 = vrot.lane.b32.xlu1 %v1889_v26, %s2489_s10 }
  0xd5   :  { %v1282_v29 = vld [vmem:[#allocation0] ss:$8 sm:$0xf0]   ;;  %v1896_v33 = vld [vmem:[#allocation0 + $0x6c1] ss:$8 sm:$0xf]  }
  0xd6   :  { %v1284_v30 = vsel %vm1283_vm0, %v1282_v29, %v1281_v25  ;;  %v1351_v31 = vld [vmem:[#allocation0 + $0x200] ss:$8 sm:$0xf]   ;;  %v1900_v36 = vsel %vm1283_vm0, %v1898_v27, %v1896_v33 }
  0xd7   :  { %v1353_v32 = vld [vmem:[#allocation0 + $0x200] ss:$8 sm:$0xf0]   ;;  %1286 = vst.msk [vmem:[%s3621_s1] sm:$0xff] %vm1285_vm1, %v1284_v30   ;;  %1901 = vrot.lane.b32.xlu0 %v1900_v36, %s2489_s10 }
  0xd8   :  { %v1355_v34 = vsel %vm1283_vm0, %v1353_v32, %v1351_v31  ;;  %v1315_v35 = vld [vmem:[#allocation0 + $0x100] ss:$8 sm:$0xf]   ;;  %1575 = vst.msk [vmem:[%s3621_s1] sm:$0xff] %vm1574_vm2, %v1573_v28  }
  0xd9   :  { %2433 = vst.msk [vmem:[%s3621_s1 + $0x40] sm:$0xff] %vm1285_vm1, %v1355_v34   ;;  %v1317_v38 = vld [vmem:[#allocation0 + $0x100] ss:$8 sm:$0xf0]   ;;  %v1638_v34 = vpop.permute.xlu0 %1637  }
  0xda   :  { %v1387_v39 = vld [vmem:[#allocation0 + $0x300] ss:$8 sm:$0xf]   ;;  %v1909_v40 = vld [vmem:[#allocation0 + $0x7c1] ss:$8 sm:$0xf0]   ;;  %v1319_v41 = vsel %vm1283_vm0, %v1317_v38, %v1315_v35 }
  0xdb   :  { %2458 = vst.msk [vmem:[%s3621_s1 + $0x40] sm:$0xff] %vm1574_vm2, %v1594_v37   ;;  %v1389_v42 = vld [vmem:[#allocation0 + $0x300] ss:$8 sm:$0xf0]  }
  0xdc   :  { %2429 = vst.msk [vmem:[%s3621_s1 + $0x20] sm:$0xff] %vm1285_vm1, %v1319_v41   ;;  %v1391_v43 = vsel %vm1283_vm0, %v1389_v42, %v1387_v39  ;;  %v1423_v44 = vld [vmem:[#allocation0 + $0x400] ss:$8 sm:$0xf]  }
  0xdd   :  { %v1425_v45 = vld [vmem:[#allocation0 + $0x400] ss:$8 sm:$0xf0]   ;;  %v1907_v46 = vld [vmem:[#allocation0 + $0x7c1] ss:$8 sm:$0xf]  }
  0xde   :  { %2437 = vst.msk [vmem:[%s3621_s1 + $0x60] sm:$0xff] %vm1285_vm1, %v1391_v43   ;;  %v1427_v48 = vsel %vm1283_vm0, %v1425_v45, %v1423_v44  ;;  %v1459_v49 = vld [vmem:[#allocation0 + $0x500] ss:$8 sm:$0xf]   ;;  %v1911_v50 = vsel %vm1283_vm0, %v1909_v40, %v1907_v46 }
  0xdf   :  { %2457 = vst.msk [vmem:[%s3621_s1 + $0x20] sm:$0xff] %vm1574_vm2, %v1583_v47   ;;  %v1461_v51 = vld [vmem:[#allocation0 + $0x500] ss:$8 sm:$0xf0]   ;;  %1912 = vrot.lane.b32.xlu1 %v1911_v50, %s2489_s10  ;;  %2459 = vst.msk [vmem:[%s3621_s1 + $0x60] sm:$0xff] %vm1574_vm2, %v1605_v59   ;;  %v1649_v47 = vpop.permute.xlu1 %1648  }
  0xe0   :  { %2441 = vst.msk [vmem:[%s3621_s1 + $0x80] sm:$0xff] %vm1285_vm1, %v1427_v48   ;;  %v1495_v52 = vld [vmem:[#allocation0 + $0x600] ss:$8 sm:$0xf]   ;;  %v1463_v53 = vsel %vm1283_vm0, %v1461_v51, %v1459_v49 }
  0xe1   :  { %v1497_v54 = vld [vmem:[#allocation0 + $0x600] ss:$8 sm:$0xf0]   ;;  %2445 = vst.msk [vmem:[%s3621_s1 + $0xa0] sm:$0xff] %vm1285_vm1, %v1463_v53  }
  0xe2   :  { %v1531_v55 = vld [vmem:[#allocation0 + $0x700] ss:$8 sm:$0xf]   ;;  %v1499_v56 = vsel %vm1283_vm0, %v1497_v54, %v1495_v52  ;;  %2460 = vst.msk [vmem:[%s3621_s1 + $0x80] sm:$0xff] %vm1574_vm2, %v1616_v11   ;;  %2461 = vst.msk [vmem:[%s3621_s1 + $0xa0] sm:$0xff] %vm1574_vm2, %v1627_v24  }
  0xe3   :  { %v1533_v57 = vld [vmem:[#allocation0 + $0x700] ss:$8 sm:$0xf0]   ;;  %2449 = vst.msk [vmem:[%s3621_s1 + $0xc0] sm:$0xff] %vm1285_vm1, %v1499_v56  }
  0xe4   :  { %v1288_v58 = vld [vmem:[#allocation0 + $0x40] ss:$8 sm:$0xf]   ;;  %v1535_v60 = vsel %vm1283_vm0, %v1533_v57, %v1531_v55  ;;  %2462 = vst.msk [vmem:[%s3621_s1 + $0xc0] sm:$0xff] %vm1574_vm2, %v1638_v34  }
  0xe5   :  { %v1290_v61 = vld [vmem:[#allocation0 + $0x40] ss:$8 sm:$0xf0]   ;;  %2453 = vst.msk [vmem:[%s3621_s1 + $0xe0] sm:$0xff] %vm1285_vm1, %v1535_v60  }
  0xe6   :  { %v1324_v62 = vld [vmem:[#allocation0 + $0x140] ss:$8 sm:$0xf]   ;;  %v1292_v63 = vsel %vm1283_vm0, %v1290_v61, %v1288_v58  ;;  %2463 = vst.msk [vmem:[%s3621_s1 + $0xe0] sm:$0xff] %vm1574_vm2, %v1649_v47  }
  0xe7   :  { %v1326_v0 = vld [vmem:[#allocation0 + $0x140] ss:$8 sm:$0xf0]   ;;  %2426 = vst.msk [vmem:[%s3621_s1 + $0x8] sm:$0xff] %vm1285_vm1, %v1292_v63   ;;  %v1660_v63 = vpop.permute.xlu0 %1659  }
  0xe8   :  { %v1360_v1 = vld [vmem:[#allocation0 + $0x240] ss:$8 sm:$0xf]   ;;  %v1328_v2 = vsel %vm1283_vm0, %v1326_v0, %v1324_v62  ;;  %2464 = vst.msk [vmem:[%s3621_s1 + $0x8] sm:$0xff] %vm1574_vm2, %v1660_v63  }
  0xe9   :  { %v1362_v3 = vld [vmem:[#allocation0 + $0x240] ss:$8 sm:$0xf0]   ;;  %2430 = vst.msk [vmem:[%s3621_s1 + $0x28] sm:$0xff] %vm1285_vm1, %v1328_v2  }
  0xea   :  { %v1396_v4 = vld [vmem:[#allocation0 + $0x340] ss:$8 sm:$0xf]   ;;  %v1364_v5 = vsel %vm1283_vm0, %v1362_v3, %v1360_v1 }
  0xeb   :  { %v1398_v6 = vld [vmem:[#allocation0 + $0x340] ss:$8 sm:$0xf0]   ;;  %2434 = vst.msk [vmem:[%s3621_s1 + $0x48] sm:$0xff] %vm1285_vm1, %v1364_v5  }
  0xec   :  { %v1432_v7 = vld [vmem:[#allocation0 + $0x440] ss:$8 sm:$0xf]   ;;  %v1400_v8 = vsel %vm1283_vm0, %v1398_v6, %v1396_v4 }
  0xed   :  { %v1434_v9 = vld [vmem:[#allocation0 + $0x440] ss:$8 sm:$0xf0]   ;;  %2438 = vst.msk [vmem:[%s3621_s1 + $0x68] sm:$0xff] %vm1285_vm1, %v1400_v8  }
  0xee   :  { %v1468_v10 = vld [vmem:[#allocation0 + $0x540] ss:$8 sm:$0xf]   ;;  %v1436_v12 = vsel %vm1283_vm0, %v1434_v9, %v1432_v7  ;;  %v1671_v9 = vpop.permute.xlu1 %1670  }
  0xef   :  { %v1470_v13 = vld [vmem:[#allocation0 + $0x540] ss:$8 sm:$0xf0]   ;;  %2442 = vst.msk [vmem:[%s3621_s1 + $0x88] sm:$0xff] %vm1285_vm1, %v1436_v12  }
  0xf0   :  { %v1504_v14 = vld [vmem:[#allocation0 + $0x640] ss:$8 sm:$0xf]   ;;  %v1472_v15 = vsel %vm1283_vm0, %v1470_v13, %v1468_v10  ;;  %2465 = vst.msk [vmem:[%s3621_s1 + $0x28] sm:$0xff] %vm1574_vm2, %v1671_v9   ;;  %v1682_v10 = vpop.permute.xlu0 %1681  }
  0xf1   :  { %v1506_v16 = vld [vmem:[#allocation0 + $0x640] ss:$8 sm:$0xf0]   ;;  %2446 = vst.msk [vmem:[%s3621_s1 + $0xa8] sm:$0xff] %vm1285_vm1, %v1472_v15  }
  0xf2   :  { %v1540_v17 = vld [vmem:[#allocation0 + $0x740] ss:$8 sm:$0xf]   ;;  %v1508_v18 = vsel %vm1283_vm0, %v1506_v16, %v1504_v14  ;;  %2466 = vst.msk [vmem:[%s3621_s1 + $0x48] sm:$0xff] %vm1574_vm2, %v1682_v10   ;;  %v1693_v11 = vpop.permute.xlu1 %1692  }
  0xf3   :  { %v1542_v19 = vld [vmem:[#allocation0 + $0x740] ss:$8 sm:$0xf0]   ;;  %2450 = vst.msk [vmem:[%s3621_s1 + $0xc8] sm:$0xff] %vm1285_vm1, %v1508_v18  }
  0xf4   :  { %v1297_v20 = vld [vmem:[#allocation0 + $0x80] ss:$8 sm:$0xf]   ;;  %v1544_v21 = vsel %vm1283_vm0, %v1542_v19, %v1540_v17  ;;  %2467 = vst.msk [vmem:[%s3621_s1 + $0x68] sm:$0xff] %vm1574_vm2, %v1693_v11   ;;  %v1704_v12 = vpop.permute.xlu0 %1703  }
  0xf5   :  { %v1299_v22 = vld [vmem:[#allocation0 + $0x80] ss:$8 sm:$0xf0]   ;;  %2454 = vst.msk [vmem:[%s3621_s1 + $0xe8] sm:$0xff] %vm1285_vm1, %v1544_v21  }
  0xf6   :  { %v1333_v23 = vld [vmem:[#allocation0 + $0x180] ss:$8 sm:$0xf]   ;;  %v1301_v25 = vsel %vm1283_vm0, %v1299_v22, %v1297_v20  ;;  %2468 = vst.msk [vmem:[%s3621_s1 + $0x88] sm:$0xff] %vm1574_vm2, %v1704_v12   ;;  %v1715_v13 = vpop.permute.xlu1 %1714  }
  0xf7   :  { %v1335_v26 = vld [vmem:[#allocation0 + $0x180] ss:$8 sm:$0xf0]   ;;  %2427 = vst.msk [vmem:[%s3621_s1 + $0x10] sm:$0xff] %vm1285_vm1, %v1301_v25  }
  0xf8   :  { %v1369_v27 = vld [vmem:[#allocation0 + $0x280] ss:$8 sm:$0xf]   ;;  %v1337_v28 = vsel %vm1283_vm0, %v1335_v26, %v1333_v23  ;;  %2469 = vst.msk [vmem:[%s3621_s1 + $0xa8] sm:$0xff] %vm1574_vm2, %v1715_v13   ;;  %v1726_v14 = vpop.permute.xlu0 %1725  }
  0xf9   :  { %v1371_v29 = vld [vmem:[#allocation0 + $0x280] ss:$8 sm:$0xf0]   ;;  %2431 = vst.msk [vmem:[%s3621_s1 + $0x30] sm:$0xff] %vm1285_vm1, %v1337_v28  }
  0xfa   :  { %v1405_v30 = vld [vmem:[#allocation0 + $0x380] ss:$8 sm:$0xf]   ;;  %v1373_v31 = vsel %vm1283_vm0, %v1371_v29, %v1369_v27  ;;  %2470 = vst.msk [vmem:[%s3621_s1 + $0xc8] sm:$0xff] %vm1574_vm2, %v1726_v14   ;;  %v1737_v15 = vpop.permute.xlu1 %1736  }
  0xfb   :  { %v1407_v32 = vld [vmem:[#allocation0 + $0x380] ss:$8 sm:$0xf0]   ;;  %2435 = vst.msk [vmem:[%s3621_s1 + $0x50] sm:$0xff] %vm1285_vm1, %v1373_v31  }
  0xfc   :  { %v1441_v33 = vld [vmem:[#allocation0 + $0x480] ss:$8 sm:$0xf]   ;;  %v1409_v35 = vsel %vm1283_vm0, %v1407_v32, %v1405_v30  ;;  %2471 = vst.msk [vmem:[%s3621_s1 + $0xe8] sm:$0xff] %vm1574_vm2, %v1737_v15   ;;  %v1748_v16 = vpop.permute.xlu0 %1747  }
  0xfd   :  { %v1443_v36 = vld [vmem:[#allocation0 + $0x480] ss:$8 sm:$0xf0]   ;;  %2439 = vst.msk [vmem:[%s3621_s1 + $0x70] sm:$0xff] %vm1285_vm1, %v1409_v35  }
  0xfe   :  { %v1477_v37 = vld [vmem:[#allocation0 + $0x580] ss:$8 sm:$0xf]   ;;  %v1445_v38 = vsel %vm1283_vm0, %v1443_v36, %v1441_v33  ;;  %2472 = vst.msk [vmem:[%s3621_s1 + $0x10] sm:$0xff] %vm1574_vm2, %v1748_v16   ;;  %v1759_v17 = vpop.permute.xlu1 %1758  }
  0xff   :  { %v1479_v39 = vld [vmem:[#allocation0 + $0x580] ss:$8 sm:$0xf0]   ;;  %2443 = vst.msk [vmem:[%s3621_s1 + $0x90] sm:$0xff] %vm1285_vm1, %v1445_v38  }
 0x100   :  { %v1513_v40 = vld [vmem:[#allocation0 + $0x680] ss:$8 sm:$0xf]   ;;  %v1481_v41 = vsel %vm1283_vm0, %v1479_v39, %v1477_v37  ;;  %2473 = vst.msk [vmem:[%s3621_s1 + $0x30] sm:$0xff] %vm1574_vm2, %v1759_v17   ;;  %v1770_v18 = vpop.permute.xlu0 %1769  }
 0x101   :  { %v1515_v42 = vld [vmem:[#allocation0 + $0x680] ss:$8 sm:$0xf0]   ;;  %2447 = vst.msk [vmem:[%s3621_s1 + $0xb0] sm:$0xff] %vm1285_vm1, %v1481_v41  }
 0x102   :  { %v1549_v43 = vld [vmem:[#allocation0 + $0x780] ss:$8 sm:$0xf]   ;;  %v1517_v44 = vsel %vm1283_vm0, %v1515_v42, %v1513_v40  ;;  %2474 = vst.msk [vmem:[%s3621_s1 + $0x50] sm:$0xff] %vm1574_vm2, %v1770_v18   ;;  %v1781_v19 = vpop.permute.xlu1 %1780  }
 0x103   :  { %v1551_v45 = vld [vmem:[#allocation0 + $0x780] ss:$8 sm:$0xf0]   ;;  %2451 = vst.msk [vmem:[%s3621_s1 + $0xd0] sm:$0xff] %vm1285_vm1, %v1517_v44  }
 0x104   :  { %v1306_v46 = vld [vmem:[#allocation0 + $0xc0] ss:$8 sm:$0xf]   ;;  %v1553_v48 = vsel %vm1283_vm0, %v1551_v45, %v1549_v43  ;;  %2475 = vst.msk [vmem:[%s3621_s1 + $0x70] sm:$0xff] %vm1574_vm2, %v1781_v19  }
 0x105   :  { %v1308_v49 = vld [vmem:[#allocation0 + $0xc0] ss:$8 sm:$0xf0]   ;;  %2455 = vst.msk [vmem:[%s3621_s1 + $0xf0] sm:$0xff] %vm1285_vm1, %v1553_v48  }
 0x106   :  { %v1342_v50 = vld [vmem:[#allocation0 + $0x1c0] ss:$8 sm:$0xf]   ;;  %v1310_v51 = vsel %vm1283_vm0, %v1308_v49, %v1306_v46 }
 0x107   :  { %v1344_v52 = vld [vmem:[#allocation0 + $0x1c0] ss:$8 sm:$0xf0]   ;;  %2428 = vst.msk [vmem:[%s3621_s1 + $0x18] sm:$0xff] %vm1285_vm1, %v1310_v51  }
 0x108   :  { %v1378_v53 = vld [vmem:[#allocation0 + $0x2c0] ss:$8 sm:$0xf]   ;;  %v1346_v54 = vsel %vm1283_vm0, %v1344_v52, %v1342_v50 }
 0x109   :  { %v1380_v55 = vld [vmem:[#allocation0 + $0x2c0] ss:$8 sm:$0xf0]   ;;  %2432 = vst.msk [vmem:[%s3621_s1 + $0x38] sm:$0xff] %vm1285_vm1, %v1346_v54  }
 0x10a   :  { %v1414_v56 = vld [vmem:[#allocation0 + $0x3c0] ss:$8 sm:$0xf]   ;;  %v1382_v57 = vsel %vm1283_vm0, %v1380_v55, %v1378_v53  ;;  %v1792_v20 = vpop.permute.xlu0 %1791  }
 0x10b   :  { %v1416_v58 = vld [vmem:[#allocation0 + $0x3c0] ss:$8 sm:$0xf0]   ;;  %2436 = vst.msk [vmem:[%s3621_s1 + $0x58] sm:$0xff] %vm1285_vm1, %v1382_v57  }
 0x10c   :  { %v1450_v59 = vld [vmem:[#allocation0 + $0x4c0] ss:$8 sm:$0xf]   ;;  %v1418_v60 = vsel %vm1283_vm0, %v1416_v58, %v1414_v56  ;;  %2476 = vst.msk [vmem:[%s3621_s1 + $0x90] sm:$0xff] %vm1574_vm2, %v1792_v20  }
 0x10d   :  { %v1452_v61 = vld [vmem:[#allocation0 + $0x4c0] ss:$8 sm:$0xf0]   ;;  %2440 = vst.msk [vmem:[%s3621_s1 + $0x78] sm:$0xff] %vm1285_vm1, %v1418_v60  }
 0x10e   :  { %v1486_v62 = vld [vmem:[#allocation0 + $0x5c0] ss:$8 sm:$0xf]   ;;  %v1454_v0 = vsel %vm1283_vm0, %v1452_v61, %v1450_v59 }
 0x10f   :  { %v1488_v1 = vld [vmem:[#allocation0 + $0x5c0] ss:$8 sm:$0xf0]   ;;  %2444 = vst.msk [vmem:[%s3621_s1 + $0x98] sm:$0xff] %vm1285_vm1, %v1454_v0  }
 0x110   :  { %v1522_v2 = vld [vmem:[#allocation0 + $0x6c0] ss:$8 sm:$0xf]   ;;  %v1490_v3 = vsel %vm1283_vm0, %v1488_v1, %v1486_v62 }
 0x111   :  { %v1524_v4 = vld [vmem:[#allocation0 + $0x6c0] ss:$8 sm:$0xf0]   ;;  %2448 = vst.msk [vmem:[%s3621_s1 + $0xb8] sm:$0xff] %vm1285_vm1, %v1490_v3   ;;  %v1803_v21 = vpop.permute.xlu1 %1802  }
 0x112   :  { %v1558_v5 = vld [vmem:[#allocation0 + $0x7c0] ss:$8 sm:$0xf]   ;;  %v1526_v6 = vsel %vm1283_vm0, %v1524_v4, %v1522_v2  ;;  %2477 = vst.msk [vmem:[%s3621_s1 + $0xb0] sm:$0xff] %vm1574_vm2, %v1803_v21  }
 0x113   :  { %v1560_v7 = vld [vmem:[#allocation0 + $0x7c0] ss:$8 sm:$0xf0]   ;;  %2452 = vst.msk [vmem:[%s3621_s1 + $0xd8] sm:$0xff] %vm1285_vm1, %v1526_v6  }
 0x114   :  { %v1562_v8 = vsel %vm1283_vm0, %v1560_v7, %v1558_v5 }
 0x115   :  { %2456 = vst.msk [vmem:[%s3621_s1 + $0xf8] sm:$0xff] %vm1285_vm1, %v1562_v8   ;;  %v1814_v22 = vpop.permute.xlu0 %1813  }
 0x116   :  { %2478 = vst.msk [vmem:[%s3621_s1 + $0xd0] sm:$0xff] %vm1574_vm2, %v1814_v22  }
 0x11c   :  { %v1825_v23 = vpop.permute.xlu1 %1824  }
 0x11d   :  { %2479 = vst.msk [vmem:[%s3621_s1 + $0xf0] sm:$0xff] %vm1574_vm2, %v1825_v23  }
 0x125   :  { %v1836_v24 = vpop.permute.xlu0 %1835  }
 0x126   :  { %2480 = vst.msk [vmem:[%s3621_s1 + $0x18] sm:$0xff] %vm1574_vm2, %v1836_v24  }
 0x12c   :  { %v1847_v25 = vpop.permute.xlu1 %1846  }
 0x12d   :  { %2481 = vst.msk [vmem:[%s3621_s1 + $0x38] sm:$0xff] %vm1574_vm2, %v1847_v25  }
 0x130   :  { %v1858_v26 = vpop.permute.xlu0 %1857  }
 0x131   :  { %2482 = vst.msk [vmem:[%s3621_s1 + $0x58] sm:$0xff] %vm1574_vm2, %v1858_v26  }
 0x137   :  { %v1869_v27 = vpop.permute.xlu1 %1868  }
 0x138   :  { %2483 = vst.msk [vmem:[%s3621_s1 + $0x78] sm:$0xff] %vm1574_vm2, %v1869_v27  }
 0x140   :  { %v1880_v28 = vpop.permute.xlu0 %1879  }
 0x141   :  { %2484 = vst.msk [vmem:[%s3621_s1 + $0x98] sm:$0xff] %vm1574_vm2, %v1880_v28  }
 0x146   :  { %v1891_v29 = vpop.permute.xlu1 %1890  }
 0x147   :  { %2485 = vst.msk [vmem:[%s3621_s1 + $0xb8] sm:$0xff] %vm1574_vm2, %v1891_v29  }
 0x149   :  { %v1902_v30 = vpop.permute.xlu0 %1901  }
 0x14a   :  { %2486 = vst.msk [vmem:[%s3621_s1 + $0xd8] sm:$0xff] %vm1574_vm2, %v1902_v30  }
 0x151   :  { %v1913_v31 = vpop.permute.xlu1 %1912  }
 0x152   :  { %2487 = vst.msk [vmem:[%s3621_s1 + $0xf8] sm:$0xff] %vm1574_vm2, %v1913_v31  }

// kernel: tile.34
= control target key start
LH: loop header
LB: loop body
LE: loop exit
PB: predicated region body
PF: predicated region fallthrough
CT: control target
= control target key end

     0   :  { %vm83_vm0 = vcmask 1047556   ;;  %vm85_vm1 = vcmask 523264   ;;  %vm104_vm2 = vcmask 1048064   ;;  %s226_s0 = inlined_call_operand.vmem [shape: f32[16,2,64], index: 0, kind: input, shape index: {}]   ;;  %s227_s1 = inlined_call_operand.vmem [shape: f32[16,128], index: 1, kind: output, shape index: {}]  }
   0x1   :  { %v139_v0 = vld [vmem:[%s226_s0 + $0xe] sm:$0x3]  ;;  %v140_v1 = vld [vmem:[%s226_s0 + $0xc] sm:$0x3]  ;;  %v141_v2 = vld [vmem:[%s226_s0 + $0xa] sm:$0x3] }
   0x2   :  { %49 = vst [vmem:[#allocation0 + $0x38] sm:$0x3] %v139_v0  ;;  %54 = vst [vmem:[#allocation0 + $0x30] sm:$0x3] %v140_v1  ;;  %v142_v3 = vld [vmem:[%s226_s0 + $0x8] sm:$0x3] }
   0x3   :  { %59 = vst [vmem:[#allocation0 + $0x28] sm:$0x3] %v141_v2  ;;  %v143_v4 = vld [vmem:[%s226_s0 + $0x6] sm:$0x3]  ;;  %v144_v5 = vld [vmem:[%s226_s0 + $0x4] sm:$0x3] }
   0x4   :  { %64 = vst [vmem:[#allocation0 + $0x20] sm:$0x3] %v142_v3  ;;  %69 = vst [vmem:[#allocation0 + $0x18] sm:$0x3] %v143_v4  ;;  %v145_v6 = vld [vmem:[%s226_s0 + $0x2] sm:$0x3] }
   0x5   :  { %74 = vst [vmem:[#allocation0 + $0x10] sm:$0x3] %v144_v5  ;;  %v79_v7 = vld [vmem:[%s226_s0] sm:$0x3]  ;;  %78 = vst [vmem:[#allocation0 + $0x8] sm:$0x3] %v145_v6 }
   0x6   :  { %80 = vst [vmem:[#allocation0] sm:$0x3] %v79_v7  ;;  %v131_v8 = vld [vmem:[%s226_s0 + $0x1e] sm:$0x3]  ;;  %v132_v9 = vld [vmem:[%s226_s0 + $0x1c] sm:$0x3] }
   0x7   :  { %v133_v10 = vld [vmem:[%s226_s0 + $0x1a] sm:$0x3]  ;;  %9 = vst [vmem:[#allocation0 + $0x78] sm:$0x3] %v131_v8  ;;  %14 = vst [vmem:[#allocation0 + $0x70] sm:$0x3] %v132_v9 }
   0x8   :  { %19 = vst [vmem:[#allocation0 + $0x68] sm:$0x3] %v133_v10  ;;  %v134_v11 = vld [vmem:[%s226_s0 + $0x18] sm:$0x3]  ;;  %v135_v12 = vld [vmem:[%s226_s0 + $0x16] sm:$0x3] }
   0x9   :  { %v136_v13 = vld [vmem:[%s226_s0 + $0x14] sm:$0x3]  ;;  %24 = vst [vmem:[#allocation0 + $0x60] sm:$0x3] %v134_v11  ;;  %29 = vst [vmem:[#allocation0 + $0x58] sm:$0x3] %v135_v12 }
   0xa   :  { %34 = vst [vmem:[#allocation0 + $0x50] sm:$0x3] %v136_v13  ;;  %v137_v14 = vld [vmem:[%s226_s0 + $0x12] sm:$0x3]  ;;  %v138_v15 = vld [vmem:[%s226_s0 + $0x10] sm:$0x3] }
   0xb   :  { %39 = vst [vmem:[#allocation0 + $0x48] sm:$0x3] %v137_v14  ;;  %44 = vst [vmem:[#allocation0 + $0x40] sm:$0x3] %v138_v15  ;;  %s149_s0 = smov 64  }
   0xc   :  { %v99_v16 = vld [vmem:[#allocation0 + $0x1] ss:$8 sm:$0xf0]   ;;  %v82_v17 = vld [vmem:[#allocation0] ss:$8 sm:$0xf0]  }
   0xd   :  { %v97_v18 = vld [vmem:[#allocation0 + $0x1] ss:$8 sm:$0xf]   ;;  %v81_v19 = vld [vmem:[#allocation0] ss:$8 sm:$0xf]  }
   0xe   :  { %v101_v20 = vsel %vm83_vm0, %v99_v16, %v97_v18  ;;  %v84_v21 = vsel %vm83_vm0, %v82_v17, %v81_v19 }
   0xf   :  { %102 = vrot.lane.b32.xlu0 %v101_v20, %s149_s0  ;;  %86 = vst.msk [vmem:[%s227_s1] sm:$0xff] %vm85_vm1, %v84_v21  }
  0x10   :  { %v109_v22 = vld [vmem:[#allocation0 + $0x41] ss:$8 sm:$0xf0]   ;;  %v90_v23 = vld [vmem:[#allocation0 + $0x40] ss:$8 sm:$0xf0]  }
  0x12   :  { %v107_v24 = vld [vmem:[#allocation0 + $0x41] ss:$8 sm:$0xf]   ;;  %v88_v25 = vld [vmem:[#allocation0 + $0x40] ss:$8 sm:$0xf]  }
  0x13   :  { %v111_v26 = vsel %vm83_vm0, %v109_v22, %v107_v24  ;;  %v92_v27 = vsel %vm83_vm0, %v90_v23, %v88_v25 }
  0x14   :  { %146 = vst.msk [vmem:[%s227_s1 + $0x8] sm:$0xff] %vm85_vm1, %v92_v27   ;;  %112 = vrot.lane.b32.xlu0 %v111_v26, %s149_s0 }
  0x81   :  { %v103_v28 = vpop.permute.xlu0 %102  }
  0x82   :  { %105 = vst.msk [vmem:[%s227_s1] sm:$0xff] %vm104_vm2, %v103_v28  }
  0x86   :  { %v113_v29 = vpop.permute.xlu0 %112  }
  0x87   :  { %147 = vst.msk [vmem:[%s227_s1 + $0x8] sm:$0xff] %vm104_vm2, %v113_v29  }

// kernel: tile.44
= control target key start
LH: loop header
LB: loop body
LE: loop exit
PB: predicated region body
PF: predicated region fallthrough
CT: control target
= control target key end

     0   :  { %vm22_vm0 = vcmask 523264   ;;  %vm28_vm1 = vcmask 1048064   ;;  %s70_s0 = inlined_call_operand.vmem [shape: f32[4,2,64], index: 0, kind: input, shape index: {}]   ;;  %s71_s1 = inlined_call_operand.vmem [shape: f32[4,128], index: 1, kind: output, shape index: {}]  }
   0x1   :  { %v40_v0 = vld [vmem:[%s70_s0 + $0x6] sm:$0x3]  ;;  %v41_v1 = vld [vmem:[%s70_s0 + $0x4] sm:$0x3]  ;;  %v42_v2 = vld [vmem:[%s70_s0 + $0x2] sm:$0x3] }
   0x2   :  { %9 = vst [vmem:[#allocation1 + $0x18] sm:$0x3] %v40_v0  ;;  %14 = vst [vmem:[#allocation1 + $0x10] sm:$0x3] %v41_v1  ;;  %v19_v3 = vld [vmem:[%s70_s0] sm:$0x3] }
   0x3   :  { %18 = vst [vmem:[#allocation1 + $0x8] sm:$0x3] %v42_v2  ;;  %20 = vst [vmem:[#allocation1] sm:$0x3] %v19_v3  ;;  %s44_s0 = smov 64  }
   0xa   :  { %v25_v4 = vld [vmem:[#allocation1 + $0x1] ss:$8 sm:$0xf]   ;;  %v21_v5 = vld [vmem:[#allocation1] ss:$8 sm:$0xf]  }
   0xb   :  { %26 = vrot.lane.b32.xlu0 %v25_v4, %s44_s0  ;;  %23 = vst.msk [vmem:[#allocation0] sm:$0xf] %vm22_vm0, %v21_v5  }
  0x7d   :  { %v27_v6 = vpop.permute.xlu0 %26  }
  0x7e   :  { %29 = vst.msk [vmem:[#allocation0] sm:$0xf] %vm28_vm1, %v27_v6  }
  0x85   :  { %v34_v7 = vld [vmem:[#allocation0] sm:$0xf] }
  0x86   :  { %37 = vst [vmem:[%s71_s1] sm:$0xf] %v34_v7 }

// kernel: mamba_pallas.1
= control target key start
LH: loop header
LB: loop body
LE: loop exit
PB: predicated region body
PF: predicated region fallthrough
CT: control target
= control target key end

     0   :  { %vm43_vm0 = vcmask 261120   ;;  %s2707_s0 = inlined_call_operand.vmem [shape: f32[16,32], index: 0, kind: input, shape index: {}]   ;;  %s2708_s1 = inlined_call_operand.vmem [shape: f32[1,32], index: 1, kind: input, shape index: {}]   ;;  %s2709_s2 = inlined_call_operand.vmem [shape: f32[32,64], index: 2, kind: input, shape index: {}]   ;;  %s2710_s3 = inlined_call_operand.vmem [shape: f32[1,64], index: 3, kind: input, shape index: {}]   ;;  %s2711_s4 = inlined_call_operand.vmem [shape: f32[4,128], index: 4, kind: input, shape index: {}]   ;;  %s2712_s5 = inlined_call_operand.vmem [shape: f32[1,128], index: 5, kind: input, shape index: {}]   ;;  %s2713_s6 = inlined_call_operand.vmem [shape: f32[16,16,128], index: 6, kind: input, shape index: {}]   ;;  %s2714_s7 = inlined_call_operand.vmem [shape: f32[16,128], index: 7, kind: input, shape index: {}]   ;;  %s2715_s8 = inlined_call_operand.vmem [shape: f32[16,128], index: 8, kind: input, shape index: {}]   ;;  %s2716_s9 = inlined_call_operand.vmem [shape: f32[64,32], index: 9, kind: input, shape index: {}]   ;;  %s2717_s10 = inlined_call_operand.vmem [shape: f32[1,32], index: 10, kind: input, shape index: {}]   ;;  %s2718_s11 = inlined_call_operand.hbm [shape: f32[16,32], index: 11, kind: output, shape index: {}]  }
   0x1   :  { %v39_v0 = vld [vmem:[%s2707_s0] sm:$0xff]  ;;  %v40_v1 = vld [vmem:[%s2707_s0 + $0x8] sm:$0xff] }
   0x2   :  { %16 = vsyncpa [#allocation3], 0  ;;  %v41_v2 = vmul.f32 %v39_v0, %v39_v0  ;;  %v42_v3 = vmul.f32 %v40_v1, %v40_v1  ;;  %v71_v6 = vld [vmem:[%s2709_s2 + $0x18] sm:$0xff]  ;;  %v70_v7 = vld [vmem:[%s2709_s2 + $0x10] sm:$0xff]  ;;  %s1620_s13 = smov 64   ;;  %v167_v26 = vlaneseq  ;;  %vm164_vm1 = vcmask 523264  }
   0x3   :  { %1524 = vmatprep.subr.mxu0 %v71_v6  ;;  %v69_v8 = vld [vmem:[%s2709_s2 + $0x8] sm:$0xff]  ;;  %v68_v9 = vld [vmem:[%s2709_s2] sm:$0xff]  ;;  %v1742_v35 = vld [vmem:[%s2713_s6 + $0x10] sm:$0xff]  ;;  %vm175_vm2 = vcmask 1040384   ;;  %vm185_vm3 = vcmask 1041408   ;;  %vm195_vm4 = vcmask 1042432  }
   0x4   :  { %v44_v4 = vsel %vm43_vm0, %v41_v2, 0.0  ;;  %v47_v5 = vsel %vm43_vm0, %v42_v3, 0.0  ;;  %1525 = vmatpush3.msra.mxu0 %v71_v6  ;;  %v1470_v17 = vld [vmem:[%s2708_s1] ss:$0 sm:$0xff]  ;;  %v1713_v27 = vshrl.u32 %v167_v26, 7  ;;  %v1729_v31 = vld [vmem:[%s2713_s6 + $0x8] sm:$0xff] }
   0x5   :  { %45 = vadd.xlane.f32.xlu0 %v44_v4  ;;  %1526 = vmatprep.subr.mxu0 %v70_v7  ;;  %v1471_v23 = vld [vmem:[%s2710_s3] ss:$0 sm:$0xff]  ;;  %2866 = vst [vmem:[#allocation7_spill] sm:$0xff] %v1729_v31  ;;  %2867 = vst [vmem:[#allocation8_spill] sm:$0xff] %v1742_v35  ;;  %v1747_v36 = vld [vmem:[%s2713_s6 + $0x30] sm:$0xff]  ;;  %v1766_v41 = vmul.f32 0.0, %v1729_v31 }
   0x6   :  { %1527 = vmatpush3.msra.mxu0 %v70_v7  ;;  %v1716_v28 = vsub.s32 3, %v1713_v27  ;;  %v1719_v29 = vsub.s32 2, %v1713_v27  ;;  %v1724_v30 = vld [vmem:[%s2713_s6] sm:$0xff]  ;;  %v1737_v34 = vsub.s32 1, %v1713_v27  ;;  %2868 = vst [vmem:[#allocation9_spill] sm:$0xff] %v1747_v36  ;;  %v1752_v37 = vld [vmem:[%s2713_s6 + $0x38] sm:$0xff] }
   0x7   :  { %1528 = vmatprep.subr.mxu0 %v69_v8  ;;  %2865 = vst [vmem:[#allocation6_spill] sm:$0xff] %v1724_v30  ;;  %v1734_v33 = vld [vmem:[%s2711_s4] sm:$0xf]  ;;  %2869 = vst [vmem:[#allocation10_spill] sm:$0xff] %v1752_v37  ;;  %v1760_v39 = vsub.s32 0, %v1713_v27  ;;  %v1763_v40 = vmul.f32 0.0, %v1724_v30 }
   0x8   :  { %1529 = vmatpush3.msra.mxu0 %v69_v8  ;;  %2864 = vst [vmem:[#allocation5_spill] sm:$0xff] %v1716_v28  ;;  %v1757_v38 = vld [vmem:[%s2713_s6 + $0x40] sm:$0xff]  ;;  %v1771_v42 = vld [vmem:[%s2713_s6 + $0x70] sm:$0xff]  ;;  %v1776_v43 = vld [vmem:[%s2713_s6 + $0x78] sm:$0xff]  ;;  %v170_v46 = vrot.slane %v1734_v33, %v1716_v28  ;;  %v180_v47 = vrot.slane %v1734_v33, %v1719_v29  ;;  %v1788_v48 = vmul.f32 0.0, %v1742_v35  ;;  %v190_v50 = vrot.slane %v1734_v33, %v1737_v34  ;;  %s1621_s28 = smov [#allocation2]  }
   0x9   :  { %48 = vadd.xlane.f32.xlu0 %v47_v5  ;;  %1530 = vmatprep.subr.mxu0 %v68_v9  ;;  %2870 = vst [vmem:[#allocation11_spill] sm:$0xff] %v1757_v38  ;;  %2871 = vst [vmem:[#allocation12_spill] sm:$0xff] %v1771_v42  ;;  %v1781_v44 = vld [vmem:[%s2713_s6 + $0x80] sm:$0xff]  ;;  %v1793_v49 = vld [vmem:[%s2713_s6 + $0x88] sm:$0xff]  ;;  %v1798_v51 = vmul.f32 0.0, %v1747_v36  ;;  %v1801_v52 = vmul.f32 0.0, %v1752_v37  ;;  %v200_v6 = vrot.slane %v1734_v33, %v1760_v39 }
   0xa   :  { %1531 = vmatpush3.msra.mxu0 %v68_v9  ;;  %2872 = vst [vmem:[#allocation13_spill] sm:$0xff] %v1776_v43  ;;  %2873 = vst [vmem:[#allocation14_spill] sm:$0xff] %v1781_v44  ;;  %v1804_v53 = vmul.f32 0.0, %v1757_v38  ;;  %v1809_v54 = vld [vmem:[%s2713_s6 + $0x90] sm:$0xff]  ;;  %v1814_v55 = vld [vmem:[%s2713_s6 + $0x98] sm:$0xff]  ;;  %v258_v58 = vmul.f32 0.0, %v1771_v42 }
   0xb   :  { %2874 = vst [vmem:[#allocation15_spill] sm:$0xff] %v1793_v49  ;;  %2875 = vst [vmem:[#allocation16_spill] sm:$0xff] %v1809_v54  ;;  %v1819_v56 = vld [vmem:[%s2713_s6 + $0xa0] sm:$0xff]  ;;  %v259_v59 = vmul.f32 0.0, %v1776_v43  ;;  %v263_v60 = vmul.f32 0.0, %v1781_v44  ;;  %v1827_v61 = vld [vmem:[%s2713_s6 + $0xa8] sm:$0xff] }
   0xc   :  { %2876 = vst [vmem:[#allocation17_spill] sm:$0xff] %v1814_v55  ;;  %2877 = vst [vmem:[#allocation18_spill] sm:$0xff] %v1819_v56  ;;  %v1832_v62 = vld [vmem:[%s2713_s6 + $0xb0] sm:$0xff]  ;;  %v1844_v2 = vld [vmem:[%s2713_s6 + $0xc0] sm:$0xff]  ;;  %v268_v8 = vmul.f32 0.0, %v1809_v54  ;;  %v269_v9 = vmul.f32 0.0, %v1814_v55 }
   0xd   :  { %2878 = vst [vmem:[#allocation19_spill] sm:$0xff] %v1827_v61  ;;  %2879 = vst [vmem:[#allocation20_spill] sm:$0xff] %v1832_v62  ;;  %v1851_v7 = vld [vmem:[%s2713_s6 + $0x48] sm:$0xff]  ;;  %vm1345_vm5 = vcmask 1043456   ;;  %vm1347_vm6 = vcmask 1044480   ;;  %vm1349_vm7 = vcmask 1045504  }
   0xe   :  { %2881 = vst [vmem:[#allocation22_spill] sm:$0xff] %v1844_v2  ;;  %2882 = vst [vmem:[#allocation23_spill] sm:$0xff] %v1851_v7  ;;  %vm1351_vm8 = vcmask 1046528   ;;  %s1459_s29 = sshll.u32 %s1621_s28, 4  ;;  %s1460_s29 = int_to_ptr.vmem [resolvable:$true] %s1459_s29 }
   0xf   :  { %p1603_p1 = scmp.lt.s32.totalorder %s1460_s29, %s1460_s29 }
  0x8e   :  { %v46_v10 = vpop.xlane.xlu0 %45 }
  0x8f   :  { %v51_v11 = vmul.f32 0.03125, %v46_v10  ;;  %v273_v10 = vmul.f32 0.0, %v1819_v56 }
  0x91   :  { %v53_v12 = vadd.f32 1e-06, %v51_v11  ;;  %v1859_v11 = vld [vmem:[%s2713_s6 + $0xc8] sm:$0xff] }
  0x92   :  { %v49_v13 = vpop.xlane.xlu0 %48  ;;  %2883 = vst [vmem:[#allocation24_spill] sm:$0xff] %v1859_v11  ;;  %v284_v33 = vmul.f32 0.0, %v1859_v11 }
  0x93   :  { %1558 = vrsqrt.f32 %v53_v12  ;;  %v52_v14 = vmul.f32 0.03125, %v49_v13  ;;  %v1864_v12 = vld [vmem:[%s2713_s6 + $0xd0] sm:$0xff]  ;;  %v1869_v13 = vld [vmem:[%s2713_s6 + $0xd8] sm:$0xff] }
  0x94   :  { %2884 = vst [vmem:[#allocation25_spill] sm:$0xff] %v1864_v12  ;;  %2885 = vst [vmem:[#allocation26_spill] sm:$0xff] %v1869_v13 }
  0x95   :  { %v54_v15 = vadd.f32 1e-06, %v52_v14  ;;  %v274_v14 = vmul.f32 0.0, %v1827_v61 }
  0x97   :  { %1560 = vrsqrt.f32 %v54_v15  ;;  %v278_v15 = vmul.f32 0.0, %v1832_v62  ;;  %v310_v62 = vadd.f32 %v273_v10, %v268_v8  ;;  %v311_v61 = vadd.f32 %v274_v14, %v269_v9  ;;  %v1955_v8 = vld [vmem:[%s2714_s7] sm:$0xff]  ;;  %v1960_v9 = vld [vmem:[%s2714_s7 + $0x8] sm:$0xff] }
  0x98   :  { %2898 = vst [vmem:[#allocation39_spill] sm:$0xff] %v1955_v8  ;;  %2899 = vst [vmem:[#allocation40_spill] sm:$0xff] %v1960_v9 }
  0xa0   :  { %v1559_v16 = vpop.eup %1558 }
  0xa1   :  { %v57_v18 = vmul.f32 %v1559_v16, %v39_v0  ;;  %v264_v0 = vmul.f32 0.0, %v1793_v49  ;;  %v1876_v16 = vld [vmem:[%s2713_s6 + $0xe0] sm:$0xff] }
  0xa2   :  { %2886 = vst [vmem:[#allocation27_spill] sm:$0xff] %v1876_v16 }
  0xa3   :  { %v66_v19 = vmul.f32 %v1470_v17, %v57_v18 }
  0xa4   :  { %v1561_v20 = vpop.eup %1560 }
  0xa5   :  { %v58_v21 = vmul.f32 %v1561_v20, %v40_v1  ;;  %1532 = vmatprep.mubr.msk.f32.mxu0 %vm43_vm0, %v66_v19  ;;  %v1839_v1 = vld [vmem:[%s2713_s6 + $0xb8] sm:$0xff]  ;;  %v1888_v20 = vld [vmem:[%s2713_s6 + $0x50] sm:$0xff] }
  0xa6   :  { %2880 = vst [vmem:[#allocation21_spill] sm:$0xff] %v1839_v1  ;;  %2888 = vst [vmem:[#allocation29_spill] sm:$0xff] %v1888_v20 }
  0xa7   :  { %v67_v22 = vmul.f32 %v1470_v17, %v58_v21  ;;  %v1881_v17 = vld [vmem:[%s2713_s6 + $0xe8] sm:$0xff]  ;;  %v1893_v21 = vld [vmem:[%s2713_s6 + $0x58] sm:$0xff] }
  0xa8   :  { %2887 = vst [vmem:[#allocation28_spill] sm:$0xff] %v1881_v17  ;;  %2889 = vst [vmem:[#allocation30_spill] sm:$0xff] %v1893_v21 }
  0xa9   :  { %1533 = vmatmul.mubr.msk.f32.vlgmr.msra.gmra.mxu0 %vm43_vm0, %v67_v22  ;;  %v1898_v22 = vld [vmem:[%s2713_s6 + $0x60] sm:$0xff] }
  0xaa   :  { %2890 = vst [vmem:[#allocation31_spill] sm:$0xff] %v1898_v22  ;;  %v253_v11 = vmul.f32 0.0, %v1898_v22 }
 0x169   :  { %v1534_v24 = vpop.f32.mrf.mxu0 }
 0x16a   :  { %v157_v25 = vadd.f32 %v1534_v24, %v1471_v23  ;;  %v283_v24 = vmul.f32 0.0, %v1844_v2 }
 0x16b   :  { %v151_v32 = vpop.f32.mrf.mxu0 }
 0x16c   :  { %161 = vrot.lane.b32.xlu1 %v157_v25, %s1620_s13  ;;  %v152_v45 = vadd.f32 %v1471_v23, %v151_v32  ;;  %v279_v23 = vmul.f32 0.0, %v1839_v1  ;;  %v1905_v32 = vld [vmem:[%s2713_s6 + $0x68] sm:$0xff]  ;;  %v294_v1 = vmul.f32 0.0, %v1881_v17  ;;  %v1474_v17 = vld [vmem:[%s2712_s5] ss:$0 sm:$0xff]  ;;  %v312_v56 = vadd.f32 %v283_v24, %v278_v15 }
 0x16d   :  { %2891 = vst [vmem:[#allocation32_spill] sm:$0xff] %v1905_v32 }
 0x16e   :  { %v313_v55 = vadd.f32 %v284_v33, %v279_v23 }
 0x1de   :  { %v162_v57 = vpop.permute.xlu1 %161 }
 0x1df   :  { %v165_v63 = vsel %vm164_vm1, %v152_v45, %v162_v57  ;;  %v288_v45 = vmul.f32 0.0, %v1864_v12  ;;  %v289_v57 = vmul.f32 0.0, %v1869_v13  ;;  %v1920_v13 = vld [vmem:[%s2713_s6 + $0x18] sm:$0xff]  ;;  %v309_v12 = vadd.f32 %v264_v0, %v259_v59 }
 0x1e0   :  { %v173_v3 = vrot.slane %v165_v63, 7  ;;  %v183_v4 = vrot.slane %v165_v63, 6  ;;  %v193_v5 = vrot.slane %v165_v63, 5  ;;  %v171_v25 = vmul.f32 %v170_v46, %v165_v63  ;;  %2892 = vst [vmem:[#allocation33_spill] sm:$0xff] %v1920_v13 }
 0x1e1   :  { %v248_v63 = vmul.f32 0.0, %v1888_v20  ;;  %v315_v49 = vadd.f32 %v294_v1, %v289_v57  ;;  %v304_v59 = vadd.f32 %v1804_v53, %v1798_v51  ;;  %v1948_v0 = vsub.s32 7, %v1713_v27 }
 0x1e2   :  { %v176_v18 = vsel %vm175_vm2, 0.0, %v173_v3  ;;  %v186_v19 = vsel %vm185_vm3, 0.0, %v183_v4  ;;  %v196_v3 = vsel %vm195_vm4, 0.0, %v193_v5  ;;  %v293_v4 = vmul.f32 0.0, %v1876_v16  ;;  %v1925_v5 = vld [vmem:[%s2713_s6 + $0x20] sm:$0xff]  ;;  %v1934_v16 = vld [vmem:[%s2713_s6 + $0x28] sm:$0xff] }
 0x1e3   :  { %v181_v26 = vmul.f32 %v180_v47, %v176_v18  ;;  %v191_v46 = vmul.f32 %v190_v50, %v186_v19  ;;  %v244_v47 = vmul.f32 0.0, %v1851_v7  ;;  %v249_v18 = vmul.f32 0.0, %v1893_v21  ;;  %2893 = vst [vmem:[#allocation34_spill] sm:$0xff] %v1925_v5  ;;  %2894 = vst [vmem:[#allocation35_spill] sm:$0xff] %v1934_v16 }
 0x1e4   :  { %v254_v50 = vmul.f32 0.0, %v1905_v32  ;;  %v308_v19 = vadd.f32 %v263_v60, %v258_v58  ;;  %v314_v54 = vadd.f32 %v293_v4, %v288_v45  ;;  %v229_v58 = vmul.f32 0.0, %v1920_v13  ;;  %2897 = vst [vmem:[#allocation38_spill] sm:$0xff] %v1948_v0  ;;  %v1984_v4 = vld [vmem:[%s2713_s6 + $0xf8] sm:$0xff] }
 0x1e5   :  { %v182_v2 = vadd.f32 %v181_v26, %v171_v25  ;;  %v201_v26 = vmul.f32 %v200_v6, %v196_v3  ;;  %v233_v60 = vmul.f32 0.0, %v1925_v5  ;;  %v1942_v6 = vsub.s32 6, %v1713_v27 }
 0x1e6   :  { %v234_v3 = vmul.f32 0.0, %v1934_v16  ;;  %v305_v10 = vadd.f32 %v244_v47, %v1801_v52  ;;  %v306_v14 = vadd.f32 %v253_v11, %v248_v63  ;;  %v307_v15 = vadd.f32 %v254_v50, %v249_v18 }
 0x1e7   :  { %v192_v25 = vadd.f32 %v191_v46, %v182_v2  ;;  %v1939_v2 = vsub.s32 5, %v1713_v27  ;;  %2896 = vst [vmem:[#allocation37_spill] sm:$0xff] %v1942_v6  ;;  %v320_v51 = vadd.f32 %v310_v62, %v308_v19  ;;  %v321_v53 = vadd.f32 %v311_v61, %v309_v12  ;;  %v1979_v12 = vld [vmem:[%s2713_s6 + $0xf0] sm:$0xff] }
 0x1e8   :  { %v322_v23 = vadd.f32 %v314_v54, %v312_v56  ;;  %v323_v24 = vadd.f32 %v315_v49, %v313_v55  ;;  %v303_v57 = vadd.f32 %v234_v3, %v229_v58  ;;  %v318_v49 = vadd.f32 %v306_v14, %v304_v59  ;;  %v2014_v14 = vld [vmem:[%s2715_s8 + $0x8] sm:$0xff] }
 0x1e9   :  { %v202_v44 = vadd.f32 %v201_v26, %v192_v25  ;;  %2895 = vst [vmem:[#allocation36_spill] sm:$0xff] %v1939_v2  ;;  %v319_v55 = vadd.f32 %v307_v15, %v305_v10  ;;  %v298_v25 = vmul.f32 0.0, %v1979_v12  ;;  %v299_v26 = vmul.f32 0.0, %v1984_v4  ;;  %v2009_v10 = vld [vmem:[%s2715_s8] sm:$0xff]  ;;  %2907 = vst [vmem:[#allocation48_spill] sm:$0xff] %v2014_v14 }
 0x1ea   :  { %v326_v56 = vadd.f32 %v322_v23, %v320_v51  ;;  %v327_v61 = vadd.f32 %v323_v24, %v321_v53  ;;  %2906 = vst [vmem:[#allocation47_spill] sm:$0xff] %v2009_v10  ;;  %v2019_v23 = vsub.s32 4, %v1713_v27 }
 0x1eb   :  { %v1950_v1 = vadd.f32 %v1474_v17, %v202_v44  ;;  %v302_v17 = vadd.f32 %v233_v60, %v1788_v48 }
 0x1ec   :  { %2908 = vst [vmem:[#allocation49_spill] sm:$0xff] %v2019_v23 }
 0x1ed   :  { %v218_v44 = vrot.slane %v1950_v1, %v1760_v39  ;;  %v916_v33 = vrot.slane %v1950_v1, %v1939_v2  ;;  %v1059_v45 = vrot.slane %v1950_v1, %v1942_v6  ;;  %v1202_v54 = vrot.slane %v1950_v1, %v1948_v0 }
 0x1ee   :  { %v344_v53 = vrot.slane %v1950_v1, %v1737_v34 }
 0x1ef   :  { %v219_v52 = vmul.f32 %v218_v44, %v1955_v8  ;;  %v220_v11 = vmul.f32 %v218_v44, %v1960_v9  ;;  %v1987_v46 = vmul.f32 %v916_v33, %v1955_v8  ;;  %v1990_v47 = vmul.f32 %v916_v33, %v1960_v9 }
 0x1f0   :  { %v1999_v50 = vmul.f32 %v1202_v54, %v1955_v8  ;;  %v2002_v19 = vmul.f32 %v1202_v54, %v1960_v9  ;;  %v346_v27 = vmul.f32 %v344_v53, %v1960_v9 }
 0x1f1   :  { %v300_v48 = vadd.f32 %v1763_v40, %v219_v52  ;;  %v301_v62 = vadd.f32 %v1766_v41, %v220_v11  ;;  %2900 = vst [vmem:[#allocation41_spill] sm:$0xff] %v1987_v46  ;;  %2901 = vst [vmem:[#allocation42_spill] sm:$0xff] %v1990_v47  ;;  %v1993_v40 = vmul.f32 %v1059_v45, %v1955_v8 }
 0x1f2   :  { %v1996_v41 = vmul.f32 %v1059_v45, %v1960_v9  ;;  %2904 = vst [vmem:[#allocation45_spill] sm:$0xff] %v1999_v50  ;;  %2905 = vst [vmem:[#allocation46_spill] sm:$0xff] %v2002_v19  ;;  %v345_v11 = vmul.f32 %v344_v53, %v1955_v8  ;;  %v2909_v50 = vld [vmem:[#allocation14_spill] sm:$0xff] }
 0x1f3   :  { %2902 = vst [vmem:[#allocation43_spill] sm:$0xff] %v1993_v40  ;;  %v316_v63 = vadd.f32 %v302_v17, %v300_v48  ;;  %v317_v18 = vadd.f32 %v303_v57, %v301_v62  ;;  %v2910_v40 = vld [vmem:[#allocation15_spill] sm:$0xff] }
 0x1f4   :  { %2903 = vst [vmem:[#allocation44_spill] sm:$0xff] %v1996_v41 }
 0x1f5   :  { %v324_v58 = vadd.f32 %v318_v49, %v316_v63  ;;  %v325_v60 = vadd.f32 %v319_v55, %v317_v18 }
 0x1f7   :  { %v328_v3 = vadd.f32 %v326_v56, %v324_v58  ;;  %v329_v59 = vadd.f32 %v327_v61, %v325_v60 }
 0x1f9   :  { %v330_v15 = vadd.f32 %v328_v3, %v298_v25  ;;  %v331_v51 = vadd.f32 %v329_v59, %v299_v26 }
 0x1fb   :  { %v332_v24 = vmul.f32 %v330_v15, %v2009_v10  ;;  %v333_v44 = vmul.f32 %v331_v51, %v2014_v14  ;;  %v350_v17 = vrot.slane %v330_v15, %v1760_v39  ;;  %v356_v33 = vrot.slane %v330_v15, %v1737_v34 }
 0x1fc   :  { %v362_v45 = vrot.slane %v330_v15, %v1719_v29  ;;  %v368_v57 = vrot.slane %v330_v15, %v1716_v28  ;;  %v374_v54 = vrot.slane %v330_v15, %v2019_v23  ;;  %v380_v56 = vrot.slane %v330_v15, %v1939_v2 }
 0x1fd   :  { %v334_v52 = vadd.f32 %v333_v44, %v332_v24  ;;  %v351_v49 = vmul.f32 %v350_v17, %v1724_v30  ;;  %v352_v55 = vmul.f32 %v350_v17, %v1729_v31  ;;  %v357_v48 = vmul.f32 %v1742_v35, %v356_v33 }
 0x1fe   :  { %v358_v62 = vmul.f32 %v1920_v13, %v356_v33  ;;  %v363_v63 = vmul.f32 %v1925_v5, %v362_v45  ;;  %v364_v18 = vmul.f32 %v1934_v16, %v362_v45  ;;  %v369_v25 = vmul.f32 %v1747_v36, %v368_v57  ;;  %v2917_v16 = vld [vmem:[#allocation22_spill] sm:$0xff]  ;;  %v2918_v13 = vld [vmem:[#allocation24_spill] sm:$0xff] }
 0x1ff   :  { %v335_v61 = vrot.slane %v334_v52, 4  ;;  %v386_v26 = vrot.slane %v330_v15, %v1942_v6  ;;  %v392_v58 = vrot.slane %v330_v15, %v1948_v0  ;;  %v370_v3 = vmul.f32 %v1752_v37, %v368_v57  ;;  %v2916_v37 = vld [vmem:[#allocation21_spill] sm:$0xff] }
 0x200   :  { %v375_v59 = vmul.f32 %v1757_v38, %v374_v54  ;;  %v398_v53 = vrot.slane %v331_v51, %v1760_v39  ;;  %v376_v24 = vmul.f32 %v1851_v7, %v374_v54  ;;  %v381_v44 = vmul.f32 %v1888_v20, %v380_v56  ;;  %v2914_v38 = vld [vmem:[#allocation19_spill] sm:$0xff] }
 0x201   :  { %v336_v60 = vadd.f32 %v335_v61, %v334_v52  ;;  %v404_v17 = vrot.slane %v331_v51, %v1737_v34  ;;  %v410_v33 = vrot.slane %v331_v51, %v1719_v29  ;;  %v382_v45 = vmul.f32 %v1893_v21, %v380_v56 }
 0x202   :  { %v387_v19 = vmul.f32 %v1898_v22, %v386_v26  ;;  %v388_v15 = vmul.f32 %v1905_v32, %v386_v26  ;;  %v393_v57 = vmul.f32 %v1771_v42, %v392_v58  ;;  %v394_v61 = vmul.f32 %v1776_v43, %v392_v58  ;;  %v2911_v22 = vld [vmem:[#allocation16_spill] sm:$0xff]  ;;  %v2912_v26 = vld [vmem:[#allocation17_spill] sm:$0xff]  ;;  %v2913_v42 = vld [vmem:[#allocation18_spill] sm:$0xff] }
 0x203   :  { %v337_v52 = vrot.slane %v336_v60, 2  ;;  %v399_v41 = vmul.f32 %v2909_v50, %v398_v53  ;;  %v416_v54 = vrot.slane %v331_v51, %v1716_v28  ;;  %v400_v47 = vmul.f32 %v2910_v40, %v398_v53  ;;  %v2915_v43 = vld [vmem:[#allocation20_spill] sm:$0xff] }
 0x204   :  { %v422_v46 = vrot.slane %v331_v51, %v2019_v23  ;;  %v428_v20 = vrot.slane %v331_v51, %v1939_v2  ;;  %v434_v56 = vrot.slane %v331_v51, %v1942_v6  ;;  %v405_v21 = vmul.f32 %v2911_v22, %v404_v17  ;;  %v2919_v6 = vld [vmem:[#allocation25_spill] sm:$0xff]  ;;  %v2920_v22 = vld [vmem:[#allocation27_spill] sm:$0xff] }
 0x205   :  { %v406_v32 = vmul.f32 %v2912_v26, %v404_v17  ;;  %v411_v7 = vmul.f32 %v2913_v42, %v410_v33  ;;  %v412_v58 = vmul.f32 %v2914_v38, %v410_v33  ;;  %v417_v50 = vmul.f32 %v2915_v43, %v416_v54  ;;  %v2921_v17 = vld [vmem:[#allocation26_spill] sm:$0xff]  ;;  %v2922_v42 = vld [vmem:[#allocation28_spill] sm:$0xff] }
 0x206   :  { %v418_v36 = vmul.f32 %v2916_v37, %v416_v54  ;;  %v440_v53 = vrot.slane %v331_v51, %v1948_v0  ;;  %v443_v40 = vadd.f32 %v351_v49, %v345_v11  ;;  %v423_v5 = vmul.f32 %v2917_v16, %v422_v46 }
 0x207   :  { %v424_v35 = vmul.f32 %v2918_v13, %v422_v46  ;;  %v429_v2 = vmul.f32 %v2919_v6, %v428_v20  ;;  %v435_v31 = vmul.f32 %v2920_v22, %v434_v56  ;;  %v430_v26 = vmul.f32 %v2921_v17, %v428_v20 }
 0x208   :  { %v436_v30 = vmul.f32 %v2922_v42, %v434_v56  ;;  %v444_v33 = vadd.f32 %v352_v55, %v346_v27  ;;  %v445_v38 = vadd.f32 %v363_v63, %v357_v48  ;;  %v446_v43 = vadd.f32 %v364_v18, %v358_v62 }
 0x209   :  { %v447_v23 = vadd.f32 %v375_v59, %v369_v25  ;;  %v448_v54 = vadd.f32 %v376_v24, %v370_v3  ;;  %v449_v37 = vadd.f32 %v387_v19, %v381_v44  ;;  %v450_v51 = vadd.f32 %v388_v15, %v382_v45  ;;  %v2927_v25 = vld [vmem:[#allocation7_spill] sm:$0xff]  ;;  %v2928_v3 = vld [vmem:[#allocation36_spill] sm:$0xff]  ;;  %v2930_v15 = vld [vmem:[#allocation33_spill] sm:$0xff] }
 0x20a   :  { %v451_v11 = vadd.f32 %v399_v41, %v393_v57  ;;  %v452_v49 = vadd.f32 %v400_v47, %v394_v61  ;;  %v453_v16 = vadd.f32 %v411_v7, %v405_v21  ;;  %v454_v0 = vadd.f32 %v412_v58, %v406_v32  ;;  %v2929_v44 = vld [vmem:[#allocation8_spill] sm:$0xff] }
 0x20b   :  { %v455_v46 = vadd.f32 %v423_v5, %v417_v50  ;;  %v456_v13 = vadd.f32 %v424_v35, %v418_v36  ;;  %v457_v6 = vadd.f32 %v435_v31, %v429_v2  ;;  %v458_v28 = vadd.f32 %v436_v30, %v430_v26  ;;  %v2923_v5 = vld [vmem:[#allocation40_spill] sm:$0xff]  ;;  %v2926_v50 = vld [vmem:[#allocation6_spill] sm:$0xff]  ;;  %v2932_v26 = vld [vmem:[#allocation35_spill] sm:$0xff] }
 0x20c   :  { %v459_v22 = vadd.f32 %v445_v38, %v443_v40  ;;  %v460_v9 = vadd.f32 %v446_v43, %v444_v33  ;;  %v461_v20 = vadd.f32 %v449_v37, %v447_v23  ;;  %v462_v17 = vadd.f32 %v450_v51, %v448_v54  ;;  %v2934_v33 = vld [vmem:[#allocation10_spill] sm:$0xff]  ;;  %v2935_v51 = vld [vmem:[#allocation11_spill] sm:$0xff] }
 0x20d   :  { %v463_v56 = vadd.f32 %v453_v16, %v451_v11  ;;  %v464_v27 = vadd.f32 %v454_v0, %v452_v49  ;;  %v465_v55 = vadd.f32 %v457_v6, %v455_v46  ;;  %v466_v48 = vadd.f32 %v458_v28, %v456_v13  ;;  %v2924_v6 = vld [vmem:[#allocation5_spill] sm:$0xff]  ;;  %v2936_v46 = vld [vmem:[#allocation23_spill] sm:$0xff] }
 0x20e   :  { %v467_v62 = vadd.f32 %v461_v20, %v459_v22  ;;  %v338_v63 = vadd.f32 %v337_v52, %v336_v60  ;;  %v468_v19 = vadd.f32 %v462_v17, %v460_v9  ;;  %v487_v7 = vrot.slane %v1950_v1, %v1719_v29  ;;  %v2925_v9 = vld [vmem:[#allocation49_spill] sm:$0xff]  ;;  %v2931_v52 = vld [vmem:[#allocation34_spill] sm:$0xff] }
 0x20f   :  { %v469_v18 = vadd.f32 %v465_v55, %v463_v56  ;;  %v470_v41 = vadd.f32 %v466_v48, %v464_v27  ;;  %v441_v35 = vmul.f32 %v1979_v12, %v440_v53  ;;  %v442_v30 = vmul.f32 %v1984_v4, %v440_v53  ;;  %v2933_v53 = vld [vmem:[#allocation9_spill] sm:$0xff]  ;;  %v2938_v55 = vld [vmem:[#allocation38_spill] sm:$0xff] }
 0x210   :  { %v339_v37 = vrot.slane %v338_v63, 1  ;;  %v488_v16 = vmul.f32 %v487_v7, %v1955_v8  ;;  %v489_v2 = vmul.f32 %v487_v7, %v2923_v5  ;;  %v2937_v56 = vld [vmem:[#allocation37_spill] sm:$0xff] }
 0x211   :  { %v471_v31 = vadd.f32 %v469_v18, %v467_v62  ;;  %v472_v36 = vadd.f32 %v470_v41, %v468_v19  ;;  %v2939_v62 = vld [vmem:[#allocation29_spill] sm:$0xff] }
 0x212   :  { %v2084_v40 = vadd.f32 %v339_v37, %v338_v63 }
 0x213   :  { %v473_v38 = vadd.f32 %v471_v31, %v441_v35  ;;  %v474_v43 = vadd.f32 %v472_v36, %v442_v30  ;;  %v2940_v35 = vld [vmem:[#allocation30_spill] sm:$0xff]  ;;  %v2941_v30 = vld [vmem:[#allocation31_spill] sm:$0xff] }
 0x215   :  { %v475_v28 = vmul.f32 %v473_v38, %v2009_v10  ;;  %v493_v13 = vrot.slane %v473_v38, %v1760_v39  ;;  %v499_v21 = vrot.slane %v473_v38, %v1737_v34  ;;  %v505_v22 = vrot.slane %v473_v38, %v1719_v29 }
 0x216   :  { %v476_v32 = vmul.f32 %v474_v43, %v2014_v14  ;;  %v511_v0 = vrot.slane %v473_v38, %v2924_v6  ;;  %v517_v47 = vrot.slane %v473_v38, %v2925_v9  ;;  %v523_v59 = vrot.slane %v473_v38, %v2928_v3 }
 0x217   :  { %v494_v23 = vmul.f32 %v493_v13, %v2926_v50  ;;  %v495_v60 = vmul.f32 %v493_v13, %v2927_v25  ;;  %v500_v45 = vmul.f32 %v2929_v44, %v499_v21  ;;  %v501_v57 = vmul.f32 %v2930_v15, %v499_v21  ;;  %v2943_v21 = vld [vmem:[#allocation12_spill] sm:$0xff]  ;;  %v2956_v25 = vld [vmem:[#allocation26_spill] sm:$0xff] }
 0x218   :  { %v477_v24 = vadd.f32 %v476_v32, %v475_v28  ;;  %v506_v61 = vmul.f32 %v2931_v52, %v505_v22  ;;  %v507_v58 = vmul.f32 %v2932_v26, %v505_v22  ;;  %v512_v17 = vmul.f32 %v2933_v53, %v511_v0  ;;  %v2942_v28 = vld [vmem:[#allocation32_spill] sm:$0xff] }
 0x219   :  { %v513_v54 = vmul.f32 %v2934_v33, %v511_v0  ;;  %v518_v11 = vmul.f32 %v2935_v51, %v517_v47  ;;  %v519_v20 = vmul.f32 %v2936_v46, %v517_v47  ;;  %v529_v27 = vrot.slane %v473_v38, %v2937_v56  ;;  %v2945_v0 = vld [vmem:[#allocation14_spill] sm:$0xff]  ;;  %v2946_v46 = vld [vmem:[#allocation15_spill] sm:$0xff]  ;;  %v2947_v33 = vld [vmem:[#allocation16_spill] sm:$0xff] }
 0x21a   :  { %v478_v49 = vrot.slane %v477_v24, 4  ;;  %v535_v48 = vrot.slane %v473_v38, %v2938_v55  ;;  %v524_v63 = vmul.f32 %v2939_v62, %v523_v59  ;;  %v541_v19 = vrot.slane %v474_v43, %v1760_v39  ;;  %v2944_v38 = vld [vmem:[#allocation13_spill] sm:$0xff] }
 0x21b   :  { %v547_v18 = vrot.slane %v474_v43, %v1737_v34  ;;  %v553_v41 = vrot.slane %v474_v43, %v1719_v29  ;;  %v525_v31 = vmul.f32 %v2940_v35, %v523_v59  ;;  %v530_v36 = vmul.f32 %v2941_v30, %v529_v27  ;;  %v2949_v59 = vld [vmem:[#allocation18_spill] sm:$0xff]  ;;  %v2950_v30 = vld [vmem:[#allocation19_spill] sm:$0xff] }
 0x21c   :  { %v479_v7 = vadd.f32 %v478_v49, %v477_v24  ;;  %v559_v37 = vrot.slane %v474_v43, %v2924_v6  ;;  %v531_v13 = vmul.f32 %v2942_v28, %v529_v27  ;;  %v536_v22 = vmul.f32 %v2943_v21, %v535_v48  ;;  %v2948_v24 = vld [vmem:[#allocation17_spill] sm:$0xff]  ;;  %v2951_v28 = vld [vmem:[#allocation20_spill] sm:$0xff] }
 0x21d   :  { %v537_v32 = vmul.f32 %v2944_v38, %v535_v48  ;;  %v542_v47 = vmul.f32 %v2945_v0, %v541_v19  ;;  %v543_v51 = vmul.f32 %v2946_v46, %v541_v19  ;;  %v548_v53 = vmul.f32 %v2947_v33, %v547_v18  ;;  %v2952_v38 = vld [vmem:[#allocation21_spill] sm:$0xff]  ;;  %v2953_v19 = vld [vmem:[#allocation22_spill] sm:$0xff]  ;;  %v2954_v33 = vld [vmem:[#allocation24_spill] sm:$0xff] }
 0x21e   :  { %v480_v62 = vrot.slane %v479_v7, 2  ;;  %v549_v49 = vmul.f32 %v2948_v24, %v547_v18  ;;  %v554_v35 = vmul.f32 %v2949_v59, %v553_v41  ;;  %v555_v26 = vmul.f32 %v2950_v30, %v553_v41  ;;  %v2955_v41 = vld [vmem:[#allocation25_spill] sm:$0xff] }
 0x21f   :  { %v565_v52 = vrot.slane %v474_v43, %v2925_v9  ;;  %v571_v27 = vrot.slane %v474_v43, %v2928_v3  ;;  %v560_v48 = vmul.f32 %v2951_v28, %v559_v37  ;;  %v561_v0 = vmul.f32 %v2952_v38, %v559_v37  ;;  %v2957_v3 = vld [vmem:[#allocation27_spill] sm:$0xff] }
 0x220   :  { %v481_v21 = vadd.f32 %v480_v62, %v479_v7  ;;  %v577_v15 = vrot.slane %v474_v43, %v2937_v56  ;;  %v583_v18 = vrot.slane %v474_v43, %v2938_v55  ;;  %v586_v59 = vadd.f32 %v494_v23, %v488_v16 }
 0x221   :  { %v566_v46 = vmul.f32 %v2953_v19, %v565_v52  ;;  %v567_v44 = vmul.f32 %v2954_v33, %v565_v52  ;;  %v572_v30 = vmul.f32 %v2955_v41, %v571_v27  ;;  %v573_v50 = vmul.f32 %v2956_v25, %v571_v27 }
 0x222   :  { %v482_v24 = vrot.slane %v481_v21, 1  ;;  %v578_v62 = vmul.f32 %v2957_v3, %v577_v15  ;;  %v579_v7 = vmul.f32 %v2922_v42, %v577_v15  ;;  %v587_v28 = vadd.f32 %v495_v60, %v489_v2 }
 0x223   :  { %v588_v37 = vadd.f32 %v506_v61, %v500_v45  ;;  %v589_v38 = vadd.f32 %v507_v58, %v501_v57  ;;  %v590_v5 = vadd.f32 %v518_v11, %v512_v17  ;;  %v591_v19 = vadd.f32 %v519_v20, %v513_v54 }
 0x224   :  { %v483_v56 = vadd.f32 %v482_v24, %v481_v21  ;;  %v592_v9 = vadd.f32 %v530_v36, %v524_v63  ;;  %v593_v52 = vadd.f32 %v531_v13, %v525_v31  ;;  %v594_v33 = vadd.f32 %v542_v47, %v536_v22  ;;  %v2964_v21 = vld [vmem:[#allocation36_spill] sm:$0xff]  ;;  %v2966_v47 = vld [vmem:[#allocation33_spill] sm:$0xff] }
 0x225   :  { %v595_v43 = vadd.f32 %v543_v51, %v537_v32  ;;  %v596_v16 = vadd.f32 %v554_v35, %v548_v53  ;;  %v597_v23 = vadd.f32 %v555_v26, %v549_v49  ;;  %v598_v55 = vadd.f32 %v566_v46, %v560_v48  ;;  %v2959_v46 = vld [vmem:[#allocation39_spill] sm:$0xff]  ;;  %v2961_v35 = vld [vmem:[#allocation40_spill] sm:$0xff]  ;;  %v2967_v49 = vld [vmem:[#allocation34_spill] sm:$0xff] }
 0x226   :  { %v599_v41 = vadd.f32 %v567_v44, %v561_v0  ;;  %v600_v8 = vadd.f32 %v578_v62, %v572_v30  ;;  %v601_v27 = vadd.f32 %v579_v7, %v573_v50  ;;  %v602_v25 = vadd.f32 %v588_v37, %v586_v59  ;;  %v2962_v30 = vld [vmem:[#allocation6_spill] sm:$0xff]  ;;  %v2965_v32 = vld [vmem:[#allocation8_spill] sm:$0xff]  ;;  %v2968_v48 = vld [vmem:[#allocation35_spill] sm:$0xff] }
 0x227   :  { %v603_v3 = vadd.f32 %v589_v38, %v587_v28  ;;  %v604_v14 = vadd.f32 %v592_v9, %v590_v5  ;;  %v605_v15 = vadd.f32 %v593_v52, %v591_v19  ;;  %v606_v2 = vadd.f32 %v596_v16, %v594_v33  ;;  %v2958_v33 = vld [vmem:[#allocation48_spill] sm:$0xff]  ;;  %v2963_v28 = vld [vmem:[#allocation7_spill] sm:$0xff]  ;;  %v2970_v62 = vld [vmem:[#allocation10_spill] sm:$0xff] }
 0x228   :  { %v607_v60 = vadd.f32 %v597_v23, %v595_v43  ;;  %v608_v45 = vadd.f32 %v600_v8, %v598_v55  ;;  %v609_v57 = vadd.f32 %v601_v27, %v599_v41  ;;  %v2129_v58 = vsel %vm175_vm2, %v2084_v40, %v483_v56  ;;  %v2960_v55 = vld [vmem:[#allocation49_spill] sm:$0xff]  ;;  %v2971_v37 = vld [vmem:[#allocation11_spill] sm:$0xff] }
 0x229   :  { %v610_v61 = vadd.f32 %v604_v14, %v602_v25  ;;  %v611_v17 = vadd.f32 %v605_v15, %v603_v3  ;;  %v584_v44 = vmul.f32 %v1979_v12, %v583_v18  ;;  %v585_v50 = vmul.f32 %v1984_v4, %v583_v18  ;;  %v2969_v18 = vld [vmem:[#allocation9_spill] sm:$0xff]  ;;  %v2972_v16 = vld [vmem:[#allocation23_spill] sm:$0xff] }
 0x22a   :  { %v612_v53 = vadd.f32 %v608_v45, %v606_v2  ;;  %v613_v26 = vadd.f32 %v609_v57, %v607_v60  ;;  %v630_v5 = vrot.slane %v1950_v1, %v2924_v6  ;;  %v2973_v27 = vld [vmem:[#allocation37_spill] sm:$0xff]  ;;  %v2974_v2 = vld [vmem:[#allocation38_spill] sm:$0xff] }
 0x22b   :  { %v2975_v45 = vld [vmem:[#allocation29_spill] sm:$0xff] }
 0x22c   :  { %v614_v54 = vadd.f32 %v612_v53, %v610_v61  ;;  %v615_v51 = vadd.f32 %v613_v26, %v611_v17  ;;  %v631_v20 = vmul.f32 %v630_v5, %v2959_v46  ;;  %v632_v31 = vmul.f32 %v630_v5, %v2961_v35 }
 0x22e   :  { %v616_v9 = vadd.f32 %v614_v54, %v584_v44  ;;  %v617_v8 = vadd.f32 %v615_v51, %v585_v50  ;;  %v2976_v44 = vld [vmem:[#allocation30_spill] sm:$0xff]  ;;  %v2977_v50 = vld [vmem:[#allocation31_spill] sm:$0xff] }
 0x230   :  { %v618_v14 = vmul.f32 %v616_v9, %v2009_v10  ;;  %v636_v25 = vrot.slane %v616_v9, %v1760_v39  ;;  %v642_v40 = vrot.slane %v616_v9, %v1737_v34  ;;  %v648_v3 = vrot.slane %v616_v9, %v1719_v29  ;;  %v2982_v10 = vld [vmem:[#allocation15_spill] sm:$0xff] }
 0x231   :  { %v619_v11 = vmul.f32 %v617_v8, %v2958_v33  ;;  %v654_v56 = vrot.slane %v616_v9, %v2924_v6  ;;  %v660_v63 = vrot.slane %v616_v9, %v2960_v55  ;;  %v666_v22 = vrot.slane %v616_v9, %v2964_v21 }
 0x232   :  { %v637_v36 = vmul.f32 %v636_v25, %v2962_v30  ;;  %v638_v13 = vmul.f32 %v636_v25, %v2963_v28  ;;  %v643_v0 = vmul.f32 %v2965_v32, %v642_v40  ;;  %v644_v24 = vmul.f32 %v2966_v47, %v642_v40  ;;  %v2979_v40 = vld [vmem:[#allocation12_spill] sm:$0xff]  ;;  %v2992_v47 = vld [vmem:[#allocation26_spill] sm:$0xff]  ;;  %v2993_v28 = vld [vmem:[#allocation27_spill] sm:$0xff] }
 0x233   :  { %v620_v38 = vadd.f32 %v619_v11, %v618_v14  ;;  %v649_v59 = vmul.f32 %v2967_v49, %v648_v3  ;;  %v650_v19 = vmul.f32 %v2968_v48, %v648_v3  ;;  %v655_v41 = vmul.f32 %v2969_v18, %v654_v56  ;;  %v2978_v14 = vld [vmem:[#allocation32_spill] sm:$0xff] }
 0x234   :  { %v656_v7 = vmul.f32 %v2970_v62, %v654_v56  ;;  %v661_v52 = vmul.f32 %v2971_v37, %v660_v63  ;;  %v662_v23 = vmul.f32 %v2972_v16, %v660_v63  ;;  %v672_v15 = vrot.slane %v616_v9, %v2973_v27  ;;  %v2981_v56 = vld [vmem:[#allocation14_spill] sm:$0xff]  ;;  %v2983_v16 = vld [vmem:[#allocation16_spill] sm:$0xff] }
 0x235   :  { %v621_v43 = vrot.slane %v620_v38, 4  ;;  %v678_v60 = vrot.slane %v616_v9, %v2974_v2  ;;  %v667_v57 = vmul.f32 %v2975_v45, %v666_v22  ;;  %v684_v61 = vrot.slane %v617_v8, %v1760_v39  ;;  %v2980_v9 = vld [vmem:[#allocation13_spill] sm:$0xff] }
 0x236   :  { %v690_v17 = vrot.slane %v617_v8, %v1737_v34  ;;  %v696_v53 = vrot.slane %v617_v8, %v1719_v29  ;;  %v668_v54 = vmul.f32 %v2976_v44, %v666_v22  ;;  %v673_v51 = vmul.f32 %v2977_v50, %v672_v15  ;;  %v2985_v22 = vld [vmem:[#allocation18_spill] sm:$0xff]  ;;  %v2986_v50 = vld [vmem:[#allocation19_spill] sm:$0xff] }
 0x237   :  { %v622_v26 = vadd.f32 %v621_v43, %v620_v38  ;;  %v702_v5 = vrot.slane %v617_v8, %v2924_v6  ;;  %v674_v25 = vmul.f32 %v2978_v14, %v672_v15  ;;  %v679_v3 = vmul.f32 %v2979_v40, %v678_v60  ;;  %v2984_v38 = vld [vmem:[#allocation17_spill] sm:$0xff]  ;;  %v2987_v14 = vld [vmem:[#allocation20_spill] sm:$0xff] }
 0x238   :  { %v680_v11 = vmul.f32 %v2980_v9, %v678_v60  ;;  %v685_v63 = vmul.f32 %v2981_v56, %v684_v61  ;;  %v686_v45 = vmul.f32 %v2982_v10, %v684_v61  ;;  %v691_v37 = vmul.f32 %v2983_v16, %v690_v17  ;;  %v2988_v9 = vld [vmem:[#allocation21_spill] sm:$0xff]  ;;  %v2989_v61 = vld [vmem:[#allocation22_spill] sm:$0xff]  ;;  %v2990_v16 = vld [vmem:[#allocation24_spill] sm:$0xff] }
 0x239   :  { %v623_v33 = vrot.slane %v622_v26, 2  ;;  %v692_v43 = vmul.f32 %v2984_v38, %v690_v17  ;;  %v697_v44 = vmul.f32 %v2985_v22, %v696_v53  ;;  %v698_v62 = vmul.f32 %v2986_v50, %v696_v53  ;;  %v2991_v53 = vld [vmem:[#allocation25_spill] sm:$0xff] }
 0x23a   :  { %v708_v18 = vrot.slane %v617_v8, %v2960_v55  ;;  %v714_v15 = vrot.slane %v617_v8, %v2964_v21  ;;  %v703_v60 = vmul.f32 %v2987_v14, %v702_v5  ;;  %v704_v56 = vmul.f32 %v2988_v9, %v702_v5 }
 0x23b   :  { %v624_v40 = vadd.f32 %v623_v33, %v622_v26  ;;  %v720_v48 = vrot.slane %v617_v8, %v2973_v27  ;;  %v726_v17 = vrot.slane %v617_v8, %v2974_v2  ;;  %v729_v22 = vadd.f32 %v637_v36, %v631_v20 }
 0x23c   :  { %v709_v10 = vmul.f32 %v2989_v61, %v708_v18  ;;  %v710_v49 = vmul.f32 %v2990_v16, %v708_v18  ;;  %v715_v50 = vmul.f32 %v2991_v53, %v714_v15  ;;  %v716_v32 = vmul.f32 %v2992_v47, %v714_v15 }
 0x23d   :  { %v625_v38 = vrot.slane %v624_v40, 1  ;;  %v721_v33 = vmul.f32 %v2993_v28, %v720_v48  ;;  %v722_v26 = vmul.f32 %v2922_v42, %v720_v48  ;;  %v730_v14 = vadd.f32 %v638_v13, %v632_v31 }
 0x23e   :  { %v731_v5 = vadd.f32 %v649_v59, %v643_v0  ;;  %v732_v9 = vadd.f32 %v650_v19, %v644_v24  ;;  %v733_v27 = vadd.f32 %v661_v52, %v655_v41  ;;  %v734_v61 = vadd.f32 %v662_v23, %v656_v7 }
 0x23f   :  { %v626_v30 = vadd.f32 %v625_v38, %v624_v40  ;;  %v735_v21 = vadd.f32 %v673_v51, %v667_v57  ;;  %v736_v18 = vadd.f32 %v674_v25, %v668_v54  ;;  %v737_v16 = vadd.f32 %v685_v63, %v679_v3  ;;  %v2999_v40 = vld [vmem:[#allocation6_spill] sm:$0xff]  ;;  %v3002_v38 = vld [vmem:[#allocation8_spill] sm:$0xff] }
 0x240   :  { %v738_v8 = vadd.f32 %v686_v45, %v680_v11  ;;  %v739_v20 = vadd.f32 %v697_v44, %v691_v37  ;;  %v740_v36 = vadd.f32 %v698_v62, %v692_v43  ;;  %v741_v2 = vadd.f32 %v709_v10, %v703_v60  ;;  %v1363_v10 = vld [vmem:[%s2716_s9 + $0x38] sm:$0xff]  ;;  %v2997_v44 = vld [vmem:[#allocation36_spill] sm:$0xff] }
 0x241   :  { %v742_v53 = vadd.f32 %v710_v49, %v704_v56  ;;  %v743_v35 = vadd.f32 %v721_v33, %v715_v50  ;;  %v744_v15 = vadd.f32 %v722_v26, %v716_v32  ;;  %v745_v47 = vadd.f32 %v731_v5, %v729_v22  ;;  %v1362_v32 = vld [vmem:[%s2716_s9 + $0x30] sm:$0xff]  ;;  %1535 = vmatprep.subr.mxu1 %v1363_v10  ;;  %v1359_v37 = vld [vmem:[%s2716_s9 + $0x18] sm:$0xff]  ;;  %v1357_v26 = vld [vmem:[%s2716_s9 + $0x8] sm:$0xff] }
 0x242   :  { %v746_v28 = vadd.f32 %v732_v9, %v730_v14  ;;  %v747_v6 = vadd.f32 %v735_v21, %v733_v27  ;;  %v748_v48 = vadd.f32 %v736_v18, %v734_v61  ;;  %v749_v31 = vadd.f32 %v739_v20, %v737_v16  ;;  %1536 = vmatpush3.msra.mxu1 %v1363_v10  ;;  %v2995_v27 = vld [vmem:[#allocation5_spill] sm:$0xff]  ;;  %v3000_v9 = vld [vmem:[#allocation7_spill] sm:$0xff]  ;;  %v3001_v56 = vld [vmem:[#allocation38_spill] sm:$0xff] }
 0x243   :  { %v750_v13 = vadd.f32 %v740_v36, %v738_v8  ;;  %v751_v0 = vadd.f32 %v743_v35, %v741_v2  ;;  %v752_v24 = vadd.f32 %v744_v15, %v742_v53  ;;  %v2187_v19 = vsel %vm185_vm3, %v2129_v58, %v626_v30  ;;  %1537 = vmatprep.subr.mxu1 %v1362_v32  ;;  %v2998_v50 = vld [vmem:[#allocation37_spill] sm:$0xff]  ;;  %v3004_v61 = vld [vmem:[#allocation34_spill] sm:$0xff]  ;;  %v3005_v53 = vld [vmem:[#allocation35_spill] sm:$0xff] }
 0x244   :  { %v753_v59 = vadd.f32 %v747_v6, %v745_v47  ;;  %2994 = vst [vmem:[#allocation28_spill] sm:$0xff] %v2187_v19  ;;  %v754_v49 = vadd.f32 %v748_v48, %v746_v28  ;;  %v773_v35 = vrot.slane %v1950_v1, %v2960_v55  ;;  %v1361_v6 = vld [vmem:[%s2716_s9 + $0x28] sm:$0xff]  ;;  %v727_v58 = vmul.f32 %v1979_v12, %v726_v17  ;;  %v1360_v28 = vld [vmem:[%s2716_s9 + $0x20] sm:$0xff]  ;;  %v1358_v14 = vld [vmem:[%s2716_s9 + $0x10] sm:$0xff] }
 0x245   :  { %v755_v21 = vadd.f32 %v751_v0, %v749_v31  ;;  %v756_v41 = vadd.f32 %v752_v24, %v750_v13  ;;  %1538 = vmatpush3.msra.mxu1 %v1362_v32  ;;  %v728_v1 = vmul.f32 %v1984_v4, %v726_v17  ;;  %v3003_v22 = vld [vmem:[#allocation33_spill] sm:$0xff]  ;;  %v3007_v8 = vld [vmem:[#allocation10_spill] sm:$0xff]  ;;  %v3008_v36 = vld [vmem:[#allocation11_spill] sm:$0xff] }
 0x246   :  { %1539 = vmatprep.subr.mxu1 %v1361_v6  ;;  %v2208_v7 = vmul.f32 %v773_v35, %v2959_v46  ;;  %v2996_v46 = vld [vmem:[#allocation40_spill] sm:$0xff]  ;;  %v3006_v5 = vld [vmem:[#allocation9_spill] sm:$0xff]  ;;  %v3009_v48 = vld [vmem:[#allocation23_spill] sm:$0xff] }
 0x247   :  { %v757_v30 = vadd.f32 %v755_v21, %v753_v59  ;;  %v758_v47 = vadd.f32 %v756_v41, %v754_v49  ;;  %1540 = vmatpush3.msra.mxu1 %v1361_v6  ;;  %v775_v45 = vmul.f32 %v773_v35, %v2996_v46  ;;  %v3010_v13 = vld [vmem:[#allocation29_spill] sm:$0xff]  ;;  %v3011_v24 = vld [vmem:[#allocation30_spill] sm:$0xff]  ;;  %v3012_v10 = vld [vmem:[#allocation31_spill] sm:$0xff] }
 0x248   :  { %1541 = vmatprep.subr.mxu1 %v1360_v28  ;;  %v3013_v49 = vld [vmem:[#allocation32_spill] sm:$0xff]  ;;  %v1356_v41 = vld [vmem:[%s2716_s9] sm:$0xff] }
 0x249   :  { %v2204_v62 = vadd.f32 %v757_v30, %v727_v58  ;;  %1542 = vmatpush3.msra.mxu1 %v1360_v28  ;;  %v2231_v25 = vadd.f32 %v758_v47, %v728_v1  ;;  %v3014_v28 = vld [vmem:[#allocation12_spill] sm:$0xff] }
 0x24a   :  { %1543 = vmatprep.subr.mxu1 %v1359_v37 }
 0x24b   :  { %v779_v52 = vrot.slane %v2204_v62, %v1760_v39  ;;  %v785_v16 = vrot.slane %v2204_v62, %v1737_v34  ;;  %v791_v23 = vrot.slane %v2204_v62, %v1719_v29  ;;  %v797_v2 = vrot.slane %v2204_v62, %v2995_v27  ;;  %1544 = vmatpush3.msra.mxu1 %v1359_v37 }
 0x24c   :  { %v803_v57 = vrot.slane %v2204_v62, %v2960_v55  ;;  %v809_v54 = vrot.slane %v2204_v62, %v2997_v44  ;;  %v815_v51 = vrot.slane %v2204_v62, %v2998_v50  ;;  %v821_v63 = vrot.slane %v2204_v62, %v3001_v56  ;;  %1545 = vmatprep.subr.mxu1 %v1358_v14 }
 0x24d   :  { %v780_v3 = vmul.f32 %v779_v52, %v2999_v40  ;;  %v781_v11 = vmul.f32 %v779_v52, %v3000_v9  ;;  %v786_v43 = vmul.f32 %v3002_v38, %v785_v16  ;;  %v787_v60 = vmul.f32 %v3003_v22, %v785_v16  ;;  %1546 = vmatpush3.msra.mxu1 %v1358_v14  ;;  %v3015_v16 = vld [vmem:[#allocation13_spill] sm:$0xff]  ;;  %v3018_v14 = vld [vmem:[#allocation16_spill] sm:$0xff] }
 0x24e   :  { %v792_v17 = vmul.f32 %v3004_v61, %v791_v23  ;;  %v793_v33 = vmul.f32 %v3005_v53, %v791_v23  ;;  %v798_v18 = vmul.f32 %v3006_v5, %v797_v2  ;;  %v799_v20 = vmul.f32 %v3007_v8, %v797_v2  ;;  %1547 = vmatprep.subr.mxu1 %v1357_v26  ;;  %v3016_v2 = vld [vmem:[#allocation14_spill] sm:$0xff]  ;;  %v3019_v9 = vld [vmem:[#allocation17_spill] sm:$0xff] }
 0x24f   :  { %v804_v15 = vmul.f32 %v3008_v36, %v803_v57  ;;  %v805_v31 = vmul.f32 %v3009_v48, %v803_v57  ;;  %v810_v0 = vmul.f32 %v3010_v13, %v809_v54  ;;  %v811_v59 = vmul.f32 %v3011_v24, %v809_v54  ;;  %1548 = vmatpush3.msra.mxu1 %v1357_v26  ;;  %v3017_v57 = vld [vmem:[#allocation15_spill] sm:$0xff]  ;;  %v3020_v5 = vld [vmem:[#allocation18_spill] sm:$0xff]  ;;  %v3022_v26 = vld [vmem:[#allocation20_spill] sm:$0xff] }
 0x250   :  { %v816_v32 = vmul.f32 %v3012_v10, %v815_v51  ;;  %v817_v21 = vmul.f32 %v3013_v49, %v815_v51  ;;  %v827_v35 = vrot.slane %v2231_v25, %v1760_v39  ;;  %v833_v6 = vrot.slane %v2231_v25, %v1737_v34  ;;  %1549 = vmatprep.subr.mxu1 %v1356_v41  ;;  %v3021_v36 = vld [vmem:[#allocation19_spill] sm:$0xff]  ;;  %v3026_v10 = vld [vmem:[#allocation25_spill] sm:$0xff]  ;;  %v3027_v13 = vld [vmem:[#allocation26_spill] sm:$0xff] }
 0x251   :  { %v839_v58 = vrot.slane %v2231_v25, %v1719_v29  ;;  %v845_v30 = vrot.slane %v2231_v25, %v2995_v27  ;;  %v822_v47 = vmul.f32 %v3014_v28, %v821_v63  ;;  %v851_v1 = vrot.slane %v2231_v25, %v2960_v55  ;;  %1550 = vmatpush3.msra.mxu1 %v1356_v41 }
 0x252   :  { %v857_v37 = vrot.slane %v2231_v25, %v2997_v44  ;;  %v863_v52 = vrot.slane %v2231_v25, %v2998_v50  ;;  %v823_v23 = vmul.f32 %v3015_v16, %v821_v63  ;;  %v828_v46 = vmul.f32 %v3016_v2, %v827_v35  ;;  %v3023_v63 = vld [vmem:[#allocation21_spill] sm:$0xff]  ;;  %v3024_v2 = vld [vmem:[#allocation22_spill] sm:$0xff] }
 0x253   :  { %v829_v54 = vmul.f32 %v3017_v57, %v827_v35  ;;  %v869_v51 = vrot.slane %v2231_v25, %v3001_v56  ;;  %v834_v40 = vmul.f32 %v3018_v14, %v833_v6  ;;  %v835_v38 = vmul.f32 %v3019_v9, %v833_v6  ;;  %v3025_v35 = vld [vmem:[#allocation24_spill] sm:$0xff]  ;;  %v3028_v14 = vld [vmem:[#allocation27_spill] sm:$0xff] }
 0x254   :  { %v840_v8 = vmul.f32 %v3020_v5, %v839_v58  ;;  %v841_v28 = vmul.f32 %v3021_v36, %v839_v58  ;;  %v846_v19 = vmul.f32 %v3022_v26, %v845_v30  ;;  %v847_v16 = vmul.f32 %v3023_v63, %v845_v30 }
 0x255   :  { %v852_v49 = vmul.f32 %v3024_v2, %v851_v1  ;;  %v853_v57 = vmul.f32 %v3025_v35, %v851_v1  ;;  %v858_v24 = vmul.f32 %v3026_v10, %v857_v37  ;;  %v859_v48 = vmul.f32 %v3027_v13, %v857_v37 }
 0x256   :  { %v864_v53 = vmul.f32 %v3028_v14, %v863_v52  ;;  %v865_v6 = vmul.f32 %v2922_v42, %v863_v52  ;;  %v872_v9 = vadd.f32 %v780_v3, %v2208_v7  ;;  %v873_v58 = vadd.f32 %v781_v11, %v775_v45 }
 0x257   :  { %v874_v41 = vadd.f32 %v792_v17, %v786_v43  ;;  %v875_v5 = vadd.f32 %v793_v33, %v787_v60  ;;  %v876_v36 = vadd.f32 %v804_v15, %v798_v18  ;;  %v877_v26 = vadd.f32 %v805_v31, %v799_v20  ;;  %v3029_v17 = vld [vmem:[#allocation47_spill] sm:$0xff]  ;;  %v3030_v18 = vld [vmem:[#allocation48_spill] sm:$0xff] }
 0x258   :  { %v878_v30 = vadd.f32 %v816_v32, %v810_v0  ;;  %v879_v63 = vadd.f32 %v817_v21, %v811_v59  ;;  %v880_v2 = vadd.f32 %v828_v46, %v822_v47  ;;  %v881_v61 = vadd.f32 %v829_v54, %v823_v23  ;;  %v2315_v23 = vld [vmem:[%s2713_s6] sm:$0xff]  ;;  %v2321_v54 = vld [vmem:[%s2713_s6 + $0x8] sm:$0xff] }
 0x259   :  { %v882_v1 = vadd.f32 %v840_v8, %v834_v40  ;;  %v883_v35 = vadd.f32 %v841_v28, %v835_v38  ;;  %v884_v10 = vadd.f32 %v852_v49, %v846_v19  ;;  %v885_v22 = vadd.f32 %v853_v57, %v847_v16  ;;  %3031 = vst [vmem:[#allocation39_spill] sm:$0xff] %v2315_v23  ;;  %v3033_v40 = vld [vmem:[#allocation38_spill] sm:$0xff]  ;;  %v2331_v28 = vld [vmem:[%s2713_s6 + $0x10] sm:$0xff] }
 0x25a   :  { %v886_v13 = vadd.f32 %v864_v53, %v858_v24  ;;  %v887_v37 = vadd.f32 %v865_v6, %v859_v48  ;;  %v888_v14 = vadd.f32 %v874_v41, %v872_v9  ;;  %v889_v56 = vadd.f32 %v875_v5, %v873_v58  ;;  %3032 = vst [vmem:[#allocation5_spill] sm:$0xff] %v2321_v54  ;;  %v3035_v57 = vld [vmem:[#allocation33_spill] sm:$0xff]  ;;  %v3036_v9 = vld [vmem:[#allocation34_spill] sm:$0xff]  ;;  %v3037_v41 = vld [vmem:[#allocation35_spill] sm:$0xff] }
 0x25b   :  { %v890_v42 = vadd.f32 %v878_v30, %v876_v36  ;;  %v891_v52 = vadd.f32 %v879_v63, %v877_v26  ;;  %v892_v7 = vadd.f32 %v882_v1, %v880_v2  ;;  %v893_v45 = vadd.f32 %v883_v35, %v881_v61  ;;  %3034 = vst [vmem:[#allocation40_spill] sm:$0xff] %v2331_v28  ;;  %v2340_v36 = vld [vmem:[%s2713_s6 + $0x30] sm:$0xff]  ;;  %v2346_v30 = vld [vmem:[%s2713_s6 + $0x38] sm:$0xff]  ;;  %v2352_v2 = vld [vmem:[%s2713_s6 + $0x40] sm:$0xff] }
 0x25c   :  { %v894_v3 = vadd.f32 %v886_v13, %v884_v10  ;;  %v895_v11 = vadd.f32 %v887_v37, %v885_v22  ;;  %v761_v33 = vmul.f32 %v2204_v62, %v3029_v17  ;;  %v762_v20 = vmul.f32 %v2231_v25, %v3030_v18  ;;  %3038 = vst [vmem:[#allocation6_spill] sm:$0xff] %v2340_v36  ;;  %v3041_v35 = vld [vmem:[#allocation23_spill] sm:$0xff]  ;;  %v3042_v13 = vld [vmem:[#allocation29_spill] sm:$0xff] }
 0x25d   :  { %v896_v43 = vadd.f32 %v890_v42, %v888_v14  ;;  %v897_v60 = vadd.f32 %v891_v52, %v889_v56  ;;  %v870_v48 = vmul.f32 %v1979_v12, %v869_v51  ;;  %v871_v22 = vmul.f32 %v1984_v4, %v869_v51  ;;  %3039 = vst [vmem:[#allocation7_spill] sm:$0xff] %v2346_v30  ;;  %v3043_v14 = vld [vmem:[#allocation30_spill] sm:$0xff]  ;;  %v3044_v52 = vld [vmem:[#allocation31_spill] sm:$0xff] }
 0x25e   :  { %v898_v19 = vadd.f32 %v894_v3, %v892_v7  ;;  %v899_v15 = vadd.f32 %v895_v11, %v893_v45  ;;  %v763_v53 = vadd.f32 %v762_v20, %v761_v33  ;;  %3040 = vst [vmem:[#allocation8_spill] sm:$0xff] %v2352_v2  ;;  %v3045_v45 = vld [vmem:[#allocation32_spill] sm:$0xff]  ;;  %v2371_v20 = vld [vmem:[%s2713_s6 + $0x70] sm:$0xff] }
 0x25f   :  { %3046 = vst [vmem:[#allocation9_spill] sm:$0xff] %v2371_v20 }
 0x260   :  { %v900_v31 = vadd.f32 %v898_v19, %v896_v43  ;;  %v901_v0 = vadd.f32 %v899_v15, %v897_v60  ;;  %v764_v61 = vrot.slane %v763_v53, 4 }
 0x262   :  { %v2293_v24 = vadd.f32 %v900_v31, %v870_v48  ;;  %v2304_v32 = vadd.f32 %v901_v0, %v871_v22  ;;  %v2326_v8 = vadd.f32 %v764_v61, %v763_v53  ;;  %v2383_v31 = vld [vmem:[%s2713_s6 + $0x78] sm:$0xff]  ;;  %v2389_v61 = vld [vmem:[%s2713_s6 + $0x80] sm:$0xff] }
 0x263   :  { %3047 = vst [vmem:[#allocation10_spill] sm:$0xff] %v2383_v31  ;;  %3048 = vst [vmem:[#allocation11_spill] sm:$0xff] %v2389_v61 }
 0x264   :  { %v922_v56 = vrot.slane %v2293_v24, %v1760_v39  ;;  %v928_v62 = vrot.slane %v2293_v24, %v1737_v34  ;;  %v934_v25 = vrot.slane %v2293_v24, %v1719_v29  ;;  %v940_v59 = vrot.slane %v2293_v24, %v2995_v27 }
 0x265   :  { %v946_v49 = vrot.slane %v2293_v24, %v2960_v55  ;;  %v952_v21 = vrot.slane %v2293_v24, %v2997_v44  ;;  %v958_v47 = vrot.slane %v2293_v24, %v2998_v50  ;;  %v964_v38 = vrot.slane %v2293_v24, %v3033_v40 }
 0x266   :  { %v923_v46 = vmul.f32 %v2315_v23, %v922_v56  ;;  %v924_v51 = vmul.f32 %v2321_v54, %v922_v56  ;;  %v929_v16 = vmul.f32 %v2331_v28, %v928_v62  ;;  %v930_v6 = vmul.f32 %v3035_v57, %v928_v62  ;;  %v2395_v56 = vld [vmem:[%s2713_s6 + $0x88] sm:$0xff] }
 0x267   :  { %v935_v58 = vmul.f32 %v3036_v9, %v934_v25  ;;  %v936_v5 = vmul.f32 %v3037_v41, %v934_v25  ;;  %v941_v26 = vmul.f32 %v2340_v36, %v940_v59  ;;  %v942_v63 = vmul.f32 %v2346_v30, %v940_v59  ;;  %3049 = vst [vmem:[#allocation12_spill] sm:$0xff] %v2395_v56  ;;  %v2403_v59 = vld [vmem:[%s2713_s6 + $0x90] sm:$0xff]  ;;  %v2421_v9 = vld [vmem:[%s2713_s6 + $0xa8] sm:$0xff] }
 0x268   :  { %v947_v1 = vmul.f32 %v2352_v2, %v946_v49  ;;  %v948_v10 = vmul.f32 %v3041_v35, %v946_v49  ;;  %v953_v37 = vmul.f32 %v3042_v13, %v952_v21  ;;  %v954_v42 = vmul.f32 %v3043_v14, %v952_v21  ;;  %3050 = vst [vmem:[#allocation13_spill] sm:$0xff] %v2403_v59  ;;  %v2409_v21 = vld [vmem:[%s2713_s6 + $0x98] sm:$0xff]  ;;  %v2427_v35 = vld [vmem:[%s2713_s6 + $0xb0] sm:$0xff] }
 0x269   :  { %v959_v7 = vmul.f32 %v3044_v52, %v958_v47  ;;  %v960_v3 = vmul.f32 %v3045_v45, %v958_v47  ;;  %v970_v11 = vrot.slane %v2304_v32, %v1760_v39  ;;  %v976_v43 = vrot.slane %v2304_v32, %v1737_v34  ;;  %3051 = vst [vmem:[#allocation14_spill] sm:$0xff] %v2409_v21  ;;  %v2433_v14 = vld [vmem:[%s2713_s6 + $0xb8] sm:$0xff]  ;;  %v2439_v45 = vld [vmem:[%s2713_s6 + $0xc0] sm:$0xff] }
 0x26a   :  { %v982_v60 = vrot.slane %v2304_v32, %v1719_v29  ;;  %v988_v33 = vrot.slane %v2304_v32, %v2995_v27  ;;  %v965_v19 = vmul.f32 %v2371_v20, %v964_v38  ;;  %v994_v15 = vrot.slane %v2304_v32, %v2960_v55  ;;  %3053 = vst [vmem:[#allocation16_spill] sm:$0xff] %v2421_v9 }
 0x26b   :  { %v1000_v53 = vrot.slane %v2304_v32, %v2997_v44  ;;  %v1006_v48 = vrot.slane %v2304_v32, %v2998_v50  ;;  %v966_v0 = vmul.f32 %v2383_v31, %v964_v38  ;;  %v971_v22 = vmul.f32 %v2389_v61, %v970_v11  ;;  %v2415_v38 = vld [vmem:[%s2713_s6 + $0xa0] sm:$0xff]  ;;  %3054 = vst [vmem:[#allocation17_spill] sm:$0xff] %v2427_v35 }
 0x26c   :  { %v972_v62 = vmul.f32 %v2395_v56, %v970_v11  ;;  %v1012_v25 = vrot.slane %v2304_v32, %v3033_v40  ;;  %v977_v49 = vmul.f32 %v2403_v59, %v976_v43  ;;  %v978_v47 = vmul.f32 %v2409_v21, %v976_v43  ;;  %3052 = vst [vmem:[#allocation15_spill] sm:$0xff] %v2415_v38  ;;  %v2445_v43 = vld [vmem:[%s2713_s6 + $0xc8] sm:$0xff]  ;;  %v3063_v59 = vld [vmem:[#allocation42_spill] sm:$0xff] }
 0x26d   :  { %v983_v57 = vmul.f32 %v2415_v38, %v982_v60  ;;  %v984_v41 = vmul.f32 %v2421_v9, %v982_v60  ;;  %v989_v13 = vmul.f32 %v2427_v35, %v988_v33  ;;  %3055 = vst [vmem:[#allocation18_spill] sm:$0xff] %v2433_v14  ;;  %v990_v52 = vmul.f32 %v2433_v14, %v988_v33  ;;  %v2451_v35 = vld [vmem:[%s2713_s6 + $0xd0] sm:$0xff]  ;;  %v2457_v14 = vld [vmem:[%s2713_s6 + $0xd8] sm:$0xff]  ;;  %v2463_v9 = vld [vmem:[%s2713_s6 + $0xe0] sm:$0xff] }
 0x26e   :  { %3056 = vst [vmem:[#allocation19_spill] sm:$0xff] %v2439_v45  ;;  %v995_v11 = vmul.f32 %v2439_v45, %v994_v15  ;;  %3057 = vst [vmem:[#allocation20_spill] sm:$0xff] %v2445_v43  ;;  %v996_v60 = vmul.f32 %v2445_v43, %v994_v15  ;;  %v1001_v33 = vmul.f32 %v2451_v35, %v1000_v53  ;;  %v2469_v43 = vld [vmem:[%s2713_s6 + $0xe8] sm:$0xff]  ;;  %v3062_v38 = vld [vmem:[#allocation41_spill] sm:$0xff] }
 0x26f   :  { %3058 = vst [vmem:[#allocation21_spill] sm:$0xff] %v2451_v35  ;;  %3059 = vst [vmem:[#allocation22_spill] sm:$0xff] %v2457_v14  ;;  %v1002_v45 = vmul.f32 %v2457_v14, %v1000_v53  ;;  %v1007_v15 = vmul.f32 %v2463_v9, %v1006_v48  ;;  %v1008_v35 = vmul.f32 %v2469_v43, %v1006_v48 }
 0x270   :  { %3060 = vst [vmem:[#allocation24_spill] sm:$0xff] %v2463_v9  ;;  %3061 = vst [vmem:[#allocation25_spill] sm:$0xff] %v2469_v43  ;;  %v1015_v21 = vadd.f32 %v923_v46, %v3062_v38  ;;  %v1016_v56 = vadd.f32 %v924_v51, %v3063_v59  ;;  %v1017_v61 = vadd.f32 %v935_v58, %v929_v16  ;;  %v2513_v59 = vld [vmem:[%s2713_s6 + $0x18] sm:$0xff] }
 0x271   :  { %v1018_v53 = vadd.f32 %v936_v5, %v930_v6  ;;  %v1019_v14 = vadd.f32 %v947_v1, %v941_v26  ;;  %v1020_v31 = vadd.f32 %v948_v10, %v942_v63  ;;  %v1021_v20 = vadd.f32 %v959_v7, %v953_v37 }
 0x272   :  { %v1022_v2 = vadd.f32 %v960_v3, %v954_v42  ;;  %v1023_v30 = vadd.f32 %v971_v22, %v965_v19  ;;  %v1024_v36 = vadd.f32 %v972_v62, %v966_v0  ;;  %v1025_v9 = vadd.f32 %v983_v57, %v977_v49  ;;  %v3069_v62 = vld [vmem:[#allocation40_spill] sm:$0xff] }
 0x273   :  { %v1026_v28 = vadd.f32 %v984_v41, %v978_v47  ;;  %v1027_v40 = vadd.f32 %v995_v11, %v989_v13  ;;  %v1028_v54 = vadd.f32 %v996_v60, %v990_v52  ;;  %v1029_v23 = vadd.f32 %v1007_v15, %v1001_v33  ;;  %v2525_v57 = vld [vmem:[%s2713_s6 + $0x28] sm:$0xff]  ;;  %v3072_v41 = vld [vmem:[#allocation6_spill] sm:$0xff]  ;;  %v3073_v13 = vld [vmem:[#allocation7_spill] sm:$0xff] }
 0x274   :  { %v1030_v50 = vadd.f32 %v1008_v35, %v1002_v45  ;;  %v1031_v44 = vadd.f32 %v1017_v61, %v1015_v21  ;;  %v1032_v48 = vadd.f32 %v1018_v53, %v1016_v56  ;;  %v1033_v43 = vadd.f32 %v1021_v20, %v1019_v14  ;;  %v3066_v20 = vld [vmem:[#allocation39_spill] sm:$0xff]  ;;  %v3068_v61 = vld [vmem:[#allocation38_spill] sm:$0xff]  ;;  %3071 = vst [vmem:[#allocation27_spill] sm:$0xff] %v2525_v57  ;;  %v3074_v52 = vld [vmem:[#allocation8_spill] sm:$0xff] }
 0x275   :  { %v1034_v46 = vadd.f32 %v1022_v2, %v1020_v31  ;;  %v1035_v38 = vadd.f32 %v1025_v9, %v1023_v30  ;;  %v1036_v51 = vadd.f32 %v1026_v28, %v1024_v36  ;;  %v1037_v16 = vadd.f32 %v1029_v23, %v1027_v40  ;;  %v3065_v30 = vld [vmem:[#allocation37_spill] sm:$0xff]  ;;  %v2519_v21 = vld [vmem:[%s2713_s6 + $0x20] sm:$0xff]  ;;  %v2534_v11 = vld [vmem:[%s2713_s6 + $0x48] sm:$0xff] }
 0x276   :  { %v1038_v6 = vadd.f32 %v1030_v50, %v1028_v54  ;;  %v1039_v58 = vadd.f32 %v1033_v43, %v1031_v44  ;;  %v766_v26 = vrot.slane %v2326_v8, 2  ;;  %v904_v63 = vmul.f32 %v2293_v24, %v3029_v17  ;;  %v3067_v31 = vld [vmem:[#allocation5_spill] sm:$0xff]  ;;  %3070 = vst [vmem:[#allocation26_spill] sm:$0xff] %v2519_v21  ;;  %3075 = vst [vmem:[#allocation47_spill] sm:$0xff] %v2534_v11  ;;  %v2546_v15 = vld [vmem:[%s2713_s6 + $0x58] sm:$0xff] }
 0x277   :  { %v1040_v5 = vadd.f32 %v1034_v46, %v1032_v48  ;;  %v1041_v1 = vadd.f32 %v1037_v16, %v1035_v38  ;;  %v905_v37 = vmul.f32 %v2304_v32, %v3030_v18  ;;  %v1013_v2 = vmul.f32 %v1979_v12, %v1012_v25  ;;  %v2540_v60 = vld [vmem:[%s2713_s6 + $0x50] sm:$0xff]  ;;  %3077 = vst [vmem:[#allocation33_spill] sm:$0xff] %v2546_v15  ;;  %v2552_v48 = vld [vmem:[%s2713_s6 + $0x60] sm:$0xff]  ;;  %v2558_v38 = vld [vmem:[%s2713_s6 + $0x68] sm:$0xff] }
 0x278   :  { %v1042_v10 = vadd.f32 %v1038_v6, %v1036_v51  ;;  %v767_v42 = vadd.f32 %v766_v26, %v2326_v8  ;;  %v1014_v28 = vmul.f32 %v1984_v4, %v1012_v25  ;;  %v3064_v8 = vld [vmem:[#allocation36_spill] sm:$0xff]  ;;  %3076 = vst [vmem:[#allocation48_spill] sm:$0xff] %v2540_v60  ;;  %3078 = vst [vmem:[#allocation34_spill] sm:$0xff] %v2552_v48  ;;  %v3080_v26 = vld [vmem:[#allocation9_spill] sm:$0xff] }
 0x279   :  { %v1043_v23 = vadd.f32 %v1041_v1, %v1039_v58  ;;  %v2482_v44 = vadd.f32 %v905_v37, %v904_v63  ;;  %3079 = vst [vmem:[#allocation35_spill] sm:$0xff] %v2558_v38  ;;  %v3087_v3 = vld [vmem:[#allocation16_spill] sm:$0xff] }
 0x27a   :  { %v1044_v50 = vadd.f32 %v1042_v10, %v1040_v5  ;;  %v768_v17 = vrot.slane %v767_v42, 1 }
 0x27b   :  { %v2484_v54 = vadd.f32 %v1043_v23, %v1013_v2 }
 0x27c   :  { %v2486_v40 = vadd.f32 %v1044_v50, %v1014_v28  ;;  %v2507_v56 = vadd.f32 %v768_v17, %v767_v42  ;;  %v3081_v42 = vld [vmem:[#allocation10_spill] sm:$0xff]  ;;  %v3082_v28 = vld [vmem:[#allocation11_spill] sm:$0xff]  ;;  %v3083_v50 = vld [vmem:[#allocation12_spill] sm:$0xff] }
 0x27d   :  { %v1065_v24 = vrot.slane %v2484_v54, %v1760_v39  ;;  %v1071_v18 = vrot.slane %v2484_v54, %v1737_v34  ;;  %v1077_v12 = vrot.slane %v2484_v54, %v1719_v29  ;;  %v1083_v4 = vrot.slane %v2484_v54, %v2995_v27 }
 0x27e   :  { %v1089_v32 = vrot.slane %v2484_v54, %v2960_v55  ;;  %v1095_v36 = vrot.slane %v2484_v54, %v3064_v8  ;;  %v1101_v7 = vrot.slane %v2484_v54, %v3065_v30  ;;  %v1107_v22 = vrot.slane %v2484_v54, %v3068_v61 }
 0x27f   :  { %v1066_v19 = vmul.f32 %v3066_v20, %v1065_v24  ;;  %v1067_v0 = vmul.f32 %v3067_v31, %v1065_v24  ;;  %v1072_v25 = vmul.f32 %v3069_v62, %v1071_v18  ;;  %v1073_v49 = vmul.f32 %v2513_v59, %v1071_v18  ;;  %v3084_v18 = vld [vmem:[#allocation13_spill] sm:$0xff] }
 0x280   :  { %v1078_v47 = vmul.f32 %v2519_v21, %v1077_v12  ;;  %v1079_v9 = vmul.f32 %v2525_v57, %v1077_v12  ;;  %v1084_v35 = vmul.f32 %v3072_v41, %v1083_v4  ;;  %v1085_v14 = vmul.f32 %v3073_v13, %v1083_v4  ;;  %v3085_v4 = vld [vmem:[#allocation14_spill] sm:$0xff]  ;;  %v3094_v41 = vld [vmem:[#allocation24_spill] sm:$0xff] }
 0x281   :  { %v1090_v45 = vmul.f32 %v3074_v52, %v1089_v32  ;;  %v1091_v43 = vmul.f32 %v2534_v11, %v1089_v32  ;;  %v1096_v33 = vmul.f32 %v2540_v60, %v1095_v36  ;;  %v1097_v53 = vmul.f32 %v2546_v15, %v1095_v36  ;;  %v3086_v36 = vld [vmem:[#allocation15_spill] sm:$0xff]  ;;  %v3089_v15 = vld [vmem:[#allocation18_spill] sm:$0xff] }
 0x282   :  { %v1102_v46 = vmul.f32 %v2552_v48, %v1101_v7  ;;  %v1103_v51 = vmul.f32 %v2558_v38, %v1101_v7  ;;  %v1113_v16 = vrot.slane %v2486_v40, %v1760_v39  ;;  %v1119_v6 = vrot.slane %v2486_v40, %v1737_v34  ;;  %v3088_v38 = vld [vmem:[#allocation17_spill] sm:$0xff]  ;;  %v3093_v52 = vld [vmem:[#allocation22_spill] sm:$0xff] }
 0x283   :  { %v1125_v58 = vrot.slane %v2486_v40, %v1719_v29  ;;  %v1131_v5 = vrot.slane %v2486_v40, %v2995_v27  ;;  %v1108_v63 = vmul.f32 %v3080_v26, %v1107_v22  ;;  %v1137_v1 = vrot.slane %v2486_v40, %v2960_v55 }
 0x284   :  { %v1143_v10 = vrot.slane %v2486_v40, %v3064_v8  ;;  %v1149_v37 = vrot.slane %v2486_v40, %v3065_v30  ;;  %v1109_v2 = vmul.f32 %v3081_v42, %v1107_v22  ;;  %v1114_v23 = vmul.f32 %v3082_v28, %v1113_v16  ;;  %v3090_v22 = vld [vmem:[#allocation19_spill] sm:$0xff]  ;;  %v3091_v28 = vld [vmem:[#allocation20_spill] sm:$0xff] }
 0x285   :  { %v1115_v17 = vmul.f32 %v3083_v50, %v1113_v16  ;;  %v1155_v24 = vrot.slane %v2486_v40, %v3068_v61  ;;  %v1120_v12 = vmul.f32 %v3084_v18, %v1119_v6  ;;  %v1121_v32 = vmul.f32 %v3085_v4, %v1119_v6  ;;  %v3092_v16 = vld [vmem:[#allocation21_spill] sm:$0xff]  ;;  %v3096_v4 = vld [vmem:[#allocation43_spill] sm:$0xff]  ;;  %v3097_v30 = vld [vmem:[#allocation44_spill] sm:$0xff] }
 0x286   :  { %v1126_v7 = vmul.f32 %v3086_v36, %v1125_v58  ;;  %v1127_v26 = vmul.f32 %v3087_v3, %v1125_v58  ;;  %v1132_v48 = vmul.f32 %v3088_v38, %v1131_v5  ;;  %v1133_v60 = vmul.f32 %v3089_v15, %v1131_v5  ;;  %v3095_v61 = vld [vmem:[#allocation25_spill] sm:$0xff] }
 0x287   :  { %v1138_v42 = vmul.f32 %v3090_v22, %v1137_v1  ;;  %v1139_v11 = vmul.f32 %v3091_v28, %v1137_v1  ;;  %v1144_v50 = vmul.f32 %v3092_v16, %v1143_v10  ;;  %v1145_v13 = vmul.f32 %v3093_v52, %v1143_v10 }
 0x288   :  { %v1150_v18 = vmul.f32 %v3094_v41, %v1149_v37  ;;  %v1151_v6 = vmul.f32 %v3095_v61, %v1149_v37  ;;  %v1158_v36 = vadd.f32 %v1066_v19, %v3096_v4  ;;  %v1159_v58 = vadd.f32 %v1067_v0, %v3097_v30 }
 0x289   :  { %v1160_v3 = vadd.f32 %v1078_v47, %v1072_v25  ;;  %v1161_v38 = vadd.f32 %v1079_v9, %v1073_v49  ;;  %v1162_v8 = vadd.f32 %v1090_v45, %v1084_v35  ;;  %v1163_v5 = vadd.f32 %v1091_v43, %v1085_v14  ;;  %v2601_v14 = vld [vmem:[%s2715_s8] sm:$0xff] }
 0x28a   :  { %v1164_v15 = vadd.f32 %v1102_v46, %v1096_v33  ;;  %v1165_v22 = vadd.f32 %v1103_v51, %v1097_v53  ;;  %v1166_v55 = vadd.f32 %v1114_v23, %v1108_v63  ;;  %v1167_v1 = vadd.f32 %v1115_v17, %v1109_v2 }
 0x28b   :  { %v1168_v28 = vadd.f32 %v1126_v7, %v1120_v12  ;;  %v1169_v16 = vadd.f32 %v1127_v26, %v1121_v32  ;;  %v1170_v57 = vadd.f32 %v1138_v42, %v1132_v48  ;;  %v1171_v10 = vadd.f32 %v1139_v11, %v1133_v60 }
 0x28c   :  { %v1172_v52 = vadd.f32 %v1150_v18, %v1144_v50  ;;  %v1173_v41 = vadd.f32 %v1151_v6, %v1145_v13  ;;  %v1174_v21 = vadd.f32 %v1160_v3, %v1158_v36  ;;  %v1175_v37 = vadd.f32 %v1161_v38, %v1159_v58  ;;  %v3100_v36 = vld [vmem:[#allocation26_spill] sm:$0xff]  ;;  %v3102_v6 = vld [vmem:[#allocation49_spill] sm:$0xff] }
 0x28d   :  { %v1176_v61 = vadd.f32 %v1164_v15, %v1162_v8  ;;  %v1177_v19 = vadd.f32 %v1165_v22, %v1163_v5  ;;  %v1178_v4 = vadd.f32 %v1168_v28, %v1166_v55  ;;  %v1179_v30 = vadd.f32 %v1169_v16, %v1167_v1  ;;  %v2608_v55 = vld [vmem:[%s2715_s8 + $0x8] sm:$0xff]  ;;  %v3101_v22 = vld [vmem:[#allocation27_spill] sm:$0xff] }
 0x28e   :  { %v1180_v0 = vadd.f32 %v1172_v52, %v1170_v57  ;;  %v1181_v25 = vadd.f32 %v1173_v41, %v1171_v10  ;;  %v3098_v9 = vrot.slane %v2482_v44, 4  ;;  %v1047_v3 = vmul.f32 %v2601_v14, %v2484_v54  ;;  %v2620_v57 = vld [vmem:[%s2713_s6 + $0xf0] sm:$0xff]  ;;  %v2626_v52 = vld [vmem:[%s2713_s6 + $0xf8] sm:$0xff]  ;;  %v3103_v5 = vld [vmem:[#allocation36_spill] sm:$0xff] }
 0x28f   :  { %v1182_v49 = vadd.f32 %v1176_v61, %v1174_v21  ;;  %v1183_v47 = vadd.f32 %v1177_v19, %v1175_v37  ;;  %v1048_v61 = vmul.f32 %v2608_v55, %v2486_v40  ;;  %v1156_v54 = vmul.f32 %v2620_v57, %v1155_v24  ;;  %v3104_v10 = vld [vmem:[#allocation37_spill] sm:$0xff]  ;;  %v3105_v19 = vld [vmem:[#allocation38_spill] sm:$0xff] }
 0x290   :  { %v908_v35 = vadd.f32 %v3098_v9, %v2482_v44  ;;  %v1184_v8 = vadd.f32 %v1180_v0, %v1178_v4  ;;  %v1185_v13 = vadd.f32 %v1181_v25, %v1179_v30  ;;  %v3099_v44 = vld [vmem:[#allocation28_spill] sm:$0xff]  ;;  %v1157_v40 = vmul.f32 %v2626_v52, %v1155_v24  ;;  %v3106_v30 = vld [vmem:[#allocation6_spill] sm:$0xff]  ;;  %v3107_v0 = vld [vmem:[#allocation7_spill] sm:$0xff] }
 0x291   :  { %v2615_v21 = vsel %vm195_vm4, %v3099_v44, %v2507_v56  ;;  %v1049_v43 = vadd.f32 %v1048_v61, %v1047_v3  ;;  %v3109_v9 = vld [vmem:[#allocation47_spill] sm:$0xff]  ;;  %v3110_v61 = vld [vmem:[#allocation48_spill] sm:$0xff] }
 0x292   :  { %v909_v41 = vrot.slane %v908_v35, 2  ;;  %v1186_v45 = vadd.f32 %v1184_v8, %v1182_v49  ;;  %v1187_v11 = vadd.f32 %v1185_v13, %v1183_v47  ;;  %v3108_v49 = vld [vmem:[#allocation8_spill] sm:$0xff] }
 0x293   :  { %v1050_v15 = vrot.slane %v1049_v43, 4 }
 0x294   :  { %v910_v56 = vadd.f32 %v909_v41, %v908_v35  ;;  %v1188_v60 = vadd.f32 %v1186_v45, %v1156_v54  ;;  %v1189_v33 = vadd.f32 %v1187_v11, %v1157_v40  ;;  %v3111_v54 = vld [vmem:[#allocation33_spill] sm:$0xff]  ;;  %v3112_v40 = vld [vmem:[#allocation34_spill] sm:$0xff]  ;;  %v3113_v11 = vld [vmem:[#allocation35_spill] sm:$0xff] }
 0x295   :  { %v1051_v48 = vadd.f32 %v1050_v15, %v1049_v43 }
 0x296   :  { %v911_v53 = vrot.slane %v910_v56, 1  ;;  %v1190_v46 = vmul.f32 %v2601_v14, %v1188_v60  ;;  %v1191_v38 = vmul.f32 %v2608_v55, %v1189_v33  ;;  %v1208_v51 = vrot.slane %v1188_v60, %v1760_v39 }
 0x297   :  { %v1214_v26 = vrot.slane %v1188_v60, %v1737_v34  ;;  %v1220_v63 = vrot.slane %v1188_v60, %v1719_v29  ;;  %v1052_v2 = vrot.slane %v1051_v48, 2  ;;  %v1226_v23 = vrot.slane %v1188_v60, %v2995_v27 }
 0x298   :  { %v2634_v42 = vadd.f32 %v911_v53, %v910_v56  ;;  %v1192_v28 = vadd.f32 %v1191_v38, %v1190_v46  ;;  %v1209_v50 = vmul.f32 %v3066_v20, %v1208_v51  ;;  %v1210_v17 = vmul.f32 %v3067_v31, %v1208_v51  ;;  %v3114_v56 = vld [vmem:[#allocation9_spill] sm:$0xff]  ;;  %v3117_v38 = vld [vmem:[#allocation12_spill] sm:$0xff] }
 0x299   :  { %v1215_v24 = vmul.f32 %v3069_v62, %v1214_v26  ;;  %v1216_v18 = vmul.f32 %v2513_v59, %v1214_v26  ;;  %v1053_v12 = vadd.f32 %v1052_v2, %v1051_v48  ;;  %v1221_v7 = vmul.f32 %v3100_v36, %v1220_v63  ;;  %v3116_v48 = vld [vmem:[#allocation11_spill] sm:$0xff]  ;;  %v3119_v36 = vld [vmem:[#allocation14_spill] sm:$0xff] }
 0x29a   :  { %v1193_v32 = vrot.slane %v1192_v28, 4  ;;  %v1222_v16 = vmul.f32 %v3101_v22, %v1220_v63  ;;  %v1232_v58 = vrot.slane %v1188_v60, %v3102_v6  ;;  %v1238_v1 = vrot.slane %v1188_v60, %v3103_v5 }
 0x29b   :  { %v1244_v37 = vrot.slane %v1188_v60, %v3104_v10  ;;  %v1250_v20 = vrot.slane %v1188_v60, %v3105_v19  ;;  %v1054_v4 = vrot.slane %v1053_v12, 1  ;;  %v1227_v62 = vmul.f32 %v3106_v30, %v1226_v23  ;;  %v3115_v60 = vld [vmem:[#allocation10_spill] sm:$0xff]  ;;  %v3124_v30 = vld [vmem:[#allocation19_spill] sm:$0xff] }
 0x29c   :  { %v1194_v31 = vadd.f32 %v1193_v32, %v1192_v28  ;;  %v1256_v59 = vrot.slane %v1189_v33, %v1760_v39  ;;  %v1228_v25 = vmul.f32 %v3107_v0, %v1226_v23  ;;  %v1233_v47 = vmul.f32 %v3108_v49, %v1232_v58  ;;  %v3126_v49 = vld [vmem:[#allocation21_spill] sm:$0xff] }
 0x29d   :  { %v1234_v35 = vmul.f32 %v3109_v9, %v1232_v58  ;;  %v1262_v3 = vrot.slane %v1189_v33, %v1737_v34  ;;  %v1055_v8 = vadd.f32 %v1054_v4, %v1053_v12  ;;  %v1239_v44 = vmul.f32 %v3110_v61, %v1238_v1  ;;  %v3118_v12 = vld [vmem:[#allocation13_spill] sm:$0xff]  ;;  %v3120_v58 = vld [vmem:[#allocation15_spill] sm:$0xff]  ;;  %v3128_v61 = vld [vmem:[#allocation24_spill] sm:$0xff] }
 0x29e   :  { %v1195_v13 = vrot.slane %v1194_v31, 2  ;;  %v1240_v41 = vmul.f32 %v3111_v54, %v1238_v1  ;;  %v1245_v45 = vmul.f32 %v3112_v40, %v1244_v37  ;;  %v1246_v43 = vmul.f32 %v3113_v11, %v1244_v37  ;;  %v3121_v37 = vld [vmem:[#allocation16_spill] sm:$0xff]  ;;  %v3129_v40 = vld [vmem:[#allocation25_spill] sm:$0xff] }
 0x29f   :  { %v1251_v39 = vmul.f32 %v3114_v56, %v1250_v20  ;;  %v1252_v15 = vmul.f32 %v3115_v60, %v1250_v20  ;;  %v1257_v46 = vmul.f32 %v3116_v48, %v1256_v59  ;;  %v1258_v51 = vmul.f32 %v3117_v38, %v1256_v59  ;;  %v3122_v20 = vld [vmem:[#allocation17_spill] sm:$0xff]  ;;  %v3125_v59 = vld [vmem:[#allocation20_spill] sm:$0xff]  ;;  %v3131_v48 = vld [vmem:[#allocation46_spill] sm:$0xff] }
 0x2a0   :  { %v1196_v53 = vadd.f32 %v1195_v13, %v1194_v31  ;;  %v1268_v34 = vrot.slane %v1189_v33, %v1719_v29  ;;  %v1274_v26 = vrot.slane %v1189_v33, %v2995_v27  ;;  %v1280_v63 = vrot.slane %v1189_v33, %v3102_v6  ;;  %v3123_v27 = vld [vmem:[#allocation18_spill] sm:$0xff]  ;;  %v3130_v56 = vld [vmem:[#allocation45_spill] sm:$0xff] }
 0x2a1   :  { %v1286_v2 = vrot.slane %v1189_v33, %v3103_v5  ;;  %v1292_v28 = vrot.slane %v1189_v33, %v3104_v10  ;;  %v1263_v32 = vmul.f32 %v3118_v12, %v1262_v3  ;;  %v1264_v22 = vmul.f32 %v3119_v36, %v1262_v3  ;;  %v3127_v13 = vld [vmem:[#allocation22_spill] sm:$0xff] }
 0x2a2   :  { %v1197_v23 = vrot.slane %v1196_v53, 1  ;;  %v1269_v1 = vmul.f32 %v3120_v58, %v1268_v34  ;;  %v1270_v29 = vmul.f32 %v3121_v37, %v1268_v34  ;;  %v1275_v4 = vmul.f32 %v3122_v20, %v1274_v26 }
 0x2a3   :  { %v1276_v31 = vmul.f32 %v3123_v27, %v1274_v26  ;;  %v1298_v6 = vrot.slane %v1189_v33, %v3105_v19  ;;  %v1281_v10 = vmul.f32 %v3124_v30, %v1280_v63  ;;  %v1282_v0 = vmul.f32 %v3125_v59, %v1280_v63 }
 0x2a4   :  { %v1198_v5 = vadd.f32 %v1197_v23, %v1196_v53  ;;  %v1287_v9 = vmul.f32 %v3126_v49, %v1286_v2  ;;  %v1288_v3 = vmul.f32 %v3127_v13, %v1286_v2  ;;  %v1293_v54 = vmul.f32 %v3128_v61, %v1292_v28 }
 0x2a5   :  { %v1294_v11 = vmul.f32 %v3129_v40, %v1292_v28  ;;  %v1301_v60 = vadd.f32 %v1209_v50, %v3130_v56  ;;  %v1302_v38 = vadd.f32 %v1210_v17, %v3131_v48  ;;  %v1303_v34 = vadd.f32 %v1221_v7, %v1215_v24 }
 0x2a6   :  { %v1304_v26 = vadd.f32 %v1222_v16, %v1216_v18  ;;  %v1305_v33 = vadd.f32 %v1233_v47, %v1227_v62  ;;  %v1306_v19 = vadd.f32 %v1234_v35, %v1228_v25  ;;  %v1307_v53 = vadd.f32 %v1245_v45, %v1239_v44 }
 0x2a7   :  { %v1308_v23 = vadd.f32 %v1246_v43, %v1240_v41  ;;  %v1309_v12 = vadd.f32 %v1257_v46, %v1251_v39  ;;  %v1310_v63 = vadd.f32 %v1258_v51, %v1252_v15  ;;  %v1311_v36 = vadd.f32 %v1269_v1, %v1263_v32 }
 0x2a8   :  { %v1312_v58 = vadd.f32 %v1270_v29, %v1264_v22  ;;  %v1313_v37 = vadd.f32 %v1281_v10, %v1275_v4  ;;  %v1314_v2 = vadd.f32 %v1282_v0, %v1276_v31  ;;  %v1315_v20 = vadd.f32 %v1293_v54, %v1287_v9  ;;  %v1597_v9 = vld [vmem:[%s2707_s0] sm:$0xff] }
 0x2a9   :  { %v1316_v27 = vadd.f32 %v1294_v11, %v1288_v3  ;;  %v1317_v30 = vadd.f32 %v1303_v34, %v1301_v60  ;;  %v1318_v28 = vadd.f32 %v1304_v26, %v1302_v38  ;;  %v1319_v59 = vadd.f32 %v1307_v53, %v1305_v33 }
 0x2aa   :  { %v1320_v50 = vadd.f32 %v1308_v23, %v1306_v19  ;;  %v1321_v49 = vadd.f32 %v1311_v36, %v1309_v12  ;;  %v1322_v17 = vadd.f32 %v1312_v58, %v1310_v63  ;;  %v1323_v24 = vadd.f32 %v1315_v20, %v1313_v37 }
 0x2ab   :  { %v1324_v18 = vadd.f32 %v1316_v27, %v1314_v2  ;;  %v1346_v7 = vsel %vm1345_vm5, %v2615_v21, %v2634_v42  ;;  %v1325_v16 = vadd.f32 %v1319_v59, %v1317_v30  ;;  %v1299_v41 = vmul.f32 %v2620_v57, %v1298_v6 }
 0x2ac   :  { %v1326_v62 = vadd.f32 %v1320_v50, %v1318_v28  ;;  %v1348_v25 = vsel %vm1347_vm6, %v1346_v7, %v1055_v8  ;;  %v1327_v47 = vadd.f32 %v1323_v24, %v1321_v49  ;;  %v1300_v45 = vmul.f32 %v2626_v52, %v1298_v6 }
 0x2ad   :  { %v1328_v35 = vadd.f32 %v1324_v18, %v1322_v17  ;;  %v1350_v44 = vsel %vm1349_vm7, %v1348_v25, %v1198_v5  ;;  %v1596_v5 = vld [vmem:[%s2707_s0 + $0x8] sm:$0xff] }
 0x2ae   :  { %v1329_v43 = vadd.f32 %v1327_v47, %v1325_v16 }
 0x2af   :  { %v1330_v39 = vadd.f32 %v1328_v35, %v1326_v62 }
 0x2b0   :  { %v1331_v15 = vadd.f32 %v1329_v43, %v1299_v41 }
 0x2b1   :  { %v1332_v46 = vadd.f32 %v1330_v39, %v1300_v45 }
 0x2b2   :  { %v1333_v51 = vmul.f32 %v2601_v14, %v1331_v15  ;;  %v1505_v14 = vld [vmem:[%s2717_s10] ss:$0 sm:$0xff]  ;;  %s1598_s10 = scalar_lea.vmem %s1460_s29, 256 }
 0x2b3   :  { %v1334_v21 = vmul.f32 %v2608_v55, %v1332_v46  ;;  %p1599_p0 = scmp.ne.s32.totalorder %s1460_s29, %s1598_s10  ;;  %p1604_p2 = scmp.lt.s32.totalorder %s1598_s10, %s1598_s10 }
 0x2b5   :  { %v1335_v42 = vadd.f32 %v1334_v21, %v1333_v51  ;;  %p1605_p3 = por %p1604_p2, %p1603_p1 }
 0x2b7   :  { %v1336_v32 = vrot.slane %v1335_v42, 4  ;;  %p1606_p4 = pnand %p1605_p3, %p1599_p0 }
 0x2b9   :  { %v1337_v22 = vadd.f32 %v1336_v32, %v1335_v42 }
 0x2bb   :  { %v1338_v8 = vrot.slane %v1337_v22, 2 }
 0x2bd   :  { %v1339_v1 = vadd.f32 %v1338_v8, %v1337_v22 }
 0x2bf   :  { %v1340_v29 = vrot.slane %v1339_v1, 1 }
 0x2c1   :  { %v1341_v4 = vadd.f32 %v1340_v29, %v1339_v1 }
 0x2c3   :  { %v1352_v31 = vsel %vm1351_vm8, %v1350_v44, %v1341_v4 }
 0x2c4   :  { %1354 = vrot.lane.b32.xlu1 %v1352_v31, %s1620_s13  ;;  %1551 = vmatprep.mubr.msk.f32.mxu1 %vm164_vm1, %v1352_v31 }
 0x336   :  { %v1355_v57 = vpop.permute.xlu1 %1354 }
 0x337   :  { %1552 = vmatmul.mubr.msk.f32.vlgmr.msra.gmra.mxu1 %vm164_vm1, %v1355_v57 }
 0x3f7   :  { %v1553_v55 = vpop.f32.mrf.mxu1 }
 0x3f8   :  { %v1447_v52 = vadd.f32 %v1553_v55, %v1505_v14 }
 0x3f9   :  { %v1441_v6 = vpop.f32.mrf.mxu1 }
 0x3fa   :  { %v1451_v10 = vadd.f32 %v1596_v5, %v1447_v52  ;;  %v1442_v0 = vadd.f32 %v1505_v14, %v1441_v6 }
 0x3fc   :  { %1453 = vst.msk [vmem:[#allocation2 + $0x8] sm:$0xff] %vm43_vm0, %v1451_v10  ;;  %v1450_v13 = vadd.f32 %v1597_v9, %v1442_v0 }
 0x3fe   :  { %1452 = vst.msk [vmem:[#allocation2] sm:$0xff] %vm43_vm0, %v1450_v13 }
 0x3ff   :  { %1609 = shalt.err (!%p1606_p4)
}
 0x400   :  { %s1622_s12 = smov 128   ;;  %s1623_s1 = smov 8  }
 0x401   :  { %1465 = dma.vmem_to_hbm [thread:$0]  %s1460_s29, 256, %s2718_s11, [#allocation3], %s1622_s12, %s1622_s12, %s1623_s1  }
 0x402   :  { %1618 = dma.done.wait [#allocation3], 256  }
 0x403   :  { %1619 = vsyncadd [#allocation3], 4294967040 }
 0x404   :  { %1469 = vsyncpa [#allocation3], 1 }

</bundles_post_ra>
